<compile_context>
chip_gen: v6e
topology: v6e:2x2x1
jax: 0.10.0
libtpu: 0.0.40
codegen_flags: <defaults>
</compile_context>

<pallas_src>
import jax
import jax.numpy as jnp
import numpy as np
from jax.experimental import pallas as pl
from jax.experimental.pallas import tpu as pltpu

# ---------------- configuration (small shapes consistent with the module) --------------
B = 2            # batch
T = 16           # sequence length (multiple of 8)
IN_CH = 4        # WaveNetDecoder in_channels
OUT_CH = 4       # WaveNetDecoder out_channels
HID_POST = 32    # WaveNetDecoder hidden_channels (postnet width)
PARAMS = dict(num_blocks=2, hidden_channels=32, kernel_size=5,
              dilation_rate=1, num_layers=2, dropout_p=0.05)
HW = PARAMS["hidden_channels"]       # WN hidden width
K = PARAMS["kernel_size"]
NB = PARAMS["num_blocks"]
NL = PARAMS["num_layers"]
DIL_RATE = PARAMS["dilation_rate"]
L = NB * NL                          # total WN layers
OUT_PAD = 128                        # lane-dense padded output width (sliced outside)

# persistent zero-halo buffer geometry (per grid step = per batch element)
PAD_MAX = (DIL_RATE ** (NL - 1)) * (K - 1) // 2     # largest per-layer halo (= 2 here)
INT_OFF = ((PAD_MAX + 7) // 8) * 8                  # sublane-aligned interior row offset
HB_ROWS = ((INT_OFF + T + PAD_MAX + 7) // 8) * 8    # scratch rows (extra rows stay zero)

# weight order fed to both the kernel and the reference (natural, unfused layout)
W_ORDER = ["pre_w", "pre_b",
           "in_w_t", "in_b_t", "in_w_s", "in_b_s",
           "rs_w_res", "rs_b_res", "rs_w_skip", "rs_b_skip",
           "pw1", "pb1", "pw2", "pb2", "pw3", "pb3", "pw4", "pb4"]


# ------------------------------------ Pallas kernel ------------------------------------
def _decoder_kernel(x_ref, m_ref,
                    pre_w_ref, pre_b_ref,
                    in_wt_ref, in_bt_ref, in_ws_ref, in_bs_ref,
                    rs_wr_ref, rs_br_ref, rs_ws_ref, rs_bs_ref,
                    pw1_ref, pb1_ref, pw2_ref, pb2_ref,
                    pw3_ref, pb3_ref, pw4_ref, pb4_ref,
                    o_ref, hb_ref):
    def mm(a, w):
        return jnp.dot(a, w, preferred_element_type=jnp.float32)

    def sigmoid(v):          # sigmoid(x) = 0.5*(tanh(0.5*x)+1): 2 EUP tanh, no exp/divide
        return 0.5 * (jnp.tanh(0.5 * v) + 1.0)

    x = x_ref[...]                          # (T, IN_CH)  one batch element per grid step
    m1 = m_ref[...]                         # (T, 1)
    # hoisted: broadcast the mask to hidden width once, reuse for every masking multiply
    mh = jnp.broadcast_to(m1, (T, HW))

    # persistent zero-halo buffer: zero once per grid step, halo rows never rewritten,
    # interior rows (sublane-aligned at INT_OFF) rewritten each WN layer.
    hb_ref[...] = jnp.zeros((HB_ROWS, HW), jnp.float32)

    # --- prenet: 1x1 conv, then mask ---
    h = (mm(x, pre_w_ref[...]) + pre_b_ref[...]) * mh            # (T, HW)

    # --- WN blocks ---
    li = 0
    for _blk in range(NB):
        out_acc = None
        for layer in range(NL):
            dil = DIL_RATE ** layer
            base = INT_OFF - dil * (K - 1) // 2                  # static; halo rows are 0
            # refresh interior rows only (sublane-aligned store)
            hb_ref[pl.ds(INT_OFF, T), :] = h
            # K-tap dilated conv: taps are static sublane slices of the halo buffer;
            # tanh and sigmoid paths are separate narrow matmuls (no lane concat, no
            # sub-vreg slicing of the result).
            z_t = None
            z_s = None
            for k in range(K):
                tap = hb_ref[pl.ds(base + k * dil, T), :]        # (T, HW)
                pt = mm(tap, in_wt_ref[li * K + k])
                ps = mm(tap, in_ws_ref[li * K + k])
                z_t = pt if z_t is None else z_t + pt
                z_s = ps if z_s is None else z_s + ps
            z_t = z_t + in_bt_ref[li]                            # bias added once
            z_s = z_s + in_bs_ref[li]
            # dropout is identity at inference; g is None (no conditioning added)
            acts = jnp.tanh(z_t) * sigmoid(z_s)                  # (T, HW)
            if layer < NL - 1:
                res = mm(acts, rs_wr_ref[li]) + rs_br_ref[li]
                skip = mm(acts, rs_ws_ref[li]) + rs_bs_ref[li]
                h = (h + res) * mh
                out_acc = skip if out_acc is None else out_acc + skip
            else:   # last layer of a block: its res_skip conv output is all skip
                last = mm(acts, rs_wr_ref[li]) + rs_br_ref[li]
                out_acc = last if out_acc is None else out_acc + last
            li += 1
        h = out_acc * mh                     # WN block output feeds the next block

    # --- postnet: 3 x [1x1 conv -> relu] -> 1x1 conv (128 lanes), mask, dense store ---
    y = jnp.maximum(mm(h, pw1_ref[...]) + pb1_ref[...], 0.0)
    y = jnp.maximum(mm(y, pw2_ref[...]) + pb2_ref[...], 0.0)
    y = jnp.maximum(mm(y, pw3_ref[...]) + pb3_ref[...], 0.0)
    y = (mm(y, pw4_ref[...]) + pb4_ref[...]) * m1                # (T, OUT_PAD) lane-dense
    o_ref[...] = y.astype(o_ref.dtype)


def wavenet_decoder(x, x_mask, kw):
    """x: (B,T,IN_CH) f32, x_mask: (B,T,1) f32 -> (B,T,OUT_CH) f32."""
    Bn, Tn, Cin = x.shape
    x2 = x.reshape(Bn * Tn, Cin)          # row-major fold: rows b*T..(b+1)*T-1 = batch b
    m2 = x_mask.reshape(Bn * Tn, 1)

    def row_spec(shape):                  # per-batch row tile: streams with the grid
        return pl.BlockSpec((Tn,) + tuple(shape[1:]),
                            lambda b: (b,) + (0,) * (len(shape) - 1))

    def const_spec(shape):                # whole array, fetched once, stays VMEM-resident
        return pl.BlockSpec(tuple(shape), lambda b: (0,) * len(shape))

    in_specs = [row_spec(x2.shape), row_spec(m2.shape)]
    args = [x2, m2]
    for name in W_ORDER:
        arr = kw[name]
        in_specs.append(const_spec(arr.shape))
        args.append(arr)

    out = pl.pallas_call(
        _decoder_kernel,
        grid_spec=pltpu.PrefetchScalarGridSpec(
            num_scalar_prefetch=0,
            grid=(Bn,),
            in_specs=in_specs,
            out_specs=pl.BlockSpec((Tn, OUT_PAD), lambda b: (b, 0)),
            scratch_shapes=[pltpu.VMEM((HB_ROWS, HW), jnp.float32)],
        ),
        out_shape=jax.ShapeDtypeStruct((Bn * Tn, OUT_PAD), jnp.float32),
        compiler_params=pltpu.CompilerParams(
            dimension_semantics=("parallel",)),          # batch is embarrassingly parallel
    )(*args)
    return out.reshape(Bn, Tn, OUT_PAD)[:, :, :OUT_CH]


# ------------------------- deterministic parameter initialization ----------------------
def init_weights(key):
    keys = iter(jax.random.split(key, len(W_ORDER)))

    def nrm(shape, scale=0.1):
        return jax.random.normal(next(keys), shape, jnp.float32) * scale

    w = {}
    w["pre_w"] = nrm((IN_CH, HW));            w["pre_b"] = nrm((1, HW))
    # WN in_layers (kernel_size K dilated conv, tanh / sigmoid halves kept separate)
    w["in_w_t"] = nrm((L, K, HW, HW));        w["in_b_t"] = nrm((L, 1, HW))
    w["in_w_s"] = nrm((L, K, HW, HW));        w["in_b_s"] = nrm((L, 1, HW))
    # WN res_skip 1x1 convs (last layer of each block only uses the "res" half -> skip)
    w["rs_w_res"] = nrm((L, HW, HW));         w["rs_b_res"] = nrm((L, 1, HW))
    w["rs_w_skip"] = nrm((L, HW, HW));        w["rs_b_skip"] = nrm((L, 1, HW))
    # postnet 1x1 convs
    w["pw1"] = nrm((HW, HID_POST));           w["pb1"] = nrm((1, HID_POST))
    w["pw2"] = nrm((HID_POST, HID_POST));     w["pb2"] = nrm((1, HID_POST))
    w["pw3"] = nrm((HID_POST, HID_POST));     w["pb3"] = nrm((1, HID_POST))
    w["pw4"] = nrm((HID_POST, OUT_CH));       w["pb4"] = nrm((1, OUT_CH))
    return w


def prep_weights(w):
    """Host-side weight prep for the kernel: flatten conv taps, pad final projection."""
    kw = dict(w)
    kw["in_w_t"] = w["in_w_t"].reshape(L * K, HW, HW)     # per-tap (HW,HW) matrices
    kw["in_w_s"] = w["in_w_s"].reshape(L * K, HW, HW)
    # pad the final projection to a lane-dense 128-wide output (sliced in the wrapper)
    kw["pw4"] = jnp.pad(w["pw4"], ((0, 0), (0, OUT_PAD - OUT_CH)))
    kw["pb4"] = jnp.pad(w["pb4"], ((0, 0), (0, OUT_PAD - OUT_CH)))
    # TODO(synk): store weights in bf16 (keep f32 accumulation) once shapes are realistic.
    return kw


# ------------------------ plain-JAX reference (mirrors PyTorch math) --------------------
def _conv1d_same(v, wk, b, dil):
    # v: (B,T,Cin), wk: (K,Cin,Cout), b: (1,Cout); same-padding dilated cross-correlation
    Kk, Tn = wk.shape[0], v.shape[1]
    pad = dil * (Kk - 1) // 2
    vp = jnp.pad(v, ((0, 0), (pad, pad), (0, 0)))
    y = jnp.zeros((v.shape[0], Tn, wk.shape[2]), jnp.float32) + b
    for k in range(Kk):
        y = y + jnp.einsum("btc,cd->btd", vp[:, k * dil:k * dil + Tn, :], wk[k])
    return y


def decoder_reference(x, m, w):
    h = (jnp.einsum("btc,cd->btd", x, w["pre_w"]) + w["pre_b"]) * m
    li = 0
    for _blk in range(NB):
        out = jnp.zeros_like(h)
        for layer in range(NL):
            dil = DIL_RATE ** layer
            xt = _conv1d_same(h, w["in_w_t"][li], w["in_b_t"][li], dil)
            xs = _conv1d_same(h, w["in_w_s"][li], w["in_b_s"][li], dil)
            acts = jnp.tanh(xt) * jax.nn.sigmoid(xs)
            res = jnp.einsum("btc,cd->btd", acts, w["rs_w_res"][li]) + w["rs_b_res"][li]
            if layer < NL - 1:
                skip = jnp.einsum("btc,cd->btd", acts, w["rs_w_skip"][li]) + w["rs_b_skip"][li]
                h = (h + res) * m
                out = out + skip
            else:
                out = out + res
            li += 1
        h = out * m
    y = jax.nn.relu(jnp.einsum("btc,cd->btd", h, w["pw1"]) + w["pb1"])
    y = jax.nn.relu(jnp.einsum("btc,cd->btd", y, w["pw2"]) + w["pb2"])
    y = jax.nn.relu(jnp.einsum("btc,cd->btd", y, w["pw3"]) + w["pb3"])
    y = (jnp.einsum("btc,cd->btd", y, w["pw4"]) + w["pb4"]) * m
    return y


# ---------------------------------------- main ------------------------------------------
if __name__ == "__main__":
    key = jax.random.PRNGKey(0)
    k_x, k_w = jax.random.split(key)

    x = jax.random.normal(k_x, (B, T, IN_CH), jnp.float32)
    lengths = jnp.array([T, T - 4])                                  # ragged batch -> real mask
    x_mask = (jnp.arange(T)[None, :, None] < lengths[:, None, None]).astype(jnp.float32)

    w = init_weights(k_w)
    kw = prep_weights(w)

    out = wavenet_decoder(x, x_mask, kw)
    out = jax.block_until_ready(out)

    ref = decoder_reference(x, x_mask, w)
    assert out.shape == (B, T, OUT_CH)
    np.testing.assert_allclose(np.asarray(out), np.asarray(ref), rtol=1e-4, atol=1e-4)
    print("KERNEL_OK")
</pallas_src>

<mosaic_0001>
module attributes {stable_mosaic.version = 11 : i64} {
  func.func @_decoder_kernel(%arg0: i32, %arg1: memref<16x4xf32, #tpu.memory_space<vmem>>, %arg2: memref<16x1xf32, #tpu.memory_space<vmem>>, %arg3: memref<4x32xf32, #tpu.memory_space<vmem>>, %arg4: memref<1x32xf32, #tpu.memory_space<vmem>>, %arg5: memref<20x32x32xf32, #tpu.memory_space<vmem>>, %arg6: memref<4x1x32xf32, #tpu.memory_space<vmem>>, %arg7: memref<20x32x32xf32, #tpu.memory_space<vmem>>, %arg8: memref<4x1x32xf32, #tpu.memory_space<vmem>>, %arg9: memref<4x32x32xf32, #tpu.memory_space<vmem>>, %arg10: memref<4x1x32xf32, #tpu.memory_space<vmem>>, %arg11: memref<4x32x32xf32, #tpu.memory_space<vmem>>, %arg12: memref<4x1x32xf32, #tpu.memory_space<vmem>>, %arg13: memref<32x32xf32, #tpu.memory_space<vmem>>, %arg14: memref<1x32xf32, #tpu.memory_space<vmem>>, %arg15: memref<32x32xf32, #tpu.memory_space<vmem>>, %arg16: memref<1x32xf32, #tpu.memory_space<vmem>>, %arg17: memref<32x32xf32, #tpu.memory_space<vmem>>, %arg18: memref<1x32xf32, #tpu.memory_space<vmem>>, %arg19: memref<32x128xf32, #tpu.memory_space<vmem>>, %arg20: memref<1x128xf32, #tpu.memory_space<vmem>>, %arg21: memref<16x128xf32, #tpu.memory_space<vmem>>, %arg22: memref<32x32xf32, #tpu.memory_space<vmem>>) attributes {dimension_semantics = [#tpu.dimension_semantics<parallel>], iteration_bounds = array<i64: 2>, scalar_prefetch = 0 : i64, scratch_operands = 1 : i64, tpu.core_type = #tpu.core_type<tc>, window_params = [{transform_indices = @transform_0, window_bounds = array<i64: 16, 4>}, {transform_indices = @transform_1, window_bounds = array<i64: 16, 1>}, {pipeline_mode = #tpu.pipeline_mode<synchronous>, transform_indices = @transform_2, window_bounds = array<i64: 4, 32>}, {pipeline_mode = #tpu.pipeline_mode<synchronous>, transform_indices = @transform_3, window_bounds = array<i64: 1, 32>}, {pipeline_mode = #tpu.pipeline_mode<synchronous>, transform_indices = @transform_4, window_bounds = array<i64: 20, 32, 32>}, {pipeline_mode = #tpu.pipeline_mode<synchronous>, transform_indices = @transform_5, window_bounds = array<i64: 4, 1, 32>}, {pipeline_mode = #tpu.pipeline_mode<synchronous>, transform_indices = @transform_6, window_bounds = array<i64: 20, 32, 32>}, {pipeline_mode = #tpu.pipeline_mode<synchronous>, transform_indices = @transform_7, window_bounds = array<i64: 4, 1, 32>}, {pipeline_mode = #tpu.pipeline_mode<synchronous>, transform_indices = @transform_8, window_bounds = array<i64: 4, 32, 32>}, {pipeline_mode = #tpu.pipeline_mode<synchronous>, transform_indices = @transform_9, window_bounds = array<i64: 4, 1, 32>}, {pipeline_mode = #tpu.pipeline_mode<synchronous>, transform_indices = @transform_10, window_bounds = array<i64: 4, 32, 32>}, {pipeline_mode = #tpu.pipeline_mode<synchronous>, transform_indices = @transform_11, window_bounds = array<i64: 4, 1, 32>}, {pipeline_mode = #tpu.pipeline_mode<synchronous>, transform_indices = @transform_12, window_bounds = array<i64: 32, 32>}, {pipeline_mode = #tpu.pipeline_mode<synchronous>, transform_indices = @transform_13, window_bounds = array<i64: 1, 32>}, {pipeline_mode = #tpu.pipeline_mode<synchronous>, transform_indices = @transform_14, window_bounds = array<i64: 32, 32>}, {pipeline_mode = #tpu.pipeline_mode<synchronous>, transform_indices = @transform_15, window_bounds = array<i64: 1, 32>}, {pipeline_mode = #tpu.pipeline_mode<synchronous>, transform_indices = @transform_16, window_bounds = array<i64: 32, 32>}, {pipeline_mode = #tpu.pipeline_mode<synchronous>, transform_indices = @transform_17, window_bounds = array<i64: 1, 32>}, {pipeline_mode = #tpu.pipeline_mode<synchronous>, transform_indices = @transform_18, window_bounds = array<i64: 32, 128>}, {pipeline_mode = #tpu.pipeline_mode<synchronous>, transform_indices = @transform_19, window_bounds = array<i64: 1, 128>}, {transform_indices = @transform_20, window_bounds = array<i64: 16, 128>}]} {
    %c0 = arith.constant 0 : index
    %c0_0 = arith.constant 0 : index
    %0 = vector.load %arg1[%c0, %c0_0] : memref<16x4xf32, #tpu.memory_space<vmem>>, vector<16x4xf32>
    %c0_1 = arith.constant 0 : index
    %c0_2 = arith.constant 0 : index
    %1 = vector.load %arg2[%c0_1, %c0_2] : memref<16x1xf32, #tpu.memory_space<vmem>>, vector<16x1xf32>
    %2 = vector.shape_cast %1 : vector<16x1xf32> to vector<16x1xf32>
    %3 = vector.broadcast %2 : vector<16x1xf32> to vector<16x32xf32>
    %cst = arith.constant 0.000000e+00 : f32
    %4 = vector.broadcast %cst : f32 to vector<32x32xf32>
    %c0_3 = arith.constant 0 : index
    %c0_4 = arith.constant 0 : index
    %5 = vector.load %arg22[%c0_3, %c0_4] : memref<32x32xf32, #tpu.memory_space<vmem>>, vector<32x32xf32>
    tpu.vector_store %arg22[%c0_3, %c0_4], %4 {strides = array<i32>} : memref<32x32xf32, #tpu.memory_space<vmem>>, vector<32x32xf32>,
    %c0_5 = arith.constant 0 : index
    %c0_6 = arith.constant 0 : index
    %6 = vector.load %arg3[%c0_5, %c0_6] : memref<4x32xf32, #tpu.memory_space<vmem>>, vector<4x32xf32>
    %cst_7 = arith.constant dense<0.000000e+00> : vector<16x32xf32>
    %7 = tpu.matmul %0, %6, %cst_7 {dimension_numbers = #tpu.dot_dimension_numbers<[1], [0], [0], [1], [0, 0, 1, 1], [], []>} : vector<16x4xf32>, vector<4x32xf32>, vector<16x32xf32> -> vector<16x32xf32>
    %c0_8 = arith.constant 0 : index
    %c0_9 = arith.constant 0 : index
    %8 = vector.load %arg4[%c0_8, %c0_9] : memref<1x32xf32, #tpu.memory_space<vmem>>, vector<1x32xf32>
    %9 = vector.broadcast %8 : vector<1x32xf32> to vector<16x32xf32>
    %10 = arith.addf %7, %9 : vector<16x32xf32>
    %11 = arith.mulf %10, %3 : vector<16x32xf32>
    %c8 = arith.constant 8 : index
    %c0_10 = arith.constant 0 : index
    %12 = vector.load %arg22[%c8, %c0_10] : memref<32x32xf32, #tpu.memory_space<vmem>>, vector<16x32xf32>
    tpu.vector_store %arg22[%c8, %c0_10], %11 {strides = array<i32>} : memref<32x32xf32, #tpu.memory_space<vmem>>, vector<16x32xf32>,
    %c6 = arith.constant 6 : index
    %c0_11 = arith.constant 0 : index
    %13 = vector.load %arg22[%c6, %c0_11] : memref<32x32xf32, #tpu.memory_space<vmem>>, vector<16x32xf32>
    %c0_12 = arith.constant 0 : index
    %c0_13 = arith.constant 0 : index
    %c0_14 = arith.constant 0 : index
    %14 = vector.load %arg5[%c0_12, %c0_13, %c0_14] : memref<20x32x32xf32, #tpu.memory_space<vmem>>, vector<1x32x32xf32>
    %15 = vector.shape_cast %14 : vector<1x32x32xf32> to vector<32x32xf32>
    %cst_15 = arith.constant dense<0.000000e+00> : vector<16x32xf32>
    %16 = tpu.matmul %13, %15, %cst_15 {dimension_numbers = #tpu.dot_dimension_numbers<[1], [0], [0], [1], [0, 0, 1, 1], [], []>} : vector<16x32xf32>, vector<32x32xf32>, vector<16x32xf32> -> vector<16x32xf32>
    %c0_16 = arith.constant 0 : index
    %c0_17 = arith.constant 0 : index
    %c0_18 = arith.constant 0 : index
    %17 = vector.load %arg7[%c0_16, %c0_17, %c0_18] : memref<20x32x32xf32, #tpu.memory_space<vmem>>, vector<1x32x32xf32>
    %18 = vector.shape_cast %17 : vector<1x32x32xf32> to vector<32x32xf32>
    %cst_19 = arith.constant dense<0.000000e+00> : vector<16x32xf32>
    %19 = tpu.matmul %13, %18, %cst_19 {dimension_numbers = #tpu.dot_dimension_numbers<[1], [0], [0], [1], [0, 0, 1, 1], [], []>} : vector<16x32xf32>, vector<32x32xf32>, vector<16x32xf32> -> vector<16x32xf32>
    %c7 = arith.constant 7 : index
    %c0_20 = arith.constant 0 : index
    %20 = vector.load %arg22[%c7, %c0_20] : memref<32x32xf32, #tpu.memory_space<vmem>>, vector<16x32xf32>
    %c1 = arith.constant 1 : index
    %c0_21 = arith.constant 0 : index
    %c0_22 = arith.constant 0 : index
    %21 = vector.load %arg5[%c1, %c0_21, %c0_22] : memref<20x32x32xf32, #tpu.memory_space<vmem>>, vector<1x32x32xf32>
    %22 = vector.shape_cast %21 : vector<1x32x32xf32> to vector<32x32xf32>
    %cst_23 = arith.constant dense<0.000000e+00> : vector<16x32xf32>
    %23 = tpu.matmul %20, %22, %cst_23 {dimension_numbers = #tpu.dot_dimension_numbers<[1], [0], [0], [1], [0, 0, 1, 1], [], []>} : vector<16x32xf32>, vector<32x32xf32>, vector<16x32xf32> -> vector<16x32xf32>
    %c1_24 = arith.constant 1 : index
    %c0_25 = arith.constant 0 : index
    %c0_26 = arith.constant 0 : index
    %24 = vector.load %arg7[%c1_24, %c0_25, %c0_26] : memref<20x32x32xf32, #tpu.memory_space<vmem>>, vector<1x32x32xf32>
    %25 = vector.shape_cast %24 : vector<1x32x32xf32> to vector<32x32xf32>
    %cst_27 = arith.constant dense<0.000000e+00> : vector<16x32xf32>
    %26 = tpu.matmul %20, %25, %cst_27 {dimension_numbers = #tpu.dot_dimension_numbers<[1], [0], [0], [1], [0, 0, 1, 1], [], []>} : vector<16x32xf32>, vector<32x32xf32>, vector<16x32xf32> -> vector<16x32xf32>
    %27 = arith.addf %16, %23 : vector<16x32xf32>
    %28 = arith.addf %19, %26 : vector<16x32xf32>
    %c8_28 = arith.constant 8 : index
    %c0_29 = arith.constant 0 : index
    %29 = vector.load %arg22[%c8_28, %c0_29] : memref<32x32xf32, #tpu.memory_space<vmem>>, vector<16x32xf32>
    %c2 = arith.constant 2 : index
    %c0_30 = arith.constant 0 : index
    %c0_31 = arith.constant 0 : index
    %30 = vector.load %arg5[%c2, %c0_30, %c0_31] : memref<20x32x32xf32, #tpu.memory_space<vmem>>, vector<1x32x32xf32>
    %31 = vector.shape_cast %30 : vector<1x32x32xf32> to vector<32x32xf32>
    %cst_32 = arith.constant dense<0.000000e+00> : vector<16x32xf32>
    %32 = tpu.matmul %29, %31, %cst_32 {dimension_numbers = #tpu.dot_dimension_numbers<[1], [0], [0], [1], [0, 0, 1, 1], [], []>} : vector<16x32xf32>, vector<32x32xf32>, vector<16x32xf32> -> vector<16x32xf32>
    %c2_33 = arith.constant 2 : index
    %c0_34 = arith.constant 0 : index
    %c0_35 = arith.constant 0 : index
    %33 = vector.load %arg7[%c2_33, %c0_34, %c0_35] : memref<20x32x32xf32, #tpu.memory_space<vmem>>, vector<1x32x32xf32>
    %34 = vector.shape_cast %33 : vector<1x32x32xf32> to vector<32x32xf32>
    %cst_36 = arith.constant dense<0.000000e+00> : vector<16x32xf32>
    %35 = tpu.matmul %29, %34, %cst_36 {dimension_numbers = #tpu.dot_dimension_numbers<[1], [0], [0], [1], [0, 0, 1, 1], [], []>} : vector<16x32xf32>, vector<32x32xf32>, vector<16x32xf32> -> vector<16x32xf32>
    %36 = arith.addf %27, %32 : vector<16x32xf32>
    %37 = arith.addf %28, %35 : vector<16x32xf32>
    %c9 = arith.constant 9 : index
    %c0_37 = arith.constant 0 : index
    %38 = vector.load %arg22[%c9, %c0_37] : memref<32x32xf32, #tpu.memory_space<vmem>>, vector<16x32xf32>
    %c3 = arith.constant 3 : index
    %c0_38 = arith.constant 0 : index
    %c0_39 = arith.constant 0 : index
    %39 = vector.load %arg5[%c3, %c0_38, %c0_39] : memref<20x32x32xf32, #tpu.memory_space<vmem>>, vector<1x32x32xf32>
    %40 = vector.shape_cast %39 : vector<1x32x32xf32> to vector<32x32xf32>
    %cst_40 = arith.constant dense<0.000000e+00> : vector<16x32xf32>
    %41 = tpu.matmul %38, %40, %cst_40 {dimension_numbers = #tpu.dot_dimension_numbers<[1], [0], [0], [1], [0, 0, 1, 1], [], []>} : vector<16x32xf32>, vector<32x32xf32>, vector<16x32xf32> -> vector<16x32xf32>
    %c3_41 = arith.constant 3 : index
    %c0_42 = arith.constant 0 : index
    %c0_43 = arith.constant 0 : index
    %42 = vector.load %arg7[%c3_41, %c0_42, %c0_43] : memref<20x32x32xf32, #tpu.memory_space<vmem>>, vector<1x32x32xf32>
    %43 = vector.shape_cast %42 : vector<1x32x32xf32> to vector<32x32xf32>
    %cst_44 = arith.constant dense<0.000000e+00> : vector<16x32xf32>
    %44 = tpu.matmul %38, %43, %cst_44 {dimension_numbers = #tpu.dot_dimension_numbers<[1], [0], [0], [1], [0, 0, 1, 1], [], []>} : vector<16x32xf32>, vector<32x32xf32>, vector<16x32xf32> -> vector<16x32xf32>
    %45 = arith.addf %36, %41 : vector<16x32xf32>
    %46 = arith.addf %37, %44 : vector<16x32xf32>
    %c10 = arith.constant 10 : index
    %c0_45 = arith.constant 0 : index
    %47 = vector.load %arg22[%c10, %c0_45] : memref<32x32xf32, #tpu.memory_space<vmem>>, vector<16x32xf32>
    %c4 = arith.constant 4 : index
    %c0_46 = arith.constant 0 : index
    %c0_47 = arith.constant 0 : index
    %48 = vector.load %arg5[%c4, %c0_46, %c0_47] : memref<20x32x32xf32, #tpu.memory_space<vmem>>, vector<1x32x32xf32>
    %49 = vector.shape_cast %48 : vector<1x32x32xf32> to vector<32x32xf32>
    %cst_48 = arith.constant dense<0.000000e+00> : vector<16x32xf32>
    %50 = tpu.matmul %47, %49, %cst_48 {dimension_numbers = #tpu.dot_dimension_numbers<[1], [0], [0], [1], [0, 0, 1, 1], [], []>} : vector<16x32xf32>, vector<32x32xf32>, vector<16x32xf32> -> vector<16x32xf32>
    %c4_49 = arith.constant 4 : index
    %c0_50 = arith.constant 0 : index
    %c0_51 = arith.constant 0 : index
    %51 = vector.load %arg7[%c4_49, %c0_50, %c0_51] : memref<20x32x32xf32, #tpu.memory_space<vmem>>, vector<1x32x32xf32>
    %52 = vector.shape_cast %51 : vector<1x32x32xf32> to vector<32x32xf32>
    %cst_52 = arith.constant dense<0.000000e+00> : vector<16x32xf32>
    %53 = tpu.matmul %47, %52, %cst_52 {dimension_numbers = #tpu.dot_dimension_numbers<[1], [0], [0], [1], [0, 0, 1, 1], [], []>} : vector<16x32xf32>, vector<32x32xf32>, vector<16x32xf32> -> vector<16x32xf32>
    %54 = arith.addf %45, %50 : vector<16x32xf32>
    %55 = arith.addf %46, %53 : vector<16x32xf32>
    %c0_53 = arith.constant 0 : index
    %c0_54 = arith.constant 0 : index
    %c0_55 = arith.constant 0 : index
    %56 = vector.load %arg6[%c0_53, %c0_54, %c0_55] : memref<4x1x32xf32, #tpu.memory_space<vmem>>, vector<1x1x32xf32>
    %57 = vector.shape_cast %56 : vector<1x1x32xf32> to vector<1x32xf32>
    %58 = vector.broadcast %57 : vector<1x32xf32> to vector<16x32xf32>
    %59 = arith.addf %54, %58 : vector<16x32xf32>
    %c0_56 = arith.constant 0 : index
    %c0_57 = arith.constant 0 : index
    %c0_58 = arith.constant 0 : index
    %60 = vector.load %arg8[%c0_56, %c0_57, %c0_58] : memref<4x1x32xf32, #tpu.memory_space<vmem>>, vector<1x1x32xf32>
    %61 = vector.shape_cast %60 : vector<1x1x32xf32> to vector<1x32xf32>
    %62 = vector.broadcast %61 : vector<1x32xf32> to vector<16x32xf32>
    %63 = arith.addf %55, %62 : vector<16x32xf32>
    %64 = math.tanh %59 : vector<16x32xf32>
    %cst_59 = arith.constant 5.000000e-01 : f32
    %65 = vector.broadcast %cst_59 : f32 to vector<16x32xf32>
    %66 = arith.mulf %65, %63 : vector<16x32xf32>
    %67 = math.tanh %66 : vector<16x32xf32>
    %cst_60 = arith.constant 1.000000e+00 : f32
    %68 = vector.broadcast %cst_60 : f32 to vector<16x32xf32>
    %69 = arith.addf %67, %68 : vector<16x32xf32>
    %cst_61 = arith.constant 5.000000e-01 : f32
    %70 = vector.broadcast %cst_61 : f32 to vector<16x32xf32>
    %71 = arith.mulf %70, %69 : vector<16x32xf32>
    %72 = arith.mulf %64, %71 : vector<16x32xf32>
    %c0_62 = arith.constant 0 : index
    %c0_63 = arith.constant 0 : index
    %c0_64 = arith.constant 0 : index
    %73 = vector.load %arg9[%c0_62, %c0_63, %c0_64] : memref<4x32x32xf32, #tpu.memory_space<vmem>>, vector<1x32x32xf32>
    %74 = vector.shape_cast %73 : vector<1x32x32xf32> to vector<32x32xf32>
    %cst_65 = arith.constant dense<0.000000e+00> : vector<16x32xf32>
    %75 = tpu.matmul %72, %74, %cst_65 {dimension_numbers = #tpu.dot_dimension_numbers<[1], [0], [0], [1], [0, 0, 1, 1], [], []>} : vector<16x32xf32>, vector<32x32xf32>, vector<16x32xf32> -> vector<16x32xf32>
    %c0_66 = arith.constant 0 : index
    %c0_67 = arith.constant 0 : index
    %c0_68 = arith.constant 0 : index
    %76 = vector.load %arg10[%c0_66, %c0_67, %c0_68] : memref<4x1x32xf32, #tpu.memory_space<vmem>>, vector<1x1x32xf32>
    %77 = vector.shape_cast %76 : vector<1x1x32xf32> to vector<1x32xf32>
    %78 = vector.broadcast %77 : vector<1x32xf32> to vector<16x32xf32>
    %79 = arith.addf %75, %78 : vector<16x32xf32>
    %c0_69 = arith.constant 0 : index
    %c0_70 = arith.constant 0 : index
    %c0_71 = arith.constant 0 : index
    %80 = vector.load %arg11[%c0_69, %c0_70, %c0_71] : memref<4x32x32xf32, #tpu.memory_space<vmem>>, vector<1x32x32xf32>
    %81 = vector.shape_cast %80 : vector<1x32x32xf32> to vector<32x32xf32>
    %cst_72 = arith.constant dense<0.000000e+00> : vector<16x32xf32>
    %82 = tpu.matmul %72, %81, %cst_72 {dimension_numbers = #tpu.dot_dimension_numbers<[1], [0], [0], [1], [0, 0, 1, 1], [], []>} : vector<16x32xf32>, vector<32x32xf32>, vector<16x32xf32> -> vector<16x32xf32>
    %c0_73 = arith.constant 0 : index
    %c0_74 = arith.constant 0 : index
    %c0_75 = arith.constant 0 : index
    %83 = vector.load %arg12[%c0_73, %c0_74, %c0_75] : memref<4x1x32xf32, #tpu.memory_space<vmem>>, vector<1x1x32xf32>
    %84 = vector.shape_cast %83 : vector<1x1x32xf32> to vector<1x32xf32>
    %85 = vector.broadcast %84 : vector<1x32xf32> to vector<16x32xf32>
    %86 = arith.addf %82, %85 : vector<16x32xf32>
    %87 = arith.addf %11, %79 : vector<16x32xf32>
    %88 = arith.mulf %87, %3 : vector<16x32xf32>
    %c8_76 = arith.constant 8 : index
    %c0_77 = arith.constant 0 : index
    %89 = vector.load %arg22[%c8_76, %c0_77] : memref<32x32xf32, #tpu.memory_space<vmem>>, vector<16x32xf32>
    tpu.vector_store %arg22[%c8_76, %c0_77], %88 {strides = array<i32>} : memref<32x32xf32, #tpu.memory_space<vmem>>, vector<16x32xf32>,
    %c6_78 = arith.constant 6 : index
    %c0_79 = arith.constant 0 : index
    %90 = vector.load %arg22[%c6_78, %c0_79] : memref<32x32xf32, #tpu.memory_space<vmem>>, vector<16x32xf32>
    %c5 = arith.constant 5 : index
    %c0_80 = arith.constant 0 : index
    %c0_81 = arith.constant 0 : index
    %91 = vector.load %arg5[%c5, %c0_80, %c0_81] : memref<20x32x32xf32, #tpu.memory_space<vmem>>, vector<1x32x32xf32>
    %92 = vector.shape_cast %91 : vector<1x32x32xf32> to vector<32x32xf32>
    %cst_82 = arith.constant dense<0.000000e+00> : vector<16x32xf32>
    %93 = tpu.matmul %90, %92, %cst_82 {dimension_numbers = #tpu.dot_dimension_numbers<[1], [0], [0], [1], [0, 0, 1, 1], [], []>} : vector<16x32xf32>, vector<32x32xf32>, vector<16x32xf32> -> vector<16x32xf32>
    %c5_83 = arith.constant 5 : index
    %c0_84 = arith.constant 0 : index
    %c0_85 = arith.constant 0 : index
    %94 = vector.load %arg7[%c5_83, %c0_84, %c0_85] : memref<20x32x32xf32, #tpu.memory_space<vmem>>, vector<1x32x32xf32>
    %95 = vector.shape_cast %94 : vector<1x32x32xf32> to vector<32x32xf32>
    %cst_86 = arith.constant dense<0.000000e+00> : vector<16x32xf32>
    %96 = tpu.matmul %90, %95, %cst_86 {dimension_numbers = #tpu.dot_dimension_numbers<[1], [0], [0], [1], [0, 0, 1, 1], [], []>} : vector<16x32xf32>, vector<32x32xf32>, vector<16x32xf32> -> vector<16x32xf32>
    %c7_87 = arith.constant 7 : index
    %c0_88 = arith.constant 0 : index
    %97 = vector.load %arg22[%c7_87, %c0_88] : memref<32x32xf32, #tpu.memory_space<vmem>>, vector<16x32xf32>
    %c6_89 = arith.constant 6 : index
    %c0_90 = arith.constant 0 : index
    %c0_91 = arith.constant 0 : index
    %98 = vector.load %arg5[%c6_89, %c0_90, %c0_91] : memref<20x32x32xf32, #tpu.memory_space<vmem>>, vector<1x32x32xf32>
    %99 = vector.shape_cast %98 : vector<1x32x32xf32> to vector<32x32xf32>
    %cst_92 = arith.constant dense<0.000000e+00> : vector<16x32xf32>
    %100 = tpu.matmul %97, %99, %cst_92 {dimension_numbers = #tpu.dot_dimension_numbers<[1], [0], [0], [1], [0, 0, 1, 1], [], []>} : vector<16x32xf32>, vector<32x32xf32>, vector<16x32xf32> -> vector<16x32xf32>
    %c6_93 = arith.constant 6 : index
    %c0_94 = arith.constant 0 : index
    %c0_95 = arith.constant 0 : index
    %101 = vector.load %arg7[%c6_93, %c0_94, %c0_95] : memref<20x32x32xf32, #tpu.memory_space<vmem>>, vector<1x32x32xf32>
    %102 = vector.shape_cast %101 : vector<1x32x32xf32> to vector<32x32xf32>
    %cst_96 = arith.constant dense<0.000000e+00> : vector<16x32xf32>
    %103 = tpu.matmul %97, %102, %cst_96 {dimension_numbers = #tpu.dot_dimension_numbers<[1], [0], [0], [1], [0, 0, 1, 1], [], []>} : vector<16x32xf32>, vector<32x32xf32>, vector<16x32xf32> -> vector<16x32xf32>
    %104 = arith.addf %93, %100 : vector<16x32xf32>
    %105 = arith.addf %96, %103 : vector<16x32xf32>
    %c8_97 = arith.constant 8 : index
    %c0_98 = arith.constant 0 : index
    %106 = vector.load %arg22[%c8_97, %c0_98] : memref<32x32xf32, #tpu.memory_space<vmem>>, vector<16x32xf32>
    %c7_99 = arith.constant 7 : index
    %c0_100 = arith.constant 0 : index
    %c0_101 = arith.constant 0 : index
    %107 = vector.load %arg5[%c7_99, %c0_100, %c0_101] : memref<20x32x32xf32, #tpu.memory_space<vmem>>, vector<1x32x32xf32>
    %108 = vector.shape_cast %107 : vector<1x32x32xf32> to vector<32x32xf32>
    %cst_102 = arith.constant dense<0.000000e+00> : vector<16x32xf32>
    %109 = tpu.matmul %106, %108, %cst_102 {dimension_numbers = #tpu.dot_dimension_numbers<[1], [0], [0], [1], [0, 0, 1, 1], [], []>} : vector<16x32xf32>, vector<32x32xf32>, vector<16x32xf32> -> vector<16x32xf32>
    %c7_103 = arith.constant 7 : index
    %c0_104 = arith.constant 0 : index
    %c0_105 = arith.constant 0 : index
    %110 = vector.load %arg7[%c7_103, %c0_104, %c0_105] : memref<20x32x32xf32, #tpu.memory_space<vmem>>, vector<1x32x32xf32>
    %111 = vector.shape_cast %110 : vector<1x32x32xf32> to vector<32x32xf32>
    %cst_106 = arith.constant dense<0.000000e+00> : vector<16x32xf32>
    %112 = tpu.matmul %106, %111, %cst_106 {dimension_numbers = #tpu.dot_dimension_numbers<[1], [0], [0], [1], [0, 0, 1, 1], [], []>} : vector<16x32xf32>, vector<32x32xf32>, vector<16x32xf32> -> vector<16x32xf32>
    %113 = arith.addf %104, %109 : vector<16x32xf32>
    %114 = arith.addf %105, %112 : vector<16x32xf32>
    %c9_107 = arith.constant 9 : index
    %c0_108 = arith.constant 0 : index
    %115 = vector.load %arg22[%c9_107, %c0_108] : memref<32x32xf32, #tpu.memory_space<vmem>>, vector<16x32xf32>
    %c8_109 = arith.constant 8 : index
    %c0_110 = arith.constant 0 : index
    %c0_111 = arith.constant 0 : index
    %116 = vector.load %arg5[%c8_109, %c0_110, %c0_111] : memref<20x32x32xf32, #tpu.memory_space<vmem>>, vector<1x32x32xf32>
    %117 = vector.shape_cast %116 : vector<1x32x32xf32> to vector<32x32xf32>
    %cst_112 = arith.constant dense<0.000000e+00> : vector<16x32xf32>
    %118 = tpu.matmul %115, %117, %cst_112 {dimension_numbers = #tpu.dot_dimension_numbers<[1], [0], [0], [1], [0, 0, 1, 1], [], []>} : vector<16x32xf32>, vector<32x32xf32>, vector<16x32xf32> -> vector<16x32xf32>
    %c8_113 = arith.constant 8 : index
    %c0_114 = arith.constant 0 : index
    %c0_115 = arith.constant 0 : index
    %119 = vector.load %arg7[%c8_113, %c0_114, %c0_115] : memref<20x32x32xf32, #tpu.memory_space<vmem>>, vector<1x32x32xf32>
    %120 = vector.shape_cast %119 : vector<1x32x32xf32> to vector<32x32xf32>
    %cst_116 = arith.constant dense<0.000000e+00> : vector<16x32xf32>
    %121 = tpu.matmul %115, %120, %cst_116 {dimension_numbers = #tpu.dot_dimension_numbers<[1], [0], [0], [1], [0, 0, 1, 1], [], []>} : vector<16x32xf32>, vector<32x32xf32>, vector<16x32xf32> -> vector<16x32xf32>
    %122 = arith.addf %113, %118 : vector<16x32xf32>
    %123 = arith.addf %114, %121 : vector<16x32xf32>
    %c10_117 = arith.constant 10 : index
    %c0_118 = arith.constant 0 : index
    %124 = vector.load %arg22[%c10_117, %c0_118] : memref<32x32xf32, #tpu.memory_space<vmem>>, vector<16x32xf32>
    %c9_119 = arith.constant 9 : index
    %c0_120 = arith.constant 0 : index
    %c0_121 = arith.constant 0 : index
    %125 = vector.load %arg5[%c9_119, %c0_120, %c0_121] : memref<20x32x32xf32, #tpu.memory_space<vmem>>, vector<1x32x32xf32>
    %126 = vector.shape_cast %125 : vector<1x32x32xf32> to vector<32x32xf32>
    %cst_122 = arith.constant dense<0.000000e+00> : vector<16x32xf32>
    %127 = tpu.matmul %124, %126, %cst_122 {dimension_numbers = #tpu.dot_dimension_numbers<[1], [0], [0], [1], [0, 0, 1, 1], [], []>} : vector<16x32xf32>, vector<32x32xf32>, vector<16x32xf32> -> vector<16x32xf32>
    %c9_123 = arith.constant 9 : index
    %c0_124 = arith.constant 0 : index
    %c0_125 = arith.constant 0 : index
    %128 = vector.load %arg7[%c9_123, %c0_124, %c0_125] : memref<20x32x32xf32, #tpu.memory_space<vmem>>, vector<1x32x32xf32>
    %129 = vector.shape_cast %128 : vector<1x32x32xf32> to vector<32x32xf32>
    %cst_126 = arith.constant dense<0.000000e+00> : vector<16x32xf32>
    %130 = tpu.matmul %124, %129, %cst_126 {dimension_numbers = #tpu.dot_dimension_numbers<[1], [0], [0], [1], [0, 0, 1, 1], [], []>} : vector<16x32xf32>, vector<32x32xf32>, vector<16x32xf32> -> vector<16x32xf32>
    %131 = arith.addf %122, %127 : vector<16x32xf32>
    %132 = arith.addf %123, %130 : vector<16x32xf32>
    %c1_127 = arith.constant 1 : index
    %c0_128 = arith.constant 0 : index
    %c0_129 = arith.constant 0 : index
    %133 = vector.load %arg6[%c1_127, %c0_128, %c0_129] : memref<4x1x32xf32, #tpu.memory_space<vmem>>, vector<1x1x32xf32>
    %134 = vector.shape_cast %133 : vector<1x1x32xf32> to vector<1x32xf32>
    %135 = vector.broadcast %134 : vector<1x32xf32> to vector<16x32xf32>
    %136 = arith.addf %131, %135 : vector<16x32xf32>
    %c1_130 = arith.constant 1 : index
    %c0_131 = arith.constant 0 : index
    %c0_132 = arith.constant 0 : index
    %137 = vector.load %arg8[%c1_130, %c0_131, %c0_132] : memref<4x1x32xf32, #tpu.memory_space<vmem>>, vector<1x1x32xf32>
    %138 = vector.shape_cast %137 : vector<1x1x32xf32> to vector<1x32xf32>
    %139 = vector.broadcast %138 : vector<1x32xf32> to vector<16x32xf32>
    %140 = arith.addf %132, %139 : vector<16x32xf32>
    %141 = math.tanh %136 : vector<16x32xf32>
    %cst_133 = arith.constant 5.000000e-01 : f32
    %142 = vector.broadcast %cst_133 : f32 to vector<16x32xf32>
    %143 = arith.mulf %142, %140 : vector<16x32xf32>
    %144 = math.tanh %143 : vector<16x32xf32>
    %cst_134 = arith.constant 1.000000e+00 : f32
    %145 = vector.broadcast %cst_134 : f32 to vector<16x32xf32>
    %146 = arith.addf %144, %145 : vector<16x32xf32>
    %cst_135 = arith.constant 5.000000e-01 : f32
    %147 = vector.broadcast %cst_135 : f32 to vector<16x32xf32>
    %148 = arith.mulf %147, %146 : vector<16x32xf32>
    %149 = arith.mulf %141, %148 : vector<16x32xf32>
    %c1_136 = arith.constant 1 : index
    %c0_137 = arith.constant 0 : index
    %c0_138 = arith.constant 0 : index
    %150 = vector.load %arg9[%c1_136, %c0_137, %c0_138] : memref<4x32x32xf32, #tpu.memory_space<vmem>>, vector<1x32x32xf32>
    %151 = vector.shape_cast %150 : vector<1x32x32xf32> to vector<32x32xf32>
    %cst_139 = arith.constant dense<0.000000e+00> : vector<16x32xf32>
    %152 = tpu.matmul %149, %151, %cst_139 {dimension_numbers = #tpu.dot_dimension_numbers<[1], [0], [0], [1], [0, 0, 1, 1], [], []>} : vector<16x32xf32>, vector<32x32xf32>, vector<16x32xf32> -> vector<16x32xf32>
    %c1_140 = arith.constant 1 : index
    %c0_141 = arith.constant 0 : index
    %c0_142 = arith.constant 0 : index
    %153 = vector.load %arg10[%c1_140, %c0_141, %c0_142] : memref<4x1x32xf32, #tpu.memory_space<vmem>>, vector<1x1x32xf32>
    %154 = vector.shape_cast %153 : vector<1x1x32xf32> to vector<1x32xf32>
    %155 = vector.broadcast %154 : vector<1x32xf32> to vector<16x32xf32>
    %156 = arith.addf %152, %155 : vector<16x32xf32>
    %157 = arith.addf %86, %156 : vector<16x32xf32>
    %158 = arith.mulf %157, %3 : vector<16x32xf32>
    %c8_143 = arith.constant 8 : index
    %c0_144 = arith.constant 0 : index
    %159 = vector.load %arg22[%c8_143, %c0_144] : memref<32x32xf32, #tpu.memory_space<vmem>>, vector<16x32xf32>
    tpu.vector_store %arg22[%c8_143, %c0_144], %158 {strides = array<i32>} : memref<32x32xf32, #tpu.memory_space<vmem>>, vector<16x32xf32>,
    %c6_145 = arith.constant 6 : index
    %c0_146 = arith.constant 0 : index
    %160 = vector.load %arg22[%c6_145, %c0_146] : memref<32x32xf32, #tpu.memory_space<vmem>>, vector<16x32xf32>
    %c10_147 = arith.constant 10 : index
    %c0_148 = arith.constant 0 : index
    %c0_149 = arith.constant 0 : index
    %161 = vector.load %arg5[%c10_147, %c0_148, %c0_149] : memref<20x32x32xf32, #tpu.memory_space<vmem>>, vector<1x32x32xf32>
    %162 = vector.shape_cast %161 : vector<1x32x32xf32> to vector<32x32xf32>
    %cst_150 = arith.constant dense<0.000000e+00> : vector<16x32xf32>
    %163 = tpu.matmul %160, %162, %cst_150 {dimension_numbers = #tpu.dot_dimension_numbers<[1], [0], [0], [1], [0, 0, 1, 1], [], []>} : vector<16x32xf32>, vector<32x32xf32>, vector<16x32xf32> -> vector<16x32xf32>
    %c10_151 = arith.constant 10 : index
    %c0_152 = arith.constant 0 : index
    %c0_153 = arith.constant 0 : index
    %164 = vector.load %arg7[%c10_151, %c0_152, %c0_153] : memref<20x32x32xf32, #tpu.memory_space<vmem>>, vector<1x32x32xf32>
    %165 = vector.shape_cast %164 : vector<1x32x32xf32> to vector<32x32xf32>
    %cst_154 = arith.constant dense<0.000000e+00> : vector<16x32xf32>
    %166 = tpu.matmul %160, %165, %cst_154 {dimension_numbers = #tpu.dot_dimension_numbers<[1], [0], [0], [1], [0, 0, 1, 1], [], []>} : vector<16x32xf32>, vector<32x32xf32>, vector<16x32xf32> -> vector<16x32xf32>
    %c7_155 = arith.constant 7 : index
    %c0_156 = arith.constant 0 : index
    %167 = vector.load %arg22[%c7_155, %c0_156] : memref<32x32xf32, #tpu.memory_space<vmem>>, vector<16x32xf32>
    %c11 = arith.constant 11 : index
    %c0_157 = arith.constant 0 : index
    %c0_158 = arith.constant 0 : index
    %168 = vector.load %arg5[%c11, %c0_157, %c0_158] : memref<20x32x32xf32, #tpu.memory_space<vmem>>, vector<1x32x32xf32>
    %169 = vector.shape_cast %168 : vector<1x32x32xf32> to vector<32x32xf32>
    %cst_159 = arith.constant dense<0.000000e+00> : vector<16x32xf32>
    %170 = tpu.matmul %167, %169, %cst_159 {dimension_numbers = #tpu.dot_dimension_numbers<[1], [0], [0], [1], [0, 0, 1, 1], [], []>} : vector<16x32xf32>, vector<32x32xf32>, vector<16x32xf32> -> vector<16x32xf32>
    %c11_160 = arith.constant 11 : index
    %c0_161 = arith.constant 0 : index
    %c0_162 = arith.constant 0 : index
    %171 = vector.load %arg7[%c11_160, %c0_161, %c0_162] : memref<20x32x32xf32, #tpu.memory_space<vmem>>, vector<1x32x32xf32>
    %172 = vector.shape_cast %171 : vector<1x32x32xf32> to vector<32x32xf32>
    %cst_163 = arith.constant dense<0.000000e+00> : vector<16x32xf32>
    %173 = tpu.matmul %167, %172, %cst_163 {dimension_numbers = #tpu.dot_dimension_numbers<[1], [0], [0], [1], [0, 0, 1, 1], [], []>} : vector<16x32xf32>, vector<32x32xf32>, vector<16x32xf32> -> vector<16x32xf32>
    %174 = arith.addf %163, %170 : vector<16x32xf32>
    %175 = arith.addf %166, %173 : vector<16x32xf32>
    %c8_164 = arith.constant 8 : index
    %c0_165 = arith.constant 0 : index
    %176 = vector.load %arg22[%c8_164, %c0_165] : memref<32x32xf32, #tpu.memory_space<vmem>>, vector<16x32xf32>
    %c12 = arith.constant 12 : index
    %c0_166 = arith.constant 0 : index
    %c0_167 = arith.constant 0 : index
    %177 = vector.load %arg5[%c12, %c0_166, %c0_167] : memref<20x32x32xf32, #tpu.memory_space<vmem>>, vector<1x32x32xf32>
    %178 = vector.shape_cast %177 : vector<1x32x32xf32> to vector<32x32xf32>
    %cst_168 = arith.constant dense<0.000000e+00> : vector<16x32xf32>
    %179 = tpu.matmul %176, %178, %cst_168 {dimension_numbers = #tpu.dot_dimension_numbers<[1], [0], [0], [1], [0, 0, 1, 1], [], []>} : vector<16x32xf32>, vector<32x32xf32>, vector<16x32xf32> -> vector<16x32xf32>
    %c12_169 = arith.constant 12 : index
    %c0_170 = arith.constant 0 : index
    %c0_171 = arith.constant 0 : index
    %180 = vector.load %arg7[%c12_169, %c0_170, %c0_171] : memref<20x32x32xf32, #tpu.memory_space<vmem>>, vector<1x32x32xf32>
    %181 = vector.shape_cast %180 : vector<1x32x32xf32> to vector<32x32xf32>
    %cst_172 = arith.constant dense<0.000000e+00> : vector<16x32xf32>
    %182 = tpu.matmul %176, %181, %cst_172 {dimension_numbers = #tpu.dot_dimension_numbers<[1], [0], [0], [1], [0, 0, 1, 1], [], []>} : vector<16x32xf32>, vector<32x32xf32>, vector<16x32xf32> -> vector<16x32xf32>
    %183 = arith.addf %174, %179 : vector<16x32xf32>
    %184 = arith.addf %175, %182 : vector<16x32xf32>
    %c9_173 = arith.constant 9 : index
    %c0_174 = arith.constant 0 : index
    %185 = vector.load %arg22[%c9_173, %c0_174] : memref<32x32xf32, #tpu.memory_space<vmem>>, vector<16x32xf32>
    %c13 = arith.constant 13 : index
    %c0_175 = arith.constant 0 : index
    %c0_176 = arith.constant 0 : index
    %186 = vector.load %arg5[%c13, %c0_175, %c0_176] : memref<20x32x32xf32, #tpu.memory_space<vmem>>, vector<1x32x32xf32>
    %187 = vector.shape_cast %186 : vector<1x32x32xf32> to vector<32x32xf32>
    %cst_177 = arith.constant dense<0.000000e+00> : vector<16x32xf32>
    %188 = tpu.matmul %185, %187, %cst_177 {dimension_numbers = #tpu.dot_dimension_numbers<[1], [0], [0], [1], [0, 0, 1, 1], [], []>} : vector<16x32xf32>, vector<32x32xf32>, vector<16x32xf32> -> vector<16x32xf32>
    %c13_178 = arith.constant 13 : index
    %c0_179 = arith.constant 0 : index
    %c0_180 = arith.constant 0 : index
    %189 = vector.load %arg7[%c13_178, %c0_179, %c0_180] : memref<20x32x32xf32, #tpu.memory_space<vmem>>, vector<1x32x32xf32>
    %190 = vector.shape_cast %189 : vector<1x32x32xf32> to vector<32x32xf32>
    %cst_181 = arith.constant dense<0.000000e+00> : vector<16x32xf32>
    %191 = tpu.matmul %185, %190, %cst_181 {dimension_numbers = #tpu.dot_dimension_numbers<[1], [0], [0], [1], [0, 0, 1, 1], [], []>} : vector<16x32xf32>, vector<32x32xf32>, vector<16x32xf32> -> vector<16x32xf32>
    %192 = arith.addf %183, %188 : vector<16x32xf32>
    %193 = arith.addf %184, %191 : vector<16x32xf32>
    %c10_182 = arith.constant 10 : index
    %c0_183 = arith.constant 0 : index
    %194 = vector.load %arg22[%c10_182, %c0_183] : memref<32x32xf32, #tpu.memory_space<vmem>>, vector<16x32xf32>
    %c14 = arith.constant 14 : index
    %c0_184 = arith.constant 0 : index
    %c0_185 = arith.constant 0 : index
    %195 = vector.load %arg5[%c14, %c0_184, %c0_185] : memref<20x32x32xf32, #tpu.memory_space<vmem>>, vector<1x32x32xf32>
    %196 = vector.shape_cast %195 : vector<1x32x32xf32> to vector<32x32xf32>
    %cst_186 = arith.constant dense<0.000000e+00> : vector<16x32xf32>
    %197 = tpu.matmul %194, %196, %cst_186 {dimension_numbers = #tpu.dot_dimension_numbers<[1], [0], [0], [1], [0, 0, 1, 1], [], []>} : vector<16x32xf32>, vector<32x32xf32>, vector<16x32xf32> -> vector<16x32xf32>
    %c14_187 = arith.constant 14 : index
    %c0_188 = arith.constant 0 : index
    %c0_189 = arith.constant 0 : index
    %198 = vector.load %arg7[%c14_187, %c0_188, %c0_189] : memref<20x32x32xf32, #tpu.memory_space<vmem>>, vector<1x32x32xf32>
    %199 = vector.shape_cast %198 : vector<1x32x32xf32> to vector<32x32xf32>
    %cst_190 = arith.constant dense<0.000000e+00> : vector<16x32xf32>
    %200 = tpu.matmul %194, %199, %cst_190 {dimension_numbers = #tpu.dot_dimension_numbers<[1], [0], [0], [1], [0, 0, 1, 1], [], []>} : vector<16x32xf32>, vector<32x32xf32>, vector<16x32xf32> -> vector<16x32xf32>
    %201 = arith.addf %192, %197 : vector<16x32xf32>
    %202 = arith.addf %193, %200 : vector<16x32xf32>
    %c2_191 = arith.constant 2 : index
    %c0_192 = arith.constant 0 : index
    %c0_193 = arith.constant 0 : index
    %203 = vector.load %arg6[%c2_191, %c0_192, %c0_193] : memref<4x1x32xf32, #tpu.memory_space<vmem>>, vector<1x1x32xf32>
    %204 = vector.shape_cast %203 : vector<1x1x32xf32> to vector<1x32xf32>
    %205 = vector.broadcast %204 : vector<1x32xf32> to vector<16x32xf32>
    %206 = arith.addf %201, %205 : vector<16x32xf32>
    %c2_194 = arith.constant 2 : index
    %c0_195 = arith.constant 0 : index
    %c0_196 = arith.constant 0 : index
    %207 = vector.load %arg8[%c2_194, %c0_195, %c0_196] : memref<4x1x32xf32, #tpu.memory_space<vmem>>, vector<1x1x32xf32>
    %208 = vector.shape_cast %207 : vector<1x1x32xf32> to vector<1x32xf32>
    %209 = vector.broadcast %208 : vector<1x32xf32> to vector<16x32xf32>
    %210 = arith.addf %202, %209 : vector<16x32xf32>
    %211 = math.tanh %206 : vector<16x32xf32>
    %cst_197 = arith.constant 5.000000e-01 : f32
    %212 = vector.broadcast %cst_197 : f32 to vector<16x32xf32>
    %213 = arith.mulf %212, %210 : vector<16x32xf32>
    %214 = math.tanh %213 : vector<16x32xf32>
    %cst_198 = arith.constant 1.000000e+00 : f32
    %215 = vector.broadcast %cst_198 : f32 to vector<16x32xf32>
    %216 = arith.addf %214, %215 : vector<16x32xf32>
    %cst_199 = arith.constant 5.000000e-01 : f32
    %217 = vector.broadcast %cst_199 : f32 to vector<16x32xf32>
    %218 = arith.mulf %217, %216 : vector<16x32xf32>
    %219 = arith.mulf %211, %218 : vector<16x32xf32>
    %c2_200 = arith.constant 2 : index
    %c0_201 = arith.constant 0 : index
    %c0_202 = arith.constant 0 : index
    %220 = vector.load %arg9[%c2_200, %c0_201, %c0_202] : memref<4x32x32xf32, #tpu.memory_space<vmem>>, vector<1x32x32xf32>
    %221 = vector.shape_cast %220 : vector<1x32x32xf32> to vector<32x32xf32>
    %cst_203 = arith.constant dense<0.000000e+00> : vector<16x32xf32>
    %222 = tpu.matmul %219, %221, %cst_203 {dimension_numbers = #tpu.dot_dimension_numbers<[1], [0], [0], [1], [0, 0, 1, 1], [], []>} : vector<16x32xf32>, vector<32x32xf32>, vector<16x32xf32> -> vector<16x32xf32>
    %c2_204 = arith.constant 2 : index
    %c0_205 = arith.constant 0 : index
    %c0_206 = arith.constant 0 : index
    %223 = vector.load %arg10[%c2_204, %c0_205, %c0_206] : memref<4x1x32xf32, #tpu.memory_space<vmem>>, vector<1x1x32xf32>
    %224 = vector.shape_cast %223 : vector<1x1x32xf32> to vector<1x32xf32>
    %225 = vector.broadcast %224 : vector<1x32xf32> to vector<16x32xf32>
    %226 = arith.addf %222, %225 : vector<16x32xf32>
    %c2_207 = arith.constant 2 : index
    %c0_208 = arith.constant 0 : index
    %c0_209 = arith.constant 0 : index
    %227 = vector.load %arg11[%c2_207, %c0_208, %c0_209] : memref<4x32x32xf32, #tpu.memory_space<vmem>>, vector<1x32x32xf32>
    %228 = vector.shape_cast %227 : vector<1x32x32xf32> to vector<32x32xf32>
    %cst_210 = arith.constant dense<0.000000e+00> : vector<16x32xf32>
    %229 = tpu.matmul %219, %228, %cst_210 {dimension_numbers = #tpu.dot_dimension_numbers<[1], [0], [0], [1], [0, 0, 1, 1], [], []>} : vector<16x32xf32>, vector<32x32xf32>, vector<16x32xf32> -> vector<16x32xf32>
    %c2_211 = arith.constant 2 : index
    %c0_212 = arith.constant 0 : index
    %c0_213 = arith.constant 0 : index
    %230 = vector.load %arg12[%c2_211, %c0_212, %c0_213] : memref<4x1x32xf32, #tpu.memory_space<vmem>>, vector<1x1x32xf32>
    %231 = vector.shape_cast %230 : vector<1x1x32xf32> to vector<1x32xf32>
    %232 = vector.broadcast %231 : vector<1x32xf32> to vector<16x32xf32>
    %233 = arith.addf %229, %232 : vector<16x32xf32>
    %234 = arith.addf %158, %226 : vector<16x32xf32>
    %235 = arith.mulf %234, %3 : vector<16x32xf32>
    %c8_214 = arith.constant 8 : index
    %c0_215 = arith.constant 0 : index
    %236 = vector.load %arg22[%c8_214, %c0_215] : memref<32x32xf32, #tpu.memory_space<vmem>>, vector<16x32xf32>
    tpu.vector_store %arg22[%c8_214, %c0_215], %235 {strides = array<i32>} : memref<32x32xf32, #tpu.memory_space<vmem>>, vector<16x32xf32>,
    %c6_216 = arith.constant 6 : index
    %c0_217 = arith.constant 0 : index
    %237 = vector.load %arg22[%c6_216, %c0_217] : memref<32x32xf32, #tpu.memory_space<vmem>>, vector<16x32xf32>
    %c15 = arith.constant 15 : index
    %c0_218 = arith.constant 0 : index
    %c0_219 = arith.constant 0 : index
    %238 = vector.load %arg5[%c15, %c0_218, %c0_219] : memref<20x32x32xf32, #tpu.memory_space<vmem>>, vector<1x32x32xf32>
    %239 = vector.shape_cast %238 : vector<1x32x32xf32> to vector<32x32xf32>
    %cst_220 = arith.constant dense<0.000000e+00> : vector<16x32xf32>
    %240 = tpu.matmul %237, %239, %cst_220 {dimension_numbers = #tpu.dot_dimension_numbers<[1], [0], [0], [1], [0, 0, 1, 1], [], []>} : vector<16x32xf32>, vector<32x32xf32>, vector<16x32xf32> -> vector<16x32xf32>
    %c15_221 = arith.constant 15 : index
    %c0_222 = arith.constant 0 : index
    %c0_223 = arith.constant 0 : index
    %241 = vector.load %arg7[%c15_221, %c0_222, %c0_223] : memref<20x32x32xf32, #tpu.memory_space<vmem>>, vector<1x32x32xf32>
    %242 = vector.shape_cast %241 : vector<1x32x32xf32> to vector<32x32xf32>
    %cst_224 = arith.constant dense<0.000000e+00> : vector<16x32xf32>
    %243 = tpu.matmul %237, %242, %cst_224 {dimension_numbers = #tpu.dot_dimension_numbers<[1], [0], [0], [1], [0, 0, 1, 1], [], []>} : vector<16x32xf32>, vector<32x32xf32>, vector<16x32xf32> -> vector<16x32xf32>
    %c7_225 = arith.constant 7 : index
    %c0_226 = arith.constant 0 : index
    %244 = vector.load %arg22[%c7_225, %c0_226] : memref<32x32xf32, #tpu.memory_space<vmem>>, vector<16x32xf32>
    %c16 = arith.constant 16 : index
    %c0_227 = arith.constant 0 : index
    %c0_228 = arith.constant 0 : index
    %245 = vector.load %arg5[%c16, %c0_227, %c0_228] : memref<20x32x32xf32, #tpu.memory_space<vmem>>, vector<1x32x32xf32>
    %246 = vector.shape_cast %245 : vector<1x32x32xf32> to vector<32x32xf32>
    %cst_229 = arith.constant dense<0.000000e+00> : vector<16x32xf32>
    %247 = tpu.matmul %244, %246, %cst_229 {dimension_numbers = #tpu.dot_dimension_numbers<[1], [0], [0], [1], [0, 0, 1, 1], [], []>} : vector<16x32xf32>, vector<32x32xf32>, vector<16x32xf32> -> vector<16x32xf32>
    %c16_230 = arith.constant 16 : index
    %c0_231 = arith.constant 0 : index
    %c0_232 = arith.constant 0 : index
    %248 = vector.load %arg7[%c16_230, %c0_231, %c0_232] : memref<20x32x32xf32, #tpu.memory_space<vmem>>, vector<1x32x32xf32>
    %249 = vector.shape_cast %248 : vector<1x32x32xf32> to vector<32x32xf32>
    %cst_233 = arith.constant dense<0.000000e+00> : vector<16x32xf32>
    %250 = tpu.matmul %244, %249, %cst_233 {dimension_numbers = #tpu.dot_dimension_numbers<[1], [0], [0], [1], [0, 0, 1, 1], [], []>} : vector<16x32xf32>, vector<32x32xf32>, vector<16x32xf32> -> vector<16x32xf32>
    %251 = arith.addf %240, %247 : vector<16x32xf32>
    %252 = arith.addf %243, %250 : vector<16x32xf32>
    %c8_234 = arith.constant 8 : index
    %c0_235 = arith.constant 0 : index
    %253 = vector.load %arg22[%c8_234, %c0_235] : memref<32x32xf32, #tpu.memory_space<vmem>>, vector<16x32xf32>
    %c17 = arith.constant 17 : index
    %c0_236 = arith.constant 0 : index
    %c0_237 = arith.constant 0 : index
    %254 = vector.load %arg5[%c17, %c0_236, %c0_237] : memref<20x32x32xf32, #tpu.memory_space<vmem>>, vector<1x32x32xf32>
    %255 = vector.shape_cast %254 : vector<1x32x32xf32> to vector<32x32xf32>
    %cst_238 = arith.constant dense<0.000000e+00> : vector<16x32xf32>
    %256 = tpu.matmul %253, %255, %cst_238 {dimension_numbers = #tpu.dot_dimension_numbers<[1], [0], [0], [1], [0, 0, 1, 1], [], []>} : vector<16x32xf32>, vector<32x32xf32>, vector<16x32xf32> -> vector<16x32xf32>
    %c17_239 = arith.constant 17 : index
    %c0_240 = arith.constant 0 : index
    %c0_241 = arith.constant 0 : index
    %257 = vector.load %arg7[%c17_239, %c0_240, %c0_241] : memref<20x32x32xf32, #tpu.memory_space<vmem>>, vector<1x32x32xf32>
    %258 = vector.shape_cast %257 : vector<1x32x32xf32> to vector<32x32xf32>
    %cst_242 = arith.constant dense<0.000000e+00> : vector<16x32xf32>
    %259 = tpu.matmul %253, %258, %cst_242 {dimension_numbers = #tpu.dot_dimension_numbers<[1], [0], [0], [1], [0, 0, 1, 1], [], []>} : vector<16x32xf32>, vector<32x32xf32>, vector<16x32xf32> -> vector<16x32xf32>
    %260 = arith.addf %251, %256 : vector<16x32xf32>
    %261 = arith.addf %252, %259 : vector<16x32xf32>
    %c9_243 = arith.constant 9 : index
    %c0_244 = arith.constant 0 : index
    %262 = vector.load %arg22[%c9_243, %c0_244] : memref<32x32xf32, #tpu.memory_space<vmem>>, vector<16x32xf32>
    %c18 = arith.constant 18 : index
    %c0_245 = arith.constant 0 : index
    %c0_246 = arith.constant 0 : index
    %263 = vector.load %arg5[%c18, %c0_245, %c0_246] : memref<20x32x32xf32, #tpu.memory_space<vmem>>, vector<1x32x32xf32>
    %264 = vector.shape_cast %263 : vector<1x32x32xf32> to vector<32x32xf32>
    %cst_247 = arith.constant dense<0.000000e+00> : vector<16x32xf32>
    %265 = tpu.matmul %262, %264, %cst_247 {dimension_numbers = #tpu.dot_dimension_numbers<[1], [0], [0], [1], [0, 0, 1, 1], [], []>} : vector<16x32xf32>, vector<32x32xf32>, vector<16x32xf32> -> vector<16x32xf32>
    %c18_248 = arith.constant 18 : index
    %c0_249 = arith.constant 0 : index
    %c0_250 = arith.constant 0 : index
    %266 = vector.load %arg7[%c18_248, %c0_249, %c0_250] : memref<20x32x32xf32, #tpu.memory_space<vmem>>, vector<1x32x32xf32>
    %267 = vector.shape_cast %266 : vector<1x32x32xf32> to vector<32x32xf32>
    %cst_251 = arith.constant dense<0.000000e+00> : vector<16x32xf32>
    %268 = tpu.matmul %262, %267, %cst_251 {dimension_numbers = #tpu.dot_dimension_numbers<[1], [0], [0], [1], [0, 0, 1, 1], [], []>} : vector<16x32xf32>, vector<32x32xf32>, vector<16x32xf32> -> vector<16x32xf32>
    %269 = arith.addf %260, %265 : vector<16x32xf32>
    %270 = arith.addf %261, %268 : vector<16x32xf32>
    %c10_252 = arith.constant 10 : index
    %c0_253 = arith.constant 0 : index
    %271 = vector.load %arg22[%c10_252, %c0_253] : memref<32x32xf32, #tpu.memory_space<vmem>>, vector<16x32xf32>
    %c19 = arith.constant 19 : index
    %c0_254 = arith.constant 0 : index
    %c0_255 = arith.constant 0 : index
    %272 = vector.load %arg5[%c19, %c0_254, %c0_255] : memref<20x32x32xf32, #tpu.memory_space<vmem>>, vector<1x32x32xf32>
    %273 = vector.shape_cast %272 : vector<1x32x32xf32> to vector<32x32xf32>
    %cst_256 = arith.constant dense<0.000000e+00> : vector<16x32xf32>
    %274 = tpu.matmul %271, %273, %cst_256 {dimension_numbers = #tpu.dot_dimension_numbers<[1], [0], [0], [1], [0, 0, 1, 1], [], []>} : vector<16x32xf32>, vector<32x32xf32>, vector<16x32xf32> -> vector<16x32xf32>
    %c19_257 = arith.constant 19 : index
    %c0_258 = arith.constant 0 : index
    %c0_259 = arith.constant 0 : index
    %275 = vector.load %arg7[%c19_257, %c0_258, %c0_259] : memref<20x32x32xf32, #tpu.memory_space<vmem>>, vector<1x32x32xf32>
    %276 = vector.shape_cast %275 : vector<1x32x32xf32> to vector<32x32xf32>
    %cst_260 = arith.constant dense<0.000000e+00> : vector<16x32xf32>
    %277 = tpu.matmul %271, %276, %cst_260 {dimension_numbers = #tpu.dot_dimension_numbers<[1], [0], [0], [1], [0, 0, 1, 1], [], []>} : vector<16x32xf32>, vector<32x32xf32>, vector<16x32xf32> -> vector<16x32xf32>
    %278 = arith.addf %269, %274 : vector<16x32xf32>
    %279 = arith.addf %270, %277 : vector<16x32xf32>
    %c3_261 = arith.constant 3 : index
    %c0_262 = arith.constant 0 : index
    %c0_263 = arith.constant 0 : index
    %280 = vector.load %arg6[%c3_261, %c0_262, %c0_263] : memref<4x1x32xf32, #tpu.memory_space<vmem>>, vector<1x1x32xf32>
    %281 = vector.shape_cast %280 : vector<1x1x32xf32> to vector<1x32xf32>
    %282 = vector.broadcast %281 : vector<1x32xf32> to vector<16x32xf32>
    %283 = arith.addf %278, %282 : vector<16x32xf32>
    %c3_264 = arith.constant 3 : index
    %c0_265 = arith.constant 0 : index
    %c0_266 = arith.constant 0 : index
    %284 = vector.load %arg8[%c3_264, %c0_265, %c0_266] : memref<4x1x32xf32, #tpu.memory_space<vmem>>, vector<1x1x32xf32>
    %285 = vector.shape_cast %284 : vector<1x1x32xf32> to vector<1x32xf32>
    %286 = vector.broadcast %285 : vector<1x32xf32> to vector<16x32xf32>
    %287 = arith.addf %279, %286 : vector<16x32xf32>
    %288 = math.tanh %283 : vector<16x32xf32>
    %cst_267 = arith.constant 5.000000e-01 : f32
    %289 = vector.broadcast %cst_267 : f32 to vector<16x32xf32>
    %290 = arith.mulf %289, %287 : vector<16x32xf32>
    %291 = math.tanh %290 : vector<16x32xf32>
    %cst_268 = arith.constant 1.000000e+00 : f32
    %292 = vector.broadcast %cst_268 : f32 to vector<16x32xf32>
    %293 = arith.addf %291, %292 : vector<16x32xf32>
    %cst_269 = arith.constant 5.000000e-01 : f32
    %294 = vector.broadcast %cst_269 : f32 to vector<16x32xf32>
    %295 = arith.mulf %294, %293 : vector<16x32xf32>
    %296 = arith.mulf %288, %295 : vector<16x32xf32>
    %c3_270 = arith.constant 3 : index
    %c0_271 = arith.constant 0 : index
    %c0_272 = arith.constant 0 : index
    %297 = vector.load %arg9[%c3_270, %c0_271, %c0_272] : memref<4x32x32xf32, #tpu.memory_space<vmem>>, vector<1x32x32xf32>
    %298 = vector.shape_cast %297 : vector<1x32x32xf32> to vector<32x32xf32>
    %cst_273 = arith.constant dense<0.000000e+00> : vector<16x32xf32>
    %299 = tpu.matmul %296, %298, %cst_273 {dimension_numbers = #tpu.dot_dimension_numbers<[1], [0], [0], [1], [0, 0, 1, 1], [], []>} : vector<16x32xf32>, vector<32x32xf32>, vector<16x32xf32> -> vector<16x32xf32>
    %c3_274 = arith.constant 3 : index
    %c0_275 = arith.constant 0 : index
    %c0_276 = arith.constant 0 : index
    %300 = vector.load %arg10[%c3_274, %c0_275, %c0_276] : memref<4x1x32xf32, #tpu.memory_space<vmem>>, vector<1x1x32xf32>
    %301 = vector.shape_cast %300 : vector<1x1x32xf32> to vector<1x32xf32>
    %302 = vector.broadcast %301 : vector<1x32xf32> to vector<16x32xf32>
    %303 = arith.addf %299, %302 : vector<16x32xf32>
    %304 = arith.addf %233, %303 : vector<16x32xf32>
    %305 = arith.mulf %304, %3 : vector<16x32xf32>
    %c0_277 = arith.constant 0 : index
    %c0_278 = arith.constant 0 : index
    %306 = vector.load %arg13[%c0_277, %c0_278] : memref<32x32xf32, #tpu.memory_space<vmem>>, vector<32x32xf32>
    %cst_279 = arith.constant dense<0.000000e+00> : vector<16x32xf32>
    %307 = tpu.matmul %305, %306, %cst_279 {dimension_numbers = #tpu.dot_dimension_numbers<[1], [0], [0], [1], [0, 0, 1, 1], [], []>} : vector<16x32xf32>, vector<32x32xf32>, vector<16x32xf32> -> vector<16x32xf32>
    %c0_280 = arith.constant 0 : index
    %c0_281 = arith.constant 0 : index
    %308 = vector.load %arg14[%c0_280, %c0_281] : memref<1x32xf32, #tpu.memory_space<vmem>>, vector<1x32xf32>
    %309 = vector.broadcast %308 : vector<1x32xf32> to vector<16x32xf32>
    %310 = arith.addf %307, %309 : vector<16x32xf32>
    %cst_282 = arith.constant 0.000000e+00 : f32
    %311 = vector.broadcast %cst_282 : f32 to vector<16x32xf32>
    %312 = arith.maximumf %310, %311 : vector<16x32xf32>
    %c0_283 = arith.constant 0 : index
    %c0_284 = arith.constant 0 : index
    %313 = vector.load %arg15[%c0_283, %c0_284] : memref<32x32xf32, #tpu.memory_space<vmem>>, vector<32x32xf32>
    %cst_285 = arith.constant dense<0.000000e+00> : vector<16x32xf32>
    %314 = tpu.matmul %312, %313, %cst_285 {dimension_numbers = #tpu.dot_dimension_numbers<[1], [0], [0], [1], [0, 0, 1, 1], [], []>} : vector<16x32xf32>, vector<32x32xf32>, vector<16x32xf32> -> vector<16x32xf32>
    %c0_286 = arith.constant 0 : index
    %c0_287 = arith.constant 0 : index
    %315 = vector.load %arg16[%c0_286, %c0_287] : memref<1x32xf32, #tpu.memory_space<vmem>>, vector<1x32xf32>
    %316 = vector.broadcast %315 : vector<1x32xf32> to vector<16x32xf32>
    %317 = arith.addf %314, %316 : vector<16x32xf32>
    %cst_288 = arith.constant 0.000000e+00 : f32
    %318 = vector.broadcast %cst_288 : f32 to vector<16x32xf32>
    %319 = arith.maximumf %317, %318 : vector<16x32xf32>
    %c0_289 = arith.constant 0 : index
    %c0_290 = arith.constant 0 : index
    %320 = vector.load %arg17[%c0_289, %c0_290] : memref<32x32xf32, #tpu.memory_space<vmem>>, vector<32x32xf32>
    %cst_291 = arith.constant dense<0.000000e+00> : vector<16x32xf32>
    %321 = tpu.matmul %319, %320, %cst_291 {dimension_numbers = #tpu.dot_dimension_numbers<[1], [0], [0], [1], [0, 0, 1, 1], [], []>} : vector<16x32xf32>, vector<32x32xf32>, vector<16x32xf32> -> vector<16x32xf32>
    %c0_292 = arith.constant 0 : index
    %c0_293 = arith.constant 0 : index
    %322 = vector.load %arg18[%c0_292, %c0_293] : memref<1x32xf32, #tpu.memory_space<vmem>>, vector<1x32xf32>
    %323 = vector.broadcast %322 : vector<1x32xf32> to vector<16x32xf32>
    %324 = arith.addf %321, %323 : vector<16x32xf32>
    %cst_294 = arith.constant 0.000000e+00 : f32
    %325 = vector.broadcast %cst_294 : f32 to vector<16x32xf32>
    %326 = arith.maximumf %324, %325 : vector<16x32xf32>
    %c0_295 = arith.constant 0 : index
    %c0_296 = arith.constant 0 : index
    %327 = vector.load %arg19[%c0_295, %c0_296] : memref<32x128xf32, #tpu.memory_space<vmem>>, vector<32x128xf32>
    %cst_297 = arith.constant dense<0.000000e+00> : vector<16x128xf32>
    %328 = tpu.matmul %326, %327, %cst_297 {dimension_numbers = #tpu.dot_dimension_numbers<[1], [0], [0], [1], [0, 0, 1, 1], [], []>} : vector<16x32xf32>, vector<32x128xf32>, vector<16x128xf32> -> vector<16x128xf32>
    %c0_298 = arith.constant 0 : index
    %c0_299 = arith.constant 0 : index
    %329 = vector.load %arg20[%c0_298, %c0_299] : memref<1x128xf32, #tpu.memory_space<vmem>>, vector<1x128xf32>
    %330 = vector.broadcast %329 : vector<1x128xf32> to vector<16x128xf32>
    %331 = arith.addf %328, %330 : vector<16x128xf32>
    %332 = vector.broadcast %1 : vector<16x1xf32> to vector<16x128xf32>
    %333 = arith.mulf %331, %332 : vector<16x128xf32>
    %c0_300 = arith.constant 0 : index
    %c0_301 = arith.constant 0 : index
    %334 = vector.load %arg21[%c0_300, %c0_301] : memref<16x128xf32, #tpu.memory_space<vmem>>, vector<16x128xf32>
    tpu.vector_store %arg21[%c0_300, %c0_301], %333 {strides = array<i32>} : memref<16x128xf32, #tpu.memory_space<vmem>>, vector<16x128xf32>,
    return
  }
  func.func @transform_0(%arg0: i32) -> (i32, i32) {
    %c0_i32 = arith.constant 0 : i32
    %c0_i32_0 = arith.constant 0 : i32
    return %arg0, %c0_i32 : i32, i32
  }
  func.func @transform_1(%arg0: i32) -> (i32, i32) {
    %c0_i32 = arith.constant 0 : i32
    %c0_i32_0 = arith.constant 0 : i32
    return %arg0, %c0_i32 : i32, i32
  }
  func.func @transform_2(%arg0: i32) -> (i32, i32) {
    %c0_i32 = arith.constant 0 : i32
    %c0_i32_0 = arith.constant 0 : i32
    %c0_i32_1 = arith.constant 0 : i32
    return %c0_i32, %c0_i32_0 : i32, i32
  }
  func.func @transform_3(%arg0: i32) -> (i32, i32) {
    %c0_i32 = arith.constant 0 : i32
    %c0_i32_0 = arith.constant 0 : i32
    %c0_i32_1 = arith.constant 0 : i32
    return %c0_i32, %c0_i32_0 : i32, i32
  }
  func.func @transform_4(%arg0: i32) -> (i32, i32, i32) {
    %c0_i32 = arith.constant 0 : i32
    %c0_i32_0 = arith.constant 0 : i32
    %c0_i32_1 = arith.constant 0 : i32
    %c0_i32_2 = arith.constant 0 : i32
    return %c0_i32, %c0_i32_0, %c0_i32_1 : i32, i32, i32
  }
  func.func @transform_5(%arg0: i32) -> (i32, i32, i32) {
    %c0_i32 = arith.constant 0 : i32
    %c0_i32_0 = arith.constant 0 : i32
    %c0_i32_1 = arith.constant 0 : i32
    %c0_i32_2 = arith.constant 0 : i32
    return %c0_i32, %c0_i32_0, %c0_i32_1 : i32, i32, i32
  }
  func.func @transform_6(%arg0: i32) -> (i32, i32, i32) {
    %c0_i32 = arith.constant 0 : i32
    %c0_i32_0 = arith.constant 0 : i32
    %c0_i32_1 = arith.constant 0 : i32
    %c0_i32_2 = arith.constant 0 : i32
    return %c0_i32, %c0_i32_0, %c0_i32_1 : i32, i32, i32
  }
  func.func @transform_7(%arg0: i32) -> (i32, i32, i32) {
    %c0_i32 = arith.constant 0 : i32
    %c0_i32_0 = arith.constant 0 : i32
    %c0_i32_1 = arith.constant 0 : i32
    %c0_i32_2 = arith.constant 0 : i32
    return %c0_i32, %c0_i32_0, %c0_i32_1 : i32, i32, i32
  }
  func.func @transform_8(%arg0: i32) -> (i32, i32, i32) {
    %c0_i32 = arith.constant 0 : i32
    %c0_i32_0 = arith.constant 0 : i32
    %c0_i32_1 = arith.constant 0 : i32
    %c0_i32_2 = arith.constant 0 : i32
    return %c0_i32, %c0_i32_0, %c0_i32_1 : i32, i32, i32
  }
  func.func @transform_9(%arg0: i32) -> (i32, i32, i32) {
    %c0_i32 = arith.constant 0 : i32
    %c0_i32_0 = arith.constant 0 : i32
    %c0_i32_1 = arith.constant 0 : i32
    %c0_i32_2 = arith.constant 0 : i32
    return %c0_i32, %c0_i32_0, %c0_i32_1 : i32, i32, i32
  }
  func.func @transform_10(%arg0: i32) -> (i32, i32, i32) {
    %c0_i32 = arith.constant 0 : i32
    %c0_i32_0 = arith.constant 0 : i32
    %c0_i32_1 = arith.constant 0 : i32
    %c0_i32_2 = arith.constant 0 : i32
    return %c0_i32, %c0_i32_0, %c0_i32_1 : i32, i32, i32
  }
  func.func @transform_11(%arg0: i32) -> (i32, i32, i32) {
    %c0_i32 = arith.constant 0 : i32
    %c0_i32_0 = arith.constant 0 : i32
    %c0_i32_1 = arith.constant 0 : i32
    %c0_i32_2 = arith.constant 0 : i32
    return %c0_i32, %c0_i32_0, %c0_i32_1 : i32, i32, i32
  }
  func.func @transform_12(%arg0: i32) -> (i32, i32) {
    %c0_i32 = arith.constant 0 : i32
    %c0_i32_0 = arith.constant 0 : i32
    %c0_i32_1 = arith.constant 0 : i32
    return %c0_i32, %c0_i32_0 : i32, i32
  }
  func.func @transform_13(%arg0: i32) -> (i32, i32) {
    %c0_i32 = arith.constant 0 : i32
    %c0_i32_0 = arith.constant 0 : i32
    %c0_i32_1 = arith.constant 0 : i32
    return %c0_i32, %c0_i32_0 : i32, i32
  }
  func.func @transform_14(%arg0: i32) -> (i32, i32) {
    %c0_i32 = arith.constant 0 : i32
    %c0_i32_0 = arith.constant 0 : i32
    %c0_i32_1 = arith.constant 0 : i32
    return %c0_i32, %c0_i32_0 : i32, i32
  }
  func.func @transform_15(%arg0: i32) -> (i32, i32) {
    %c0_i32 = arith.constant 0 : i32
    %c0_i32_0 = arith.constant 0 : i32
    %c0_i32_1 = arith.constant 0 : i32
    return %c0_i32, %c0_i32_0 : i32, i32
  }
  func.func @transform_16(%arg0: i32) -> (i32, i32) {
    %c0_i32 = arith.constant 0 : i32
    %c0_i32_0 = arith.constant 0 : i32
    %c0_i32_1 = arith.constant 0 : i32
    return %c0_i32, %c0_i32_0 : i32, i32
  }
  func.func @transform_17(%arg0: i32) -> (i32, i32) {
    %c0_i32 = arith.constant 0 : i32
    %c0_i32_0 = arith.constant 0 : i32
    %c0_i32_1 = arith.constant 0 : i32
    return %c0_i32, %c0_i32_0 : i32, i32
  }
  func.func @transform_18(%arg0: i32) -> (i32, i32) {
    %c0_i32 = arith.constant 0 : i32
    %c0_i32_0 = arith.constant 0 : i32
    %c0_i32_1 = arith.constant 0 : i32
    return %c0_i32, %c0_i32_0 : i32, i32
  }
  func.func @transform_19(%arg0: i32) -> (i32, i32) {
    %c0_i32 = arith.constant 0 : i32
    %c0_i32_0 = arith.constant 0 : i32
    %c0_i32_1 = arith.constant 0 : i32
    return %c0_i32, %c0_i32_0 : i32, i32
  }
  func.func @transform_20(%arg0: i32) -> (i32, i32) {
    %c0_i32 = arith.constant 0 : i32
    %c0_i32_0 = arith.constant 0 : i32
    return %arg0, %c0_i32 : i32, i32
  }
}

</mosaic_0001>

<bundles_post_ra>
// kernel: tpu_custom_call.1
= control target key start
LH: loop header
LB: loop body
LE: loop exit
PB: predicated region body
PF: predicated region fallthrough
CT: control target
= control target key end

     0   :  { %s7908_s0 = inlined_call_operand.vmem [shape: f32[32,4], index: 0, kind: input, shape index: {}]   ;;  %s7909_s1 = inlined_call_operand.vmem [shape: f32[32,1], index: 1, kind: input, shape index: {}]   ;;  %s7910_s2 = inlined_call_operand.hbm [shape: f32[4,32], index: 2, kind: input, shape index: {}]   ;;  %s7911_s3 = inlined_call_operand.hbm [shape: f32[1,32], index: 3, kind: input, shape index: {}]   ;;  %s7912_s4 = inlined_call_operand.hbm [shape: f32[20,32,32], index: 4, kind: input, shape index: {}]   ;;  %s7913_s5 = inlined_call_operand.hbm [shape: f32[4,1,32], index: 5, kind: input, shape index: {}]   ;;  %s7914_s6 = inlined_call_operand.hbm [shape: f32[20,32,32], index: 6, kind: input, shape index: {}]   ;;  %s7915_s7 = inlined_call_operand.hbm [shape: f32[4,1,32], index: 7, kind: input, shape index: {}]   ;;  %s7916_s8 = inlined_call_operand.hbm [shape: f32[4,32,32], index: 8, kind: input, shape index: {}]   ;;  %s7917_s9 = inlined_call_operand.hbm [shape: f32[4,1,32], index: 9, kind: input, shape index: {}]   ;;  %s7918_s10 = inlined_call_operand.hbm [shape: f32[4,32,32], index: 10, kind: input, shape index: {}]   ;;  %s7919_s11 = inlined_call_operand.hbm [shape: f32[4,1,32], index: 11, kind: input, shape index: {}]   ;;  %s7920_s12 = inlined_call_operand.vmem [shape: f32[32,32], index: 12, kind: input, shape index: {}]   ;;  %s7921_s13 = inlined_call_operand.hbm [shape: f32[1,32], index: 13, kind: input, shape index: {}]   ;;  %s7922_s14 = inlined_call_operand.vmem [shape: f32[32,32], index: 14, kind: input, shape index: {}]   ;;  %s7923_s15 = inlined_call_operand.hbm [shape: f32[1,32], index: 15, kind: input, shape index: {}]   ;;  %s7924_s16 = inlined_call_operand.vmem [shape: f32[32,32], index: 16, kind: input, shape index: {}]   ;;  %s7925_s17 = inlined_call_operand.vmem [shape: f32[1,32], index: 17, kind: input, shape index: {}]   ;;  %s7926_s18 = inlined_call_operand.hbm [shape: f32[32,128], index: 18, kind: input, shape index: {}]   ;;  %s7927_s19 = inlined_call_operand.vmem [shape: f32[1,128], index: 19, kind: input, shape index: {}]   ;;  %s7928_s20 = inlined_call_operand.hbm [shape: f32[32,128], index: 20, kind: output, shape index: {}]  }
   0x1   :  { %7939 = sst [smem:[#allocation39_spill]] %s7908_s0 }
   0x2   :  { %7940 = sst [smem:[#allocation40_spill]] %s7909_s1 }
   0x3   :  { %7941 = sst [smem:[#allocation41_spill]] %s7910_s2 }
   0x4   :  { %7942 = sst [smem:[#allocation42_spill]] %s7911_s3 }
   0x5   :  { %7943 = sst [smem:[#allocation43_spill]] %s7912_s4 }
   0x6   :  { %7944 = sst [smem:[#allocation44_spill]] %s7913_s5 }
   0x7   :  { %7945 = sst [smem:[#allocation45_spill]] %s7928_s20 }
   0x8   :  { %25 = vsyncpa [#allocation4], 0 }
   0x9   :  { %26 = vsyncpa [#allocation7], 0 }
   0xa   :  { %27 = vsyncpa [#allocation10], 0 }
   0xb   :  { %28 = vsyncpa [#allocation13], 0 }
   0xc   :  { %29 = vsyncpa [#allocation16], 0 }
   0xd   :  { %30 = vsyncpa [#allocation19], 0 }
   0xe   :  { %31 = vsyncpa [#allocation22], 0 }
   0xf   :  { %32 = vsyncpa [#allocation5], 0 }
  0x10   :  { %34 = vsyncpa [#allocation5 + $0x1], 0  ;;  %s7432_s1 = smov 0   ;;  %s7434_s22 = smov 0  }
  0x11   :  { %s7436_s23 = smov 0   ;;  %s7438_s24 = smov 0  }
  0x12 LB: > { %7946 = sst [smem:[#allocation33_spill]] %s7291_s1  ;;  %s7453_s2 = sadd.s32 4294967295, %s7303_s24   ;;  %s7303_s24 = sphi %s7438_s24, %s7985_s24   ;;  %s7299_s23 = sphi %s7436_s23, %s7987_s23   ;;  %s7295_s22 = sphi %s7434_s22, %s7989_s22   ;;  %s7291_s1 = sphi %s7432_s1, %s7988_s1  }
  0x13   : > { %7947 = sst [smem:[#allocation34_spill]] %s7299_s23  ;;  %s5645_s25 = sadd.s32 4294967294, %s7303_s24  }
  0x14   : > { %7948 = sst [smem:[#allocation35_spill]] %s7303_s24  ;;  %s7457_s3 = sadd.s32 1, %s7303_s24  }
  0x15   : > { %7949 = sst [smem:[#allocation36_spill]] %s7457_s3  ;;  %s477_s26 = sadd.s32 1, %s7299_s23 }
  0x16   : > { %s474_s27 = ssub.s32 %s7303_s24, %s7457_s3  ;;  %p487_p0 = scmp.ne.s32.totalorder %s7299_s23, %s7295_s22 }
  0x17   : > { %p475_p1 = scmp.eq.s32.totalorder %s474_s27, 0  ;;  %p488_p2 = scmp.eq.s32.totalorder %s7453_s2, 1 }
  0x18   : > { %p493_p3 = scmp.ne.s32.totalorder %s7295_s22, %s7291_s1  ;;  %p494_p4 = scmp.eq.s32.totalorder %s5645_s25, 1 }
  0x19   : > { %s7468_s28 = scalar_select %p475_p1, %s7299_s23, %s477_s26  }
  0x1a   : > { %p7470_p5 = por %p488_p2, %p487_p0  ;;  %p7474_p6 = por %p494_p4, %p493_p3 }
  0x1b   : > { %7950 = sst [smem:[#allocation37_spill]] %s7468_s28  ;;  %p5646_p7 = scmp.ge.s32.totalorder %s7303_s24, 1 }
  0x1c   : > { %s7951_s4 = scalar_select %p7470_p5, 1, 0 }
  0x1d   : > { %s7952_s29 = scalar_select %p7474_p6, 1, 0 }
  0x1e   : > { %p501_p8 = scmp.lt.s32.totalorder %s7303_s24, 3  ;;  %p7935_p9 = scmp.eq.s32.totalorder %s7453_s2, 0 }
  0x1f   : > { %7953 = sst [smem:[#allocation38_spill]] %s7952_s29  ;;  %s7305_s0 = smov [#allocation6]  }
  0x20   : > { %p7481_p10 = pnand %p5646_p7, %p501_p8  ;;  %s525_s21 = sshll.u32 %s7305_s0, 4  ;;  %s526_s21 = int_to_ptr.vmem [resolvable:$true] %s525_s21 }
  0x21   : > { %s7306_s25 = smov [#allocation9]   ;;  %s7307_s28 = smov [#allocation12]  }
  0x22   : > { %s7954_s30 = scalar_select %p7481_p10, 1, 0 }
  0x23   : > { %p6720_p11 = pneg %p7481_p10  ;;  %s548_s26 = sshll.u32 %s7306_s25, 4  ;;  %s7493_s26 = int_to_ptr.vmem [resolvable:$true] %s548_s26 }
  0x24   : > { %s574_s23 = sshll.u32 %s7307_s28, 4  ;;  %s6888_s0 = scalar_lea.vmem %s526_s21, 16  ;;  %s575_s23 = int_to_ptr.vmem [resolvable:$true] %s574_s23 }
  0x25   : > { %p7489_p12 = pnand %p7935_p9, %p6720_p11  ;;  %p6889_p0 = scmp.ne.s32.totalorder %s526_s21, %s6888_s0 }
  0x26   : > { %s6895_s25 = scalar_lea.vmem %s526_s21, 32  ;;  %p6896_p3 = scmp.lt.s32.totalorder %s526_s21, %s526_s21 }
  0x27   : > { %p7497_p13 = pneg %p7489_p12  ;;  %p6897_p4 = scmp.lt.s32.totalorder %s6895_s25, %s6888_s0 }
  0x29   : > { %p6891_p1 = pnand %p6889_p0, %p7497_p13  ;;  %p6898_p7 = por %p6897_p4, %p6896_p3 }
  0x2b   : > { %p6892_p2 = pneg %p6891_p1 }
  0x2d   : > { %p6899_p8 = pnand %p6898_p7, %p6892_p2 }
  0x2f   : > { %6902 = shalt.err (!%p6899_p8)
}
  0x30   : > { %s7957_s1 = sld [smem:[#allocation42_spill]]  ;;  %s6914_s24 = scalar_lea.vmem %s7493_s26, 64 }
  0x31   : > { %p6915_p11 = scmp.ne.s32.totalorder %s7493_s26, %s6914_s24  ;;  %p6922_p9 = scmp.lt.s32.totalorder %s7493_s26, %s7493_s26 }
  0x32   : > { %p6923_p3 = scmp.lt.s32.totalorder %s6914_s24, %s6914_s24 }
  0x33   : > { %p6917_p0 = pnand %p6915_p11, %p7497_p13 }
  0x34   : > { %p6924_p2 = por %p6923_p3, %p6922_p9 }
  0x35   : > { %p6918_p1 = pneg %p6917_p0 }
  0x36   : > { %6726 = dma.hbm_to_vmem [thread:$0]  (!%p7489_p12), %s7957_s1, 16, %s526_s21, [#allocation7]  }
  0x37   : > { %p6925_p4 = pnand %p6924_p2, %p6918_p1 }
  0x39   : > { %6928 = shalt.err (!%p6925_p4)
}
  0x3a   : > { %s7308_s0 = smov 16   ;;  %s7309_s29 = smov 1  }
  0x3b   : > { %s7958_s5 = sld [smem:[#allocation44_spill]]  ;;  %s6940_s25 = scalar_lea.vmem %s575_s23, 64 }
  0x3c   : > { %p6941_p7 = scmp.ne.s32.totalorder %s575_s23, %s6940_s25  ;;  %p6948_p11 = scmp.lt.s32.totalorder %s575_s23, %s575_s23 }
  0x3d   : > { %p6949_p0 = scmp.lt.s32.totalorder %s6940_s25, %s6940_s25 }
  0x3e   : > { %p6943_p9 = pnand %p6941_p7, %p7497_p13 }
  0x3f   : > { %p6950_p1 = por %p6949_p0, %p6948_p11 }
  0x40   : > { %p6944_p8 = pneg %p6943_p9 }
  0x41   : > { %6732 = dma.hbm_to_vmem [thread:$0]  (!%p7489_p12), %s7958_s5, 64, %s7493_s26, [#allocation10], %s7308_s0, %s7308_s0, %s7309_s29  }
  0x42   : > { %p6951_p3 = pnand %p6950_p1, %p6944_p8 }
  0x44   : > { %6954 = shalt.err (!%p6951_p3)
}
  0x45   : > { %6738 = dma.hbm_to_vmem [thread:$0]  (!%p7489_p12), %s7915_s7, 64, %s575_s23, [#allocation13], %s7308_s0, %s7308_s0, %s7309_s29  }
  0x46   : > { %s7310_s26 = smov [#allocation15]   ;;  %s7311_s21 = smov [#allocation18]  }
  0x47   : > { %s600_s1 = sshll.u32 %s7310_s26, 4  ;;  %s626_s5 = sshll.u32 %s7311_s21, 4  ;;  %s601_s1 = int_to_ptr.vmem [resolvable:$true] %s600_s1  ;;  %s627_s5 = int_to_ptr.vmem [resolvable:$true] %s626_s5 }
  0x48   : > { %s6966_s20 = scalar_lea.vmem %s601_s1, 64  ;;  %p6974_p9 = scmp.lt.s32.totalorder %s601_s1, %s601_s1 }
  0x49   : > { %p6967_p2 = scmp.ne.s32.totalorder %s601_s1, %s6966_s20  ;;  %p6975_p8 = scmp.lt.s32.totalorder %s6966_s20, %s6966_s20 }
  0x4b   : > { %p6969_p4 = pnand %p6967_p2, %p7497_p13  ;;  %p6976_p11 = por %p6975_p8, %p6974_p9 }
  0x4d   : > { %p6970_p7 = pneg %p6969_p4 }
  0x4f   : > { %p6977_p0 = pnand %p6976_p11, %p6970_p7 }
  0x51   : > { %6980 = shalt.err (!%p6977_p0)
}
  0x52   : > { %6744 = dma.hbm_to_vmem [thread:$0]  (!%p7489_p12), %s7917_s9, 64, %s601_s1, [#allocation16], %s7308_s0, %s7308_s0, %s7309_s29  }
  0x53   : > { %s6992_s24 = scalar_lea.vmem %s627_s5, 64  ;;  %p7000_p4 = scmp.lt.s32.totalorder %s627_s5, %s627_s5 }
  0x54   : > { %p6993_p1 = scmp.ne.s32.totalorder %s627_s5, %s6992_s24  ;;  %p7001_p9 = scmp.lt.s32.totalorder %s6992_s24, %s6992_s24 }
  0x56   : > { %p6995_p3 = pnand %p6993_p1, %p7497_p13  ;;  %p7002_p7 = por %p7001_p9, %p7000_p4 }
  0x58   : > { %p6996_p2 = pneg %p6995_p3 }
  0x5a   : > { %p7003_p8 = pnand %p7002_p7, %p6996_p2 }
  0x5c   : > { %7006 = shalt.err (!%p7003_p8)
}
  0x5d   : > { %6750 = dma.hbm_to_vmem [thread:$0]  (!%p7489_p12), %s7919_s11, 64, %s627_s5, [#allocation19], %s7308_s0, %s7308_s0, %s7309_s29  }
  0x5e   : > { %s7312_s26 = smov [#allocation21]   ;;  %s7313_s21 = smov [#allocation3]  }
  0x5f   : > { %s657_s1 = sshll.u32 %s7312_s26, 4  ;;  %s514_s23 = sshll.u32 %s7313_s21, 4  ;;  %s658_s1 = int_to_ptr.vmem [resolvable:$true] %s657_s1  ;;  %s515_s23 = int_to_ptr.vmem [resolvable:$true] %s514_s23 }
  0x60   : > { %s7018_s25 = scalar_lea.vmem %s658_s1, 16  ;;  %s7025_s24 = scalar_lea.vmem %s658_s1, 32 }
  0x61   : > { %p7019_p11 = scmp.ne.s32.totalorder %s658_s1, %s7018_s25  ;;  %p7026_p3 = scmp.lt.s32.totalorder %s658_s1, %s658_s1 }
  0x62   : > { %p7027_p2 = scmp.lt.s32.totalorder %s7025_s24, %s7018_s25 }
  0x63   : > { %p7021_p0 = pnand %p7019_p11, %p7497_p13 }
  0x64   : > { %p7028_p4 = por %p7027_p2, %p7026_p3 }
  0x65   : > { %p7022_p1 = pneg %p7021_p0 }
  0x67   : > { %p7029_p9 = pnand %p7028_p4, %p7022_p1 }
  0x69   : > { %7032 = shalt.err (!%p7029_p9)
}
  0x6a   : > { %6756 = dma.hbm_to_vmem [thread:$0]  (!%p7489_p12), %s7923_s15, 16, %s658_s1, [#allocation22]  }
  0x6b   : > { %s7044_s0 = scalar_lea.vmem %s515_s23, 64  ;;  %p7052_p0 = scmp.lt.s32.totalorder %s515_s23, %s515_s23 }
  0x6c   : > { %p7045_p7 = scmp.ne.s32.totalorder %s515_s23, %s7044_s0  ;;  %p7053_p6 = scmp.lt.s32.totalorder %s7044_s0, %s7044_s0 }
  0x6e   : > { %p7047_p8 = pnand %p7045_p7, %p7497_p13  ;;  %p7054_p5 = por %p7053_p6, %p7052_p0 }
  0x70   : > { %p7048_p11 = pneg %p7047_p8 }
  0x72   : > { %p7055_p10 = pnand %p7054_p5, %p7048_p11 }
  0x74   : > { %7058 = shalt.err (!%p7055_p10)
}
  0x75   : > { %s7959_s26 = sld [smem:[#allocation41_spill]]  ;;  %s7314_s21 = smov [#allocation8]  }
  0x76   : > { %s535_s1 = sshll.u32 %s7314_s21, 4  ;;  %s536_s1 = int_to_ptr.vmem [resolvable:$true] %s535_s1 }
  0x77   : > { %s7070_s25 = scalar_lea.vmem %s536_s1, 10240  ;;  %p7078_p4 = scmp.lt.s32.totalorder %s536_s1, %s536_s1 }
  0x78   : > { %p7071_p1 = scmp.ne.s32.totalorder %s536_s1, %s7070_s25  ;;  %p7079_p9 = scmp.lt.s32.totalorder %s7070_s25, %s7070_s25 }
  0x7a   : > { %p7073_p3 = pnand %p7071_p1, %p7497_p13  ;;  %p7080_p6 = por %p7079_p9, %p7078_p4 }
  0x7b   : > { %6723 = dma.hbm_to_vmem [thread:$0]  (!%p7489_p12), %s7959_s26, 64, %s515_s23, [#allocation4]  }
  0x7c   : > { %p7074_p2 = pneg %p7073_p3 }
  0x7e   : > { %p7081_p5 = pnand %p7080_p6, %p7074_p2 }
  0x80   : > { %7084 = shalt.err (!%p7081_p5)
}
  0x81   : > { %s7315_s24 = smov 128   ;;  %s7316_s20 = smov 8  }
  0x82   : > { %s7960_s0 = sld [smem:[#allocation43_spill]]  ;;  %s7317_s29 = smov [#allocation11]  }
  0x83   : > { %s561_s28 = sshll.u32 %s7317_s29, 4  ;;  %s7318_s26 = smov [#allocation14]   ;;  %s562_s28 = int_to_ptr.vmem [resolvable:$true] %s561_s28 }
  0x84   : > { %s587_s21 = sshll.u32 %s7318_s26, 4  ;;  %s7096_s25 = scalar_lea.vmem %s562_s28, 10240  ;;  %s588_s21 = int_to_ptr.vmem [resolvable:$true] %s587_s21 }
  0x85   : > { %p7097_p10 = scmp.ne.s32.totalorder %s562_s28, %s7096_s25  ;;  %p7104_p11 = scmp.lt.s32.totalorder %s562_s28, %s562_s28 }
  0x86   : > { %p7105_p0 = scmp.lt.s32.totalorder %s7096_s25, %s7096_s25 }
  0x87   : > { %p7099_p7 = pnand %p7097_p10, %p7497_p13 }
  0x88   : > { %6729 = dma.hbm_to_vmem [thread:$0]  (!%p7489_p12), %s7960_s0, 10240, %s536_s1, [#allocation7], %s7315_s24, %s7315_s24, %s7316_s20  }
  0x89   : > { %p7100_p8 = pneg %p7099_p7  ;;  %p7106_p1 = por %p7105_p0, %p7104_p11 }
  0x8b   : > { %p7107_p3 = pnand %p7106_p1, %p7100_p8 }
  0x8d   : > { %7110 = shalt.err (!%p7107_p3)
}
  0x8e   : > { %6735 = dma.hbm_to_vmem [thread:$0]  (!%p7489_p12), %s7914_s6, 10240, %s562_s28, [#allocation10], %s7315_s24, %s7315_s24, %s7316_s20  }
  0x8f   : > { %s7122_s5 = scalar_lea.vmem %s588_s21, 2048  ;;  %p7130_p6 = scmp.lt.s32.totalorder %s588_s21, %s588_s21 }
  0x90   : > { %p7123_p2 = scmp.ne.s32.totalorder %s588_s21, %s7122_s5  ;;  %p7131_p5 = scmp.lt.s32.totalorder %s7122_s5, %s7122_s5 }
  0x92   : > { %p7125_p4 = pnand %p7123_p2, %p7497_p13  ;;  %p7132_p10 = por %p7131_p5, %p7130_p6 }
  0x94   : > { %p7126_p9 = pneg %p7125_p4 }
  0x96   : > { %p7133_p7 = pnand %p7132_p10, %p7126_p9 }
  0x98   : > { %7136 = shalt.err (!%p7133_p7)
}
  0x99   : > { %6741 = dma.hbm_to_vmem [thread:$0]  (!%p7489_p12), %s7916_s8, 2048, %s588_s21, [#allocation13], %s7315_s24, %s7315_s24, %s7316_s20  }
  0x9a   : > { %s7319_s28 = smov [#allocation17]   ;;  %s7320_s25 = smov [#allocation20]  }
  0x9b   : > { %s613_s26 = sshll.u32 %s7319_s28, 4  ;;  %s643_s1 = sshll.u32 %s7320_s25, 4  ;;  %s614_s26 = int_to_ptr.vmem [resolvable:$true] %s613_s26  ;;  %s644_s1 = int_to_ptr.vmem [resolvable:$true] %s643_s1 }
  0x9c   : > { %s7148_s23 = scalar_lea.vmem %s614_s26, 2048  ;;  %p7156_p1 = scmp.lt.s32.totalorder %s614_s26, %s614_s26 }
  0x9d   : > { %p7149_p8 = scmp.ne.s32.totalorder %s614_s26, %s7148_s23  ;;  %p7157_p3 = scmp.lt.s32.totalorder %s7148_s23, %s7148_s23 }
  0x9f   : > { %p7151_p11 = pnand %p7149_p8, %p7497_p13  ;;  %p7158_p2 = por %p7157_p3, %p7156_p1 }
  0xa1   : > { %p7152_p0 = pneg %p7151_p11 }
  0xa3   : > { %p7159_p4 = pnand %p7158_p2, %p7152_p0 }
  0xa5   : > { %7162 = shalt.err (!%p7159_p4)
}
  0xa6   : > { %6747 = dma.hbm_to_vmem [thread:$0]  (!%p7489_p12), %s7918_s10, 2048, %s614_s26, [#allocation16], %s7315_s24, %s7315_s24, %s7316_s20  }
  0xa7   : > { %s7174_s0 = scalar_lea.vmem %s644_s1, 16  ;;  %s7181_s29 = scalar_lea.vmem %s644_s1, 32 }
  0xa8   : > { %p7175_p9 = scmp.ne.s32.totalorder %s644_s1, %s7174_s0  ;;  %p7182_p10 = scmp.lt.s32.totalorder %s644_s1, %s644_s1 }
  0xa9   : > { %p7183_p7 = scmp.lt.s32.totalorder %s7181_s29, %s7174_s0 }
  0xaa   : > { %p7177_p6 = pnand %p7175_p9, %p7497_p13 }
  0xab   : > { %p7184_p8 = por %p7183_p7, %p7182_p10 }
  0xac   : > { %p7178_p5 = pneg %p7177_p6 }
  0xae   : > { %p7185_p11 = pnand %p7184_p8, %p7178_p5 }
  0xb0   : > { %7188 = shalt.err (!%p7185_p11)
}
  0xb1   : > { %6753 = dma.hbm_to_vmem [thread:$0]  (!%p7489_p12), %s7921_s13, 16, %s644_s1, [#allocation19]  }
  0xb2   : > { %s7321_s23 = smov [#allocation23]  }
  0xb3   : > { %s673_s26 = sshll.u32 %s7321_s23, 4  ;;  %s674_s26 = int_to_ptr.vmem [resolvable:$true] %s673_s26 }
  0xb4   : > { %s7200_s21 = scalar_lea.vmem %s674_s26, 512  ;;  %p7208_p2 = scmp.lt.s32.totalorder %s674_s26, %s674_s26 }
  0xb5   : > { %p7201_p0 = scmp.ne.s32.totalorder %s674_s26, %s7200_s21  ;;  %p7209_p4 = scmp.lt.s32.totalorder %s7200_s21, %s7200_s21 }
  0xb7   : > { %p7203_p1 = pnand %p7201_p0, %p7497_p13  ;;  %p7210_p9 = por %p7209_p4, %p7208_p2 }
  0xb9   : > { %p7204_p3 = pneg %p7203_p1 }
  0xbb   : > { %p7211_p6 = pnand %p7210_p9, %p7204_p3 }
  0xbd   : > { %7214 = shalt.err (!%p7211_p6)
}
  0xbe   : > { %6759 = dma.hbm_to_vmem [thread:$0]  (!%p7489_p12), %s7926_s18, 512, %s674_s26, [#allocation22], %s7315_s24, %s7315_s24, %s7316_s20  }
  0xbf   : > { %p7961_p5 = scmp.ne.s32.totalorder %s7954_s30, 0 }
  0xc0   : > { %p7962_p13 = scmp.eq.s32.totalorder (!%p7961_p5), %s7453_s2, 0 }
  0xc1   : > { %710 = sbr.rel (%p7961_p5) target bundleno = 3124 (0xc34), region = 100 }
  0xc6   : > { %7258 = dma.done.wait (%p7962_p13), [#allocation4], 64   ;;  %p7963_p10 = pmov %p7962_p13 }
  0xc8   : > { %7260 = vsyncadd (%p7963_p10), [#allocation4], 4294967232  ;;  %p7964_p7 = pmov %p7963_p10 }
  0xca   : > { %7262 = dma.done.wait (%p7964_p7), [#allocation7], 10256   ;;  %p7965_p8 = pmov %p7964_p7 }
  0xcb   : > { %p7966_p11 = pmov %p7964_p7 }
  0xcc   : > { %7264 = vsyncadd (%p7965_p8), [#allocation7], 4294957040 }
  0xcd   : > { %7266 = dma.done.wait (%p7966_p11), [#allocation10], 10304   ;;  %p7967_p12 = pmov %p7964_p7 }
  0xce   : > { %p7968_p0 = pmov %p7964_p7 }
  0xcf   : > { %7268 = vsyncadd (%p7967_p12), [#allocation10], 4294956992 }
  0xd0   : > { %7270 = dma.done.wait (%p7968_p0), [#allocation13], 2112   ;;  %p7969_p1 = pmov %p7968_p0 }
  0xd1   : > { %p7970_p3 = pmov %p7968_p0 }
  0xd2   : > { %7272 = vsyncadd (%p7969_p1), [#allocation13], 4294965184 }
  0xd3   : > { %7274 = dma.done.wait (%p7970_p3), [#allocation16], 2112   ;;  %p7971_p2 = pmov %p7968_p0 }
  0xd4   : > { %p7972_p4 = pmov %p7968_p0 }
  0xd5   : > { %7276 = vsyncadd (%p7971_p2), [#allocation16], 4294965184 }
  0xd6   : > { %7278 = dma.done.wait (%p7972_p4), [#allocation19], 80   ;;  %p7973_p9 = pmov %p7968_p0 }
  0xd7   : > { %p7974_p6 = pmov %p7968_p0 }
  0xd8   : > { %7280 = vsyncadd (%p7973_p9), [#allocation19], 4294967216 }
  0xd9   : > { %7282 = dma.done.wait (%p7974_p6), [#allocation22], 528   ;;  %p7975_p5 = pmov %p7968_p0 }
  0xda   : > { %s5676_s3 = sshll.u32 %s7453_s2, 1  ;;  %v7322_v0 = vmov 0   ;;  %vm868_vm0 = vcmask 1043456   ;;  %vm861_vm1 = vcmask 31744   ;;  %s7976_s20 = sld [smem:[#allocation39_spill]]  ;;  %vm848_vm2 = vcmask 261120  }
  0xdb   : > { %7284 = vsyncadd (%p7975_p5), [#allocation22], 4294966768  ;;  %p822_p13 = scmp.lt.s32.totalorder %s5676_s3, 3  ;;  %6844 = vset.pattern.permute.xlu0 %v7322_v0  ;;  %s7977_s25 = sld [smem:[#allocation40_spill]]  ;;  %v853_v1 = vld [vmem:[#allocation3] sm:$0xf] }
  0xdc   : > { %6111 = vmatprep.subr.msk.mxu0 %vm868_vm0, %v853_v1  ;;  %v7323_v6 = vmov 0.0   ;;  %v967_v7 = vld [vmem:[#allocation8 + $0x38] sm:$0xff]  ;;  %v966_v9 = vld [vmem:[#allocation8 + $0x30] sm:$0xff]  ;;  %v965_v11 = vld [vmem:[#allocation8 + $0x28] sm:$0xff]  ;;  %s7978_s24 = sld [smem:[#allocation45_spill]]  ;;  %p7980_p7 = scmp.ne.s32.totalorder %s7951_s4, 0 }
  0xdd   : > { %s7991_s3 = smov (!%p822_p13, %s5676_s3), 3  ;;  %6112 = vmatpush3.msk.msra.mxu0 %vm868_vm0, %v853_v1  ;;  %849 = vst.msk [vmem:[#allocation2] sm:$0xff] %vm848_vm2, %v7323_v6  ;;  %851 = vst.msk [vmem:[#allocation2 + $0x10] sm:$0xff] %vm848_vm2, %v7323_v6  ;;  %v1053_v8 = vld [vmem:[#allocation11 + $0x38] sm:$0xff]  ;;  %6116 = vmatprep.subr.mxu1 %v967_v7  ;;  %v1052_v10 = vld [vmem:[#allocation11 + $0x30] sm:$0xff]  ;;  %s7324_s28 = smov [#allocation24]  }
  0xde   : > { %s5677_s30 = sshll.u32 %s7991_s3, 3  ;;  %852 = vst.msk [vmem:[#allocation2 + $0x18] sm:$0xff] %vm848_vm2, %v7323_v6  ;;  %850 = vst.msk [vmem:[#allocation2 + $0x8] sm:$0xff] %vm848_vm2, %v7323_v6  ;;  %6127 = vmatprep.subr.mxu0 %v1053_v8  ;;  %6117 = vmatpush3.msra.mxu1 %v967_v7  ;;  %v1051_v12 = vld [vmem:[#allocation11 + $0x28] sm:$0xff]  ;;  %v964_v13 = vld [vmem:[#allocation8 + $0x20] sm:$0xff]  ;;  %s5807_s3 = sshll.u32 %s7453_s2, 8 }
  0xdf   : > { %6118 = vmatprep.subr.mxu1 %v966_v9  ;;  %v1050_v14 = vld [vmem:[#allocation11 + $0x20] sm:$0xff]  ;;  %v956_v15 = vld [vmem:[#allocation8 + $0x18] sm:$0xff]  ;;  %v955_v28 = vld [vmem:[#allocation8 + $0x10] sm:$0xff] }
  0xe0   : > { %s825_s0 = scalar_lea.vmem %s7976_s20, %s5677_s30  ;;  %6119 = vmatpush3.msra.mxu1 %v966_v9  ;;  %v960_v16 = vld [vmem:[#allocation11 + $0x18] sm:$0xff]  ;;  %v959_v29 = vld [vmem:[#allocation11 + $0x10] sm:$0xff]  ;;  %v954_v31 = vld [vmem:[#allocation8 + $0x8] sm:$0xff] }
  0xe1   : > { %s831_s23 = scalar_lea.vmem %s7977_s25, %s5677_s30  ;;  %v834_v2 = vld [vmem:[%s825_s0] sm:$0xff]  ;;  %v835_v3 = vld [vmem:[%s825_s0 + $0x8] sm:$0xff]  ;;  %6120 = vmatprep.subr.mxu1 %v965_v11  ;;  %v958_v32 = vld [vmem:[#allocation11 + $0x8] sm:$0xff]  ;;  %s818_s25 = sand.u32 1, %s7295_s22  }
  0xe2   : > { %6113 = vmatprep.mubr.msk.f32.mxu0 %vm861_vm1, %v834_v2  ;;  %v836_v4 = vld [vmem:[%s831_s23] sm:$0xff]  ;;  %v837_v5 = vld [vmem:[%s831_s23 + $0x8] sm:$0xff]  ;;  %6121 = vmatpush3.msra.mxu1 %v965_v11  ;;  %v1290_v39 = vld [vmem:[#allocation8 + $0x50] sm:$0xff]  ;;  %s5675_s23 = sshll.u32 %s818_s25, 4  ;;  %s7979_s20 = smov %s7978_s24 }
  0xe3   : > { %840 = vperm.xlu0 %6844, %v836_v4   ;;  %6114 = vmatmul.mubr.msk.f32.vlgmr.msra.gmra.mxu0 %vm861_vm1, %v835_v3  ;;  %v5680_v18 = vld [vmem:[#allocation6] ss:$0 sm:$0xff]  ;;  %v953_v33 = vld [vmem:[#allocation8] sm:$0xff]  ;;  %v1376_v40 = vld [vmem:[#allocation11 + $0x50] sm:$0xff]  ;;  %s820_s5 = scalar_lea.vmem [#allocation24], %s5675_s23  ;;  %s7866_s0 = scalar_lea.hbm %s7978_s24, %s5807_s3 }
  0xe4   : > { %6128 = vmatpush3.msra.mxu0 %v1053_v8  ;;  %6122 = vmatprep.subr.mxu1 %v964_v13  ;;  %v957_v34 = vld [vmem:[#allocation11] sm:$0xff]  ;;  %v1291_v35 = vld [vmem:[#allocation8 + $0x58] sm:$0xff]  ;;  %v1375_v42 = vld [vmem:[#allocation11 + $0x48] sm:$0xff]  ;;  %s5445_s1 = sshll.u32 %s820_s5, 4  ;;  %s7868_s29 = scalar_lea.sflag [#allocation5], %s818_s25  ;;  %s7860_s1 = int_to_ptr.vmem [resolvable:$true] %s5445_s1 }
  0xe5   : > { %6129 = vmatprep.subr.mxu0 %v1052_v10  ;;  %6123 = vmatpush3.msra.mxu1 %v964_v13  ;;  %v1377_v36 = vld [vmem:[#allocation11 + $0x58] sm:$0xff]  ;;  %v1289_v41 = vld [vmem:[#allocation8 + $0x48] sm:$0xff]  ;;  %v1462_v49 = vld [vmem:[#allocation8 + $0x70] sm:$0xff]  ;;  %s7215_s2 = scalar_lea.vmem %s7860_s1, 256  ;;  %s7219_s23 = sshll.u32 %s7324_s28, 4  ;;  %s7220_s23 = int_to_ptr.vmem [resolvable:$false] %s7219_s23 }
  0xe6   : > { %6130 = vmatpush3.msra.mxu0 %v1052_v10  ;;  %6138 = vmatprep.subr.mxu1 %v956_v15  ;;  %v1288_v43 = vld [vmem:[#allocation8 + $0x40] sm:$0xff]  ;;  %v1463_v45 = vld [vmem:[#allocation8 + $0x78] sm:$0xff]  ;;  %v1461_v51 = vld [vmem:[#allocation8 + $0x68] sm:$0xff]  ;;  %p7216_p10 = scmp.ne.s32.totalorder %s7860_s1, %s7215_s2  ;;  %s7221_s26 = scalar_lea.vmem %s7220_s23, 512 }
  0xe7   : > { %845 = vperm.xlu0 %6844, %v837_v5   ;;  %6131 = vmatprep.subr.mxu0 %v1051_v12  ;;  %v1374_v44 = vld [vmem:[#allocation11 + $0x40] sm:$0xff]  ;;  %v1549_v46 = vld [vmem:[#allocation11 + $0x78] sm:$0xff]  ;;  %v1548_v50 = vld [vmem:[#allocation11 + $0x70] sm:$0xff]  ;;  %p7222_p12 = scmp.lt.s32.totalorder %s7860_s1, %s7220_s23  ;;  %p7223_p0 = scmp.lt.s32.totalorder %s7221_s26, %s7215_s2 }
  0xe8   : > { %6132 = vmatpush3.msra.mxu0 %v1051_v12  ;;  %v1547_v52 = vld [vmem:[#allocation11 + $0x68] sm:$0xff]  ;;  %v1460_v53 = vld [vmem:[#allocation8 + $0x60] sm:$0xff]  ;;  %v1635_v55 = vld [vmem:[#allocation8 + $0x98] sm:$0xff]  ;;  %p7217_p8 = pnand %p7216_p10, %p7980_p7 }
  0xe9   : > { %6133 = vmatprep.subr.mxu0 %v1050_v14  ;;  %v1546_v54 = vld [vmem:[#allocation11 + $0x60] sm:$0xff]  ;;  %v1721_v56 = vld [vmem:[#allocation11 + $0x98] sm:$0xff]  ;;  %v1634_v59 = vld [vmem:[#allocation8 + $0x90] sm:$0xff]  ;;  %p7224_p1 = por %p7223_p0, %p7222_p12 }
  0xea   : > { %6134 = vmatpush3.msra.mxu0 %v1050_v14  ;;  %v1720_v60 = vld [vmem:[#allocation11 + $0x90] sm:$0xff]  ;;  %v1633_v61 = vld [vmem:[#allocation8 + $0x88] sm:$0xff]  ;;  %v1632_v63 = vld [vmem:[#allocation8 + $0x80] sm:$0xff]  ;;  %p7218_p11 = pneg %p7217_p8 }
  0xeb   : > { %6149 = vmatprep.subr.mxu0 %v960_v16  ;;  %v1719_v62 = vld [vmem:[#allocation11 + $0x88] sm:$0xff]  ;;  %v1718_v0 = vld [vmem:[#allocation11 + $0x80] sm:$0xff]  ;;  %v1833_v4 = vld [vmem:[#allocation14 + $0x10] sm:$0xff] }
  0xec   : > { %v1834_v2 = vld [vmem:[#allocation14 + $0x18] sm:$0xff]  ;;  %v1832_v6 = vld [vmem:[#allocation14 + $0x8] sm:$0xff]  ;;  %v1831_v8 = vld [vmem:[#allocation14] sm:$0xff]  ;;  %p7225_p3 = pnand %p7224_p1, %p7218_p11 }
  0xed   : > { %v1926_v3 = vld [vmem:[#allocation17 + $0x18] sm:$0xff]  ;;  %v1925_v5 = vld [vmem:[#allocation17 + $0x10] sm:$0xff]  ;;  %v1924_v7 = vld [vmem:[#allocation17 + $0x8] sm:$0xff] }
  0xee   : > { %v1923_v9 = vld [vmem:[#allocation17] sm:$0xff] }
 0x15e   : > { %v7665_v17 = vpop.permute.xlu0 %840 }
 0x162   : > { %v7667_v20 = vpop.permute.xlu0 %845 }
 0x1a3   : > { %v6115_v19 = vpop.f32.mrf.mxu0 }
 0x1a4   : > { %v944_v21 = vadd.f32 %v6115_v19, %v5680_v18 }
 0x1a5   : > { %v938_v22 = vpop.f32.mrf.mxu0 }
 0x1a6   : > { %v7670_v23 = vmul.f32 %v944_v21, %v7667_v20  ;;  %v939_v24 = vadd.f32 %v5680_v18, %v938_v22 }
 0x1a8   : > { %950 = vst.msk [vmem:[#allocation2 + $0x10] sm:$0xff] %vm848_vm2, %v7670_v23  ;;  %v7675_v25 = vmul.f32 %v939_v24, %v7665_v17 }
 0x1aa   : > { %949 = vst.msk [vmem:[#allocation2 + $0x8] sm:$0xff] %vm848_vm2, %v7675_v25 }
 0x1af   : > { %v1286_v47 = vld [vmem:[#allocation2 + $0x10] sm:$0xff] }
 0x1b0   : > { %v1458_v57 = vld [vmem:[#allocation2 + $0x11] sm:$0xff] }
 0x1b1   : > { %v961_v26 = vld [vmem:[#allocation2 + $0x7] sm:$0xff]  ;;  %v962_v27 = vld [vmem:[#allocation2 + $0xf] sm:$0xff] }
 0x1b2   : > { %6124 = vmatprep.mubr.msk.f32.mxu1 %vm848_vm2, %v961_v26  ;;  %6135 = vmatprep.mubr.msk.f32.mxu0 %vm848_vm2, %v961_v26  ;;  %v951_v30 = vld [vmem:[#allocation2 + $0x6] sm:$0xff]  ;;  %v952_v37 = vld [vmem:[#allocation2 + $0xe] sm:$0xff] }
 0x1b3   : > { %6125 = vmatmul.mubr.msk.f32.vlgmr.msra.gmra.mxu1 %vm848_vm2, %v962_v27  ;;  %6136 = vmatmul.mubr.msk.f32.vlgmr.msra.gmra.mxu0 %vm848_vm2, %v962_v27  ;;  %v1285_v38 = vld [vmem:[#allocation2 + $0x8] sm:$0xff]  ;;  %v1630_v1 = vld [vmem:[#allocation2 + $0x12] sm:$0xff] }
 0x1b4   : > { %6139 = vmatpush3.msra.mxu1 %v956_v15  ;;  %6150 = vmatpush3.msra.mxu0 %v960_v16  ;;  %v1457_v48 = vld [vmem:[#allocation2 + $0x9] sm:$0xff] }
 0x1b5   : > { %6140 = vmatprep.subr.mxu1 %v955_v28  ;;  %6146 = vmatprep.mubr.msk.f32.mxu1 %vm848_vm2, %v951_v30  ;;  %v1629_v58 = vld [vmem:[#allocation2 + $0xa] sm:$0xff] }
 0x1b6   : > { %6151 = vmatprep.subr.mxu0 %v959_v29  ;;  %6157 = vmatprep.mubr.msk.f32.mxu0 %vm848_vm2, %v951_v30 }
 0x1b7   : > { %6141 = vmatpush3.msra.mxu1 %v955_v28  ;;  %6152 = vmatpush3.msra.mxu0 %v959_v29 }
 0x1b8   : > { %6142 = vmatprep.subr.mxu1 %v954_v31  ;;  %6153 = vmatprep.subr.mxu0 %v958_v32 }
 0x1b9   : > { %6143 = vmatpush3.msra.mxu1 %v954_v31  ;;  %6154 = vmatpush3.msra.mxu0 %v958_v32 }
 0x1ba   : > { %6144 = vmatprep.subr.mxu1 %v953_v33  ;;  %6155 = vmatprep.subr.mxu0 %v957_v34 }
 0x1bb   : > { %6145 = vmatpush3.msra.mxu1 %v953_v33  ;;  %6156 = vmatpush3.msra.mxu0 %v957_v34 }
 0x1bc   : > { %6147 = vmatmul.mubr.msk.f32.vlgmr.msra.gmra.mxu1 %vm848_vm2, %v952_v37  ;;  %6158 = vmatmul.mubr.msk.f32.vlgmr.msra.gmra.mxu0 %vm848_vm2, %v952_v37 }
 0x1bd   : > { %6160 = vmatprep.subr.mxu1 %v1291_v35  ;;  %6171 = vmatprep.subr.mxu0 %v1377_v36 }
 0x1be   : > { %6161 = vmatpush3.msra.mxu1 %v1291_v35  ;;  %6168 = vmatprep.mubr.msk.f32.mxu1 %vm848_vm2, %v1285_v38 }
 0x1bf   : > { %6172 = vmatpush3.msra.mxu0 %v1377_v36  ;;  %6179 = vmatprep.mubr.msk.f32.mxu0 %vm848_vm2, %v1285_v38 }
 0x1c0   : > { %6162 = vmatprep.subr.mxu1 %v1290_v39  ;;  %6173 = vmatprep.subr.mxu0 %v1376_v40 }
 0x1c1   : > { %6163 = vmatpush3.msra.mxu1 %v1290_v39  ;;  %6174 = vmatpush3.msra.mxu0 %v1376_v40  ;;  %v5705_v39 = vld [vmem:[#allocation12] ss:$0 sm:$0xff] }
 0x1c2   : > { %6164 = vmatprep.subr.mxu1 %v1289_v41  ;;  %6175 = vmatprep.subr.mxu0 %v1375_v42 }
 0x1c3   : > { %6165 = vmatpush3.msra.mxu1 %v1289_v41  ;;  %6176 = vmatpush3.msra.mxu0 %v1375_v42 }
 0x1c4   : > { %6166 = vmatprep.subr.mxu1 %v1288_v43  ;;  %6177 = vmatprep.subr.mxu0 %v1374_v44 }
 0x1c5   : > { %6167 = vmatpush3.msra.mxu1 %v1288_v43  ;;  %6178 = vmatpush3.msra.mxu0 %v1374_v44 }
 0x1c6   : > { %6169 = vmatmul.mubr.msk.f32.vlgmr.msra.gmra.mxu1 %vm848_vm2, %v1286_v47  ;;  %6180 = vmatmul.mubr.msk.f32.vlgmr.msra.gmra.mxu0 %vm848_vm2, %v1286_v47 }
 0x1c7   : > { %6182 = vmatprep.subr.mxu1 %v1463_v45  ;;  %6193 = vmatprep.subr.mxu0 %v1549_v46 }
 0x1c8   : > { %6183 = vmatpush3.msra.mxu1 %v1463_v45  ;;  %6190 = vmatprep.mubr.msk.f32.mxu1 %vm848_vm2, %v1457_v48 }
 0x1c9   : > { %6194 = vmatpush3.msra.mxu0 %v1549_v46  ;;  %6201 = vmatprep.mubr.msk.f32.mxu0 %vm848_vm2, %v1457_v48 }
 0x1ca   : > { %6184 = vmatprep.subr.mxu1 %v1462_v49  ;;  %6195 = vmatprep.subr.mxu0 %v1548_v50 }
 0x1cb   : > { %6185 = vmatpush3.msra.mxu1 %v1462_v49  ;;  %6196 = vmatpush3.msra.mxu0 %v1548_v50 }
 0x1cc   : > { %6186 = vmatprep.subr.mxu1 %v1461_v51  ;;  %6197 = vmatprep.subr.mxu0 %v1547_v52 }
 0x1cd   : > { %6187 = vmatpush3.msra.mxu1 %v1461_v51  ;;  %6198 = vmatpush3.msra.mxu0 %v1547_v52 }
 0x1ce   : > { %6188 = vmatprep.subr.mxu1 %v1460_v53  ;;  %6199 = vmatprep.subr.mxu0 %v1546_v54 }
 0x1cf   : > { %6189 = vmatpush3.msra.mxu1 %v1460_v53  ;;  %6200 = vmatpush3.msra.mxu0 %v1546_v54  ;;  %v5704_v54 = vld [vmem:[#allocation9] ss:$0 sm:$0xff] }
 0x1d0   : > { %6191 = vmatmul.mubr.msk.f32.vlgmr.msra.gmra.mxu1 %vm848_vm2, %v1458_v57  ;;  %6202 = vmatmul.mubr.msk.f32.vlgmr.msra.gmra.mxu0 %vm848_vm2, %v1458_v57 }
 0x1d1   : > { %6204 = vmatprep.subr.mxu1 %v1635_v55  ;;  %6215 = vmatprep.subr.mxu0 %v1721_v56 }
 0x1d2   : > { %6205 = vmatpush3.msra.mxu1 %v1635_v55  ;;  %6212 = vmatprep.mubr.msk.f32.mxu1 %vm848_vm2, %v1629_v58 }
 0x1d3   : > { %6216 = vmatpush3.msra.mxu0 %v1721_v56  ;;  %6223 = vmatprep.mubr.msk.f32.mxu0 %vm848_vm2, %v1629_v58 }
 0x1d4   : > { %6206 = vmatprep.subr.mxu1 %v1634_v59  ;;  %6217 = vmatprep.subr.mxu0 %v1720_v60 }
 0x1d5   : > { %6207 = vmatpush3.msra.mxu1 %v1634_v59  ;;  %6218 = vmatpush3.msra.mxu0 %v1720_v60 }
 0x1d6   : > { %6208 = vmatprep.subr.mxu1 %v1633_v61  ;;  %6219 = vmatprep.subr.mxu0 %v1719_v62 }
 0x1d7   : > { %6209 = vmatpush3.msra.mxu1 %v1633_v61  ;;  %6220 = vmatpush3.msra.mxu0 %v1719_v62 }
 0x1d8   : > { %6210 = vmatprep.subr.mxu1 %v1632_v63  ;;  %6221 = vmatprep.subr.mxu0 %v1718_v0 }
 0x1d9   : > { %6211 = vmatpush3.msra.mxu1 %v1632_v63  ;;  %6222 = vmatpush3.msra.mxu0 %v1718_v0 }
 0x1da   : > { %6213 = vmatmul.mubr.msk.f32.vlgmr.msra.gmra.mxu1 %vm848_vm2, %v1630_v1  ;;  %6224 = vmatmul.mubr.msk.f32.vlgmr.msra.gmra.mxu0 %vm848_vm2, %v1630_v1 }
 0x1db   : > { %6226 = vmatprep.subr.mxu1 %v1834_v2  ;;  %6237 = vmatprep.subr.mxu0 %v1926_v3 }
 0x1dc   : > { %6227 = vmatpush3.msra.mxu1 %v1834_v2  ;;  %6238 = vmatpush3.msra.mxu0 %v1926_v3 }
 0x1dd   : > { %6228 = vmatprep.subr.mxu1 %v1833_v4  ;;  %6239 = vmatprep.subr.mxu0 %v1925_v5 }
 0x1de   : > { %6229 = vmatpush3.msra.mxu1 %v1833_v4  ;;  %6240 = vmatpush3.msra.mxu0 %v1925_v5  ;;  %v2033_v4 = vld [vmem:[#allocation8 + $0xd8] sm:$0xff] }
 0x1df   : > { %6230 = vmatprep.subr.mxu1 %v1832_v6  ;;  %6241 = vmatprep.subr.mxu0 %v1924_v7  ;;  %v2119_v5 = vld [vmem:[#allocation11 + $0xd8] sm:$0xff] }
 0x1e0   : > { %6231 = vmatpush3.msra.mxu1 %v1832_v6  ;;  %6242 = vmatpush3.msra.mxu0 %v1924_v7  ;;  %v2032_v6 = vld [vmem:[#allocation8 + $0xd0] sm:$0xff] }
 0x1e1   : > { %6232 = vmatprep.subr.mxu1 %v1831_v8  ;;  %6243 = vmatprep.subr.mxu0 %v1923_v9  ;;  %v2118_v7 = vld [vmem:[#allocation11 + $0xd0] sm:$0xff] }
 0x1e2   : > { %6233 = vmatpush3.msra.mxu1 %v1831_v8  ;;  %6244 = vmatpush3.msra.mxu0 %v1923_v9  ;;  %v2031_v8 = vld [vmem:[#allocation8 + $0xc8] sm:$0xff] }
 0x1e3   : > { %6248 = vmatprep.subr.mxu1 %v2033_v4  ;;  %6259 = vmatprep.subr.mxu0 %v2119_v5  ;;  %v2117_v9 = vld [vmem:[#allocation11 + $0xc8] sm:$0xff] }
 0x273   : > { %v6126_v10 = vpop.f32.mrf.mxu1  ;;  %v6137_v11 = vpop.f32.mrf.mxu0 }
 0x275   : > { %v1040_v12 = vpop.f32.mrf.mxu1  ;;  %v1120_v13 = vpop.f32.mrf.mxu0 }
 0x27c   : > { %v6148_v14 = vpop.f32.mrf.mxu1  ;;  %v6159_v15 = vpop.f32.mrf.mxu0 }
 0x27d   : > { %v1282_v28 = vadd.f32 %v6159_v15, %v6137_v11  ;;  %v1207_v36 = vadd.f32 %v6148_v14, %v6126_v10  ;;  %v2030_v10 = vld [vmem:[#allocation8 + $0xc0] sm:$0xff]  ;;  %v5706_v14 = vld [vmem:[#allocation15] ss:$0 sm:$0xff] }
 0x27e   : > { %v1201_v16 = vpop.f32.mrf.mxu1  ;;  %v1276_v18 = vpop.f32.mrf.mxu0  ;;  %v2116_v11 = vld [vmem:[#allocation11 + $0xc0] sm:$0xff] }
 0x27f   : > { %v1277_v29 = vadd.f32 %v1276_v18, %v1120_v13  ;;  %v1202_v33 = vadd.f32 %v1201_v16, %v1040_v12  ;;  %v2021_v12 = vld [vmem:[#allocation8 + $0xb8] sm:$0xff] }
 0x280   : > { %v2026_v13 = vld [vmem:[#allocation11 + $0xb8] sm:$0xff] }
 0x286   : > { %v6170_v19 = vpop.f32.mrf.mxu1  ;;  %v6181_v21 = vpop.f32.mrf.mxu0 }
 0x287   : > { %v1456_v30 = vadd.f32 %v6181_v21, %v1282_v28  ;;  %v1454_v43 = vadd.f32 %v6170_v19, %v1207_v36 }
 0x288   : > { %v1364_v22 = vpop.f32.mrf.mxu1  ;;  %v1444_v24 = vpop.f32.mrf.mxu0 }
 0x289   : > { %v1455_v34 = vadd.f32 %v1444_v24, %v1277_v29  ;;  %v1453_v40 = vadd.f32 %v1364_v22, %v1202_v33  ;;  %v2020_v29 = vld [vmem:[#allocation8 + $0xb0] sm:$0xff]  ;;  %v2023_v33 = vld [vmem:[#allocation11 + $0xa0] sm:$0xff] }
 0x290   : > { %v6192_v26 = vpop.f32.mrf.mxu1  ;;  %v6203_v27 = vpop.f32.mrf.mxu0 }
 0x291   : > { %v1628_v35 = vadd.f32 %v6203_v27, %v1456_v30  ;;  %v1626_v49 = vadd.f32 %v6192_v26, %v1454_v43  ;;  %v2019_v30 = vld [vmem:[#allocation8 + $0xa8] sm:$0xff] }
 0x292   : > { %v1536_v31 = vpop.f32.mrf.mxu1  ;;  %v1616_v32 = vpop.f32.mrf.mxu0  ;;  %v2440_v43 = vld [vmem:[#allocation11 + $0xe0] sm:$0xff] }
 0x293   : > { %v1627_v41 = vadd.f32 %v1616_v32, %v1455_v34  ;;  %v1625_v46 = vadd.f32 %v1536_v31, %v1453_v40  ;;  %v2024_v31 = vld [vmem:[#allocation11 + $0xa8] sm:$0xff]  ;;  %v2018_v32 = vld [vmem:[#allocation8 + $0xa0] sm:$0xff]  ;;  %v2357_v34 = vld [vmem:[#allocation8 + $0xf8] sm:$0xff] }
 0x294   : > { %v2355_v40 = vld [vmem:[#allocation8 + $0xe8] sm:$0xff] }
 0x29a   : > { %v6214_v37 = vpop.f32.mrf.mxu1  ;;  %v6225_v38 = vpop.f32.mrf.mxu0 }
 0x29b   : > { %v1800_v42 = vadd.f32 %v6225_v38, %v1628_v35  ;;  %v1798_v53 = vadd.f32 %v6214_v37, %v1626_v49  ;;  %v2443_v35 = vld [vmem:[#allocation11 + $0xf8] sm:$0xff]  ;;  %v2356_v38 = vld [vmem:[#allocation8 + $0xf0] sm:$0xff] }
 0x29c   : > { %v1708_v44 = vpop.f32.mrf.mxu1  ;;  %v1788_v45 = vpop.f32.mrf.mxu0  ;;  %v2614_v49 = vld [vmem:[#allocation11 + $0x110] sm:$0xff] }
 0x29d   : > { %v1818_v47 = vadd.f32 %v5705_v39, %v1800_v42  ;;  %v1799_v48 = vadd.f32 %v1788_v45, %v1627_v41  ;;  %v1797_v51 = vadd.f32 %v1708_v44, %v1625_v46  ;;  %v1809_v57 = vadd.f32 %v5704_v54, %v1798_v53  ;;  %v2441_v41 = vld [vmem:[#allocation11 + $0xe8] sm:$0xff]  ;;  %v2354_v42 = vld [vmem:[#allocation8 + $0xe0] sm:$0xff]  ;;  %v2529_v44 = vld [vmem:[#allocation8 + $0x118] sm:$0xff] }
 0x29e   : > { %v2615_v45 = vld [vmem:[#allocation11 + $0x118] sm:$0xff]  ;;  %v2612_v53 = vld [vmem:[#allocation11 + $0x100] sm:$0xff] }
 0x29f   : > { %v1822_v50 = vmul.f32 0.5, %v1818_v47  ;;  %v1817_v52 = vadd.f32 %v5705_v39, %v1799_v48  ;;  %v1808_v56 = vadd.f32 %v5704_v54, %v1797_v51  ;;  %v2442_v39 = vld [vmem:[#allocation11 + $0xf0] sm:$0xff]  ;;  %v2613_v51 = vld [vmem:[#allocation11 + $0x108] sm:$0xff] }
 0x2a0   : > { %v2528_v48 = vld [vmem:[#allocation8 + $0x110] sm:$0xff]  ;;  %v2701_v54 = vld [vmem:[#allocation8 + $0x138] sm:$0xff] }
 0x2a1   : > { %6845 = vtanh.f32 %v1822_v50  ;;  %v1821_v55 = vmul.f32 0.5, %v1817_v52  ;;  %v2527_v50 = vld [vmem:[#allocation8 + $0x108] sm:$0xff]  ;;  %v2526_v52 = vld [vmem:[#allocation8 + $0x100] sm:$0xff] }
 0x2a3   : > { %6847 = vtanh.f32 %v1821_v55  ;;  %v2787_v55 = vld [vmem:[#allocation11 + $0x138] sm:$0xff] }
 0x2a4   : > { %6849 = vtanh.f32 %v1808_v56 }
 0x2a5   : > { %6851 = vtanh.f32 %v1809_v57 }
 0x2ae   : > { %v6846_v58 = vpop.eup %6845 }
 0x2af   : > { %v1826_v59 = vadd.f32 1.0, %v6846_v58  ;;  %v2700_v58 = vld [vmem:[#allocation8 + $0x130] sm:$0xff] }
 0x2b0   : > { %v6848_v60 = vpop.eup %6847 }
 0x2b1   : > { %v1825_v61 = vadd.f32 1.0, %v6848_v60  ;;  %v1828_v62 = vmul.f32 0.5, %v1826_v59  ;;  %v6850_v0 = vpop.eup %6849  ;;  %v2786_v59 = vld [vmem:[#allocation11 + $0x130] sm:$0xff]  ;;  %v2699_v60 = vld [vmem:[#allocation8 + $0x128] sm:$0xff] }
 0x2b2   : > { %v6852_v1 = vpop.eup %6851 }
 0x2b3   : > { %v1827_v63 = vmul.f32 0.5, %v1825_v61  ;;  %v1830_v3 = vmul.f32 %v6852_v1, %v1828_v62  ;;  %v2785_v61 = vld [vmem:[#allocation11 + $0x128] sm:$0xff]  ;;  %v2698_v62 = vld [vmem:[#allocation8 + $0x120] sm:$0xff] }
 0x2b4   : > { %v2903_v1 = vld [vmem:[#allocation14 + $0x38] sm:$0xff] }
 0x2b5   : > { %v1829_v2 = vmul.f32 %v6850_v0, %v1827_v63  ;;  %v2784_v63 = vld [vmem:[#allocation11 + $0x120] sm:$0xff] }
 0x2b7   : > { %6234 = vmatprep.mubr.msk.f32.mxu1 %vm848_vm2, %v1829_v2  ;;  %6245 = vmatprep.mubr.msk.f32.mxu0 %vm848_vm2, %v1829_v2  ;;  %v2902_v2 = vld [vmem:[#allocation14 + $0x30] sm:$0xff] }
 0x2b8   : > { %6235 = vmatmul.mubr.msk.f32.vlgmr.msra.gmra.mxu1 %vm848_vm2, %v1830_v3  ;;  %6246 = vmatmul.mubr.msk.f32.vlgmr.msra.gmra.mxu0 %vm848_vm2, %v1830_v3  ;;  %v2901_v3 = vld [vmem:[#allocation14 + $0x28] sm:$0xff] }
 0x2b9   : > { %6249 = vmatpush3.msra.mxu1 %v2033_v4  ;;  %6260 = vmatpush3.msra.mxu0 %v2119_v5  ;;  %v2900_v4 = vld [vmem:[#allocation14 + $0x20] sm:$0xff] }
 0x2ba   : > { %6250 = vmatprep.subr.mxu1 %v2032_v6  ;;  %6261 = vmatprep.subr.mxu0 %v2118_v7 }
 0x2bb   : > { %6251 = vmatpush3.msra.mxu1 %v2032_v6  ;;  %6262 = vmatpush3.msra.mxu0 %v2118_v7 }
 0x2bc   : > { %6252 = vmatprep.subr.mxu1 %v2031_v8  ;;  %6263 = vmatprep.subr.mxu0 %v2117_v9 }
 0x2bd   : > { %6253 = vmatpush3.msra.mxu1 %v2031_v8  ;;  %6264 = vmatpush3.msra.mxu0 %v2117_v9 }
 0x2be   : > { %6254 = vmatprep.subr.mxu1 %v2030_v10  ;;  %6265 = vmatprep.subr.mxu0 %v2116_v11 }
 0x2bf   : > { %6255 = vmatpush3.msra.mxu1 %v2030_v10  ;;  %6266 = vmatpush3.msra.mxu0 %v2116_v11 }
 0x2c0   : > { %6270 = vmatprep.subr.mxu1 %v2021_v12  ;;  %6281 = vmatprep.subr.mxu0 %v2026_v13 }
 0x378   : > { %v6236_v15 = vpop.f32.mrf.mxu1  ;;  %v7729_v5 = vpop.f32.mrf.mxu0 }
 0x379   : > { %v1920_v16 = vadd.f32 %v6236_v15, %v5706_v14 }
 0x37a   : > { %v1914_v18 = vpop.f32.mrf.mxu1  ;;  %v7731_v6 = vpop.f32.mrf.mxu0 }
 0x37b   : > { %v2010_v19 = vadd.f32 %v1920_v16, %v7670_v23  ;;  %v1915_v21 = vadd.f32 %v5706_v14, %v1914_v18  ;;  %v2025_v23 = vld [vmem:[#allocation11 + $0xb0] sm:$0xff] }
 0x37d   : > { %v2012_v22 = vmul.f32 %v2010_v19, %v7667_v20  ;;  %v2009_v24 = vadd.f32 %v1915_v21, %v7675_v25 }
 0x37f   : > { %2014 = vst.msk [vmem:[#allocation2 + $0x10] sm:$0xff] %vm848_vm2, %v2012_v22  ;;  %v2011_v26 = vmul.f32 %v2009_v24, %v7665_v17 }
 0x381   : > { %2013 = vst.msk [vmem:[#allocation2 + $0x8] sm:$0xff] %vm848_vm2, %v2011_v26 }
 0x386   : > { %v2352_v46 = vld [vmem:[#allocation2 + $0x10] sm:$0xff] }
 0x387   : > { %v2524_v56 = vld [vmem:[#allocation2 + $0x11] sm:$0xff] }
 0x388   : > { %v2027_v27 = vld [vmem:[#allocation2 + $0x7] sm:$0xff]  ;;  %v2028_v28 = vld [vmem:[#allocation2 + $0xf] sm:$0xff] }
 0x389   : > { %6256 = vmatprep.mubr.msk.f32.mxu1 %vm848_vm2, %v2027_v27  ;;  %6267 = vmatprep.mubr.msk.f32.mxu0 %vm848_vm2, %v2027_v27  ;;  %v2015_v25 = vld [vmem:[#allocation2 + $0x6] sm:$0xff]  ;;  %v2016_v36 = vld [vmem:[#allocation2 + $0xe] sm:$0xff] }
 0x38a   : > { %6257 = vmatmul.mubr.msk.f32.vlgmr.msra.gmra.mxu1 %vm848_vm2, %v2028_v28  ;;  %6268 = vmatmul.mubr.msk.f32.vlgmr.msra.gmra.mxu0 %vm848_vm2, %v2028_v28  ;;  %v2351_v37 = vld [vmem:[#allocation2 + $0x8] sm:$0xff]  ;;  %v2696_v0 = vld [vmem:[#allocation2 + $0x12] sm:$0xff] }
 0x38b   : > { %6271 = vmatpush3.msra.mxu1 %v2021_v12  ;;  %6282 = vmatpush3.msra.mxu0 %v2026_v13  ;;  %v2523_v47 = vld [vmem:[#allocation2 + $0x9] sm:$0xff] }
 0x38c   : > { %6272 = vmatprep.subr.mxu1 %v2020_v29  ;;  %6278 = vmatprep.mubr.msk.f32.mxu1 %vm848_vm2, %v2015_v25  ;;  %v2695_v57 = vld [vmem:[#allocation2 + $0xa] sm:$0xff] }
 0x38d   : > { %6283 = vmatprep.subr.mxu0 %v2025_v23  ;;  %6289 = vmatprep.mubr.msk.f32.mxu0 %vm848_vm2, %v2015_v25 }
 0x38e   : > { %6273 = vmatpush3.msra.mxu1 %v2020_v29  ;;  %6284 = vmatpush3.msra.mxu0 %v2025_v23 }
 0x38f   : > { %6274 = vmatprep.subr.mxu1 %v2019_v30  ;;  %6285 = vmatprep.subr.mxu0 %v2024_v31 }
 0x390   : > { %6275 = vmatpush3.msra.mxu1 %v2019_v30  ;;  %6286 = vmatpush3.msra.mxu0 %v2024_v31 }
 0x391   : > { %6276 = vmatprep.subr.mxu1 %v2018_v32  ;;  %6287 = vmatprep.subr.mxu0 %v2023_v33 }
 0x392   : > { %6277 = vmatpush3.msra.mxu1 %v2018_v32  ;;  %6288 = vmatpush3.msra.mxu0 %v2023_v33 }
 0x393   : > { %6279 = vmatmul.mubr.msk.f32.vlgmr.msra.gmra.mxu1 %vm848_vm2, %v2016_v36  ;;  %6290 = vmatmul.mubr.msk.f32.vlgmr.msra.gmra.mxu0 %vm848_vm2, %v2016_v36 }
 0x394   : > { %6292 = vmatprep.subr.mxu1 %v2357_v34  ;;  %6303 = vmatprep.subr.mxu0 %v2443_v35 }
 0x395   : > { %6293 = vmatpush3.msra.mxu1 %v2357_v34  ;;  %6300 = vmatprep.mubr.msk.f32.mxu1 %vm848_vm2, %v2351_v37  ;;  %v5733_v34 = vld [vmem:[#allocation12 + $0x1] ss:$0 sm:$0xff] }
 0x396   : > { %6304 = vmatpush3.msra.mxu0 %v2443_v35  ;;  %6311 = vmatprep.mubr.msk.f32.mxu0 %vm848_vm2, %v2351_v37 }
 0x397   : > { %6294 = vmatprep.subr.mxu1 %v2356_v38  ;;  %6305 = vmatprep.subr.mxu0 %v2442_v39 }
 0x398   : > { %6295 = vmatpush3.msra.mxu1 %v2356_v38  ;;  %6306 = vmatpush3.msra.mxu0 %v2442_v39 }
 0x399   : > { %6296 = vmatprep.subr.mxu1 %v2355_v40  ;;  %6307 = vmatprep.subr.mxu0 %v2441_v41 }
 0x39a   : > { %6297 = vmatpush3.msra.mxu1 %v2355_v40  ;;  %6308 = vmatpush3.msra.mxu0 %v2441_v41 }
 0x39b   : > { %6298 = vmatprep.subr.mxu1 %v2354_v42  ;;  %6309 = vmatprep.subr.mxu0 %v2440_v43 }
 0x39c   : > { %6299 = vmatpush3.msra.mxu1 %v2354_v42  ;;  %6310 = vmatpush3.msra.mxu0 %v2440_v43 }
 0x39d   : > { %6301 = vmatmul.mubr.msk.f32.vlgmr.msra.gmra.mxu1 %vm848_vm2, %v2352_v46  ;;  %6312 = vmatmul.mubr.msk.f32.vlgmr.msra.gmra.mxu0 %vm848_vm2, %v2352_v46 }
 0x39e   : > { %6314 = vmatprep.subr.mxu1 %v2529_v44  ;;  %6325 = vmatprep.subr.mxu0 %v2615_v45 }
 0x39f   : > { %6315 = vmatpush3.msra.mxu1 %v2529_v44  ;;  %6322 = vmatprep.mubr.msk.f32.mxu1 %vm848_vm2, %v2523_v47 }
 0x3a0   : > { %6326 = vmatpush3.msra.mxu0 %v2615_v45  ;;  %6333 = vmatprep.mubr.msk.f32.mxu0 %vm848_vm2, %v2523_v47 }
 0x3a1   : > { %6316 = vmatprep.subr.mxu1 %v2528_v48  ;;  %6327 = vmatprep.subr.mxu0 %v2614_v49 }
 0x3a2   : > { %6317 = vmatpush3.msra.mxu1 %v2528_v48  ;;  %6328 = vmatpush3.msra.mxu0 %v2614_v49  ;;  %v5732_v49 = vld [vmem:[#allocation9 + $0x1] ss:$0 sm:$0xff] }
 0x3a3   : > { %6318 = vmatprep.subr.mxu1 %v2527_v50  ;;  %6329 = vmatprep.subr.mxu0 %v2613_v51 }
 0x3a4   : > { %6319 = vmatpush3.msra.mxu1 %v2527_v50  ;;  %6330 = vmatpush3.msra.mxu0 %v2613_v51 }
 0x3a5   : > { %6320 = vmatprep.subr.mxu1 %v2526_v52  ;;  %6331 = vmatprep.subr.mxu0 %v2612_v53 }
 0x3a6   : > { %6321 = vmatpush3.msra.mxu1 %v2526_v52  ;;  %6332 = vmatpush3.msra.mxu0 %v2612_v53 }
 0x3a7   : > { %6323 = vmatmul.mubr.msk.f32.vlgmr.msra.gmra.mxu1 %vm848_vm2, %v2524_v56  ;;  %6334 = vmatmul.mubr.msk.f32.vlgmr.msra.gmra.mxu0 %vm848_vm2, %v2524_v56 }
 0x3a8   : > { %6336 = vmatprep.subr.mxu1 %v2701_v54  ;;  %6347 = vmatprep.subr.mxu0 %v2787_v55 }
 0x3a9   : > { %6337 = vmatpush3.msra.mxu1 %v2701_v54  ;;  %6344 = vmatprep.mubr.msk.f32.mxu1 %vm848_vm2, %v2695_v57 }
 0x3aa   : > { %6348 = vmatpush3.msra.mxu0 %v2787_v55  ;;  %6355 = vmatprep.mubr.msk.f32.mxu0 %vm848_vm2, %v2695_v57 }
 0x3ab   : > { %6338 = vmatprep.subr.mxu1 %v2700_v58  ;;  %6349 = vmatprep.subr.mxu0 %v2786_v59 }
 0x3ac   : > { %6339 = vmatpush3.msra.mxu1 %v2700_v58  ;;  %6350 = vmatpush3.msra.mxu0 %v2786_v59 }
 0x3ad   : > { %6340 = vmatprep.subr.mxu1 %v2699_v60  ;;  %6351 = vmatprep.subr.mxu0 %v2785_v61 }
 0x3ae   : > { %6341 = vmatpush3.msra.mxu1 %v2699_v60  ;;  %6352 = vmatpush3.msra.mxu0 %v2785_v61 }
 0x3af   : > { %6342 = vmatprep.subr.mxu1 %v2698_v62  ;;  %6353 = vmatprep.subr.mxu0 %v2784_v63 }
 0x3b0   : > { %6343 = vmatpush3.msra.mxu1 %v2698_v62  ;;  %6354 = vmatpush3.msra.mxu0 %v2784_v63  ;;  %v3017_v63 = vld [vmem:[#allocation8 + $0x178] sm:$0xff] }
 0x3b1   : > { %6345 = vmatmul.mubr.msk.f32.vlgmr.msra.gmra.mxu1 %vm848_vm2, %v2696_v0  ;;  %6356 = vmatmul.mubr.msk.f32.vlgmr.msra.gmra.mxu0 %vm848_vm2, %v2696_v0  ;;  %v3103_v0 = vld [vmem:[#allocation11 + $0x178] sm:$0xff] }
 0x3b2   : > { %6358 = vmatprep.subr.mxu1 %v2903_v1  ;;  %6369 = vmatprep.subr.mxu0 %v3017_v63 }
 0x3b3   : > { %6359 = vmatpush3.msra.mxu1 %v2903_v1  ;;  %v3016_v1 = vld [vmem:[#allocation8 + $0x170] sm:$0xff]  ;;  %6370 = vmatpush3.msra.mxu0 %v3017_v63  ;;  %v3887_v63 = vld [vmem:[#allocation14 + $0x58] sm:$0xff] }
 0x3b4   : > { %6360 = vmatprep.subr.mxu1 %v2902_v2  ;;  %6371 = vmatprep.subr.mxu0 %v3016_v1 }
 0x3b5   : > { %6361 = vmatpush3.msra.mxu1 %v2902_v2  ;;  %v3102_v2 = vld [vmem:[#allocation11 + $0x170] sm:$0xff]  ;;  %6372 = vmatpush3.msra.mxu0 %v3016_v1 }
 0x3b6   : > { %6362 = vmatprep.subr.mxu1 %v2901_v3  ;;  %v3886_v1 = vld [vmem:[#allocation14 + $0x50] sm:$0xff] }
 0x3b7   : > { %6363 = vmatpush3.msra.mxu1 %v2901_v3  ;;  %v3015_v3 = vld [vmem:[#allocation8 + $0x168] sm:$0xff] }
 0x3b8   : > { %6364 = vmatprep.subr.mxu1 %v2900_v4  ;;  %6373 = vmatprep.subr.mxu0 %v3015_v3 }
 0x3b9   : > { %6365 = vmatpush3.msra.mxu1 %v2900_v4  ;;  %v3101_v4 = vld [vmem:[#allocation11 + $0x168] sm:$0xff]  ;;  %6374 = vmatpush3.msra.mxu0 %v3015_v3 }
 0x3ba   : > { %6380 = vmatprep.subr.mxu1 %v3103_v0  ;;  %v3885_v3 = vld [vmem:[#allocation14 + $0x48] sm:$0xff] }
 0x44a   : > { %v6258_v7 = vpop.f32.mrf.mxu1  ;;  %v6269_v8 = vpop.f32.mrf.mxu0 }
 0x44c   : > { %v2106_v9 = vpop.f32.mrf.mxu1  ;;  %v2186_v10 = vpop.f32.mrf.mxu0 }
 0x453   : > { %v6280_v11 = vpop.f32.mrf.mxu1  ;;  %v6291_v12 = vpop.f32.mrf.mxu0 }
 0x454   : > { %v2348_v24 = vadd.f32 %v6291_v12, %v6269_v8  ;;  %v2273_v31 = vadd.f32 %v6280_v11, %v6258_v7  ;;  %v3014_v7 = vld [vmem:[#allocation8 + $0x160] sm:$0xff]  ;;  %v5709_v11 = vld [vmem:[#allocation18] ss:$0 sm:$0xff]  ;;  %v5734_v12 = vld [vmem:[#allocation15 + $0x1] ss:$0 sm:$0xff] }
 0x455   : > { %v2267_v13 = vpop.f32.mrf.mxu1  ;;  %v2342_v14 = vpop.f32.mrf.mxu0  ;;  %v3100_v8 = vld [vmem:[#allocation11 + $0x160] sm:$0xff]  ;;  %6375 = vmatprep.subr.mxu0 %v3014_v7 }
 0x456   : > { %v2343_v26 = vadd.f32 %v2342_v14, %v2186_v10  ;;  %v2268_v23 = vadd.f32 %v2267_v13, %v2106_v9  ;;  %6376 = vmatpush3.msra.mxu0 %v3014_v7  ;;  %v3005_v9 = vld [vmem:[#allocation8 + $0x158] sm:$0xff]  ;;  %v2006_v14 = vadd.f32 %v7729_v5, %v5709_v11  ;;  %v3884_v7 = vld [vmem:[#allocation14 + $0x40] sm:$0xff] }
 0x457   : > { %v3010_v10 = vld [vmem:[#allocation11 + $0x158] sm:$0xff]  ;;  %6391 = vmatprep.subr.mxu0 %v3005_v9 }
 0x45d   : > { %v6302_v15 = vpop.f32.mrf.mxu1  ;;  %v6313_v16 = vpop.f32.mrf.mxu0 }
 0x45e   : > { %v2522_v27 = vadd.f32 %v6313_v16, %v2348_v24  ;;  %v2520_v38 = vadd.f32 %v6302_v15, %v2273_v31  ;;  %v3007_v31 = vld [vmem:[#allocation11 + $0x140] sm:$0xff] }
 0x45f   : > { %v2430_v18 = vpop.f32.mrf.mxu1  ;;  %v2510_v19 = vpop.f32.mrf.mxu0 }
 0x460   : > { %v2521_v25 = vadd.f32 %v2510_v19, %v2343_v26  ;;  %v2519_v35 = vadd.f32 %v2430_v18, %v2268_v23  ;;  %v2001_v18 = vadd.f32 %v5709_v11, %v7731_v6  ;;  %v3004_v6 = vld [vmem:[#allocation8 + $0x150] sm:$0xff]  ;;  %v3003_v23 = vld [vmem:[#allocation8 + $0x148] sm:$0xff] }
 0x467   : > { %v6324_v21 = vpop.f32.mrf.mxu1  ;;  %v6335_v22 = vpop.f32.mrf.mxu0 }
 0x468   : > { %v2694_v30 = vadd.f32 %v6335_v22, %v2522_v27  ;;  %v2692_v44 = vadd.f32 %v6324_v21, %v2520_v38  ;;  %v3339_v38 = vld [vmem:[#allocation8 + $0x188] sm:$0xff] }
 0x469   : > { %v2602_v28 = vpop.f32.mrf.mxu1  ;;  %v2682_v29 = vpop.f32.mrf.mxu0 }
 0x46a   : > { %v2693_v36 = vadd.f32 %v2682_v29, %v2521_v25  ;;  %v2691_v41 = vadd.f32 %v2602_v28, %v2519_v35  ;;  %v3009_v28 = vld [vmem:[#allocation11 + $0x150] sm:$0xff]  ;;  %v3008_v25 = vld [vmem:[#allocation11 + $0x148] sm:$0xff] }
 0x471   : > { %v6346_v32 = vpop.f32.mrf.mxu1  ;;  %v6357_v33 = vpop.f32.mrf.mxu0 }
 0x472   : > { %v2866_v37 = vadd.f32 %v6357_v33, %v2694_v30  ;;  %v2864_v48 = vadd.f32 %v6346_v32, %v2692_v44  ;;  %v3002_v30 = vld [vmem:[#allocation8 + $0x140] sm:$0xff]  ;;  %v3341_v32 = vld [vmem:[#allocation8 + $0x198] sm:$0xff] }
 0x473   : > { %v2774_v39 = vpop.f32.mrf.mxu1  ;;  %v2854_v40 = vpop.f32.mrf.mxu0  ;;  %v3427_v33 = vld [vmem:[#allocation11 + $0x198] sm:$0xff] }
 0x474   : > { %v2886_v42 = vadd.f32 %v5733_v34, %v2866_v37  ;;  %v2865_v43 = vadd.f32 %v2854_v40, %v2693_v36  ;;  %v2863_v46 = vadd.f32 %v2774_v39, %v2691_v41  ;;  %v2876_v52 = vadd.f32 %v5732_v49, %v2864_v48  ;;  %v3340_v36 = vld [vmem:[#allocation8 + $0x190] sm:$0xff]  ;;  %v3338_v40 = vld [vmem:[#allocation8 + $0x180] sm:$0xff]  ;;  %v3511_v48 = vld [vmem:[#allocation8 + $0x1a8] sm:$0xff] }
 0x475   : > { %v3426_v37 = vld [vmem:[#allocation11 + $0x190] sm:$0xff]  ;;  %v3425_v39 = vld [vmem:[#allocation11 + $0x188] sm:$0xff]  ;;  %v3424_v41 = vld [vmem:[#allocation11 + $0x180] sm:$0xff] }
 0x476   : > { %v2890_v45 = vmul.f32 0.5, %v2886_v42  ;;  %v2885_v47 = vadd.f32 %v5733_v34, %v2865_v43  ;;  %v2875_v51 = vadd.f32 %v5732_v49, %v2863_v46  ;;  %v3513_v42 = vld [vmem:[#allocation8 + $0x1b8] sm:$0xff]  ;;  %v3512_v46 = vld [vmem:[#allocation8 + $0x1b0] sm:$0xff] }
 0x477   : > { %v3599_v43 = vld [vmem:[#allocation11 + $0x1b8] sm:$0xff]  ;;  %v3597_v49 = vld [vmem:[#allocation11 + $0x1a8] sm:$0xff] }
 0x478   : > { %6853 = vtanh.f32 %v2890_v45  ;;  %v2889_v50 = vmul.f32 0.5, %v2885_v47  ;;  %v3598_v47 = vld [vmem:[#allocation11 + $0x1b0] sm:$0xff] }
 0x47a   : > { %6855 = vtanh.f32 %v2889_v50  ;;  %v3510_v50 = vld [vmem:[#allocation8 + $0x1a0] sm:$0xff] }
 0x47b   : > { %6857 = vtanh.f32 %v2875_v51  ;;  %v3596_v51 = vld [vmem:[#allocation11 + $0x1a0] sm:$0xff] }
 0x47c   : > { %6859 = vtanh.f32 %v2876_v52  ;;  %v3685_v52 = vld [vmem:[#allocation8 + $0x1d8] sm:$0xff] }
 0x485   : > { %v6854_v53 = vpop.eup %6853 }
 0x486   : > { %v2894_v54 = vadd.f32 1.0, %v6854_v53  ;;  %v3771_v53 = vld [vmem:[#allocation11 + $0x1d8] sm:$0xff] }
 0x487   : > { %v6856_v55 = vpop.eup %6855 }
 0x488   : > { %v2893_v56 = vadd.f32 1.0, %v6856_v55  ;;  %v2896_v57 = vmul.f32 0.5, %v2894_v54  ;;  %v6858_v59 = vpop.eup %6857 }
 0x489   : > { %v6860_v60 = vpop.eup %6859 }
 0x48a   : > { %v2895_v58 = vmul.f32 0.5, %v2893_v56  ;;  %v2898_v62 = vmul.f32 %v6860_v60, %v2896_v57  ;;  %v3684_v56 = vld [vmem:[#allocation8 + $0x1d0] sm:$0xff]  ;;  %v3682_v60 = vld [vmem:[#allocation8 + $0x1c0] sm:$0xff] }
 0x48b   : > { %v3770_v57 = vld [vmem:[#allocation11 + $0x1d0] sm:$0xff] }
 0x48c   : > { %v2897_v61 = vmul.f32 %v6858_v59, %v2895_v58  ;;  %v3683_v58 = vld [vmem:[#allocation8 + $0x1c8] sm:$0xff] }
 0x48d   : > { %v3769_v59 = vld [vmem:[#allocation11 + $0x1c8] sm:$0xff] }
 0x48e   : > { %6366 = vmatprep.mubr.msk.f32.mxu1 %vm848_vm2, %v2897_v61  ;;  %v3768_v61 = vld [vmem:[#allocation11 + $0x1c0] sm:$0xff] }
 0x48f   : > { %6367 = vmatmul.mubr.msk.f32.vlgmr.msra.gmra.mxu1 %vm848_vm2, %v2898_v62 }
 0x490   : > { %6381 = vmatpush3.msra.mxu1 %v3103_v0  ;;  %v3981_v0 = vld [vmem:[#allocation17 + $0x58] sm:$0xff] }
 0x491   : > { %6382 = vmatprep.subr.mxu1 %v3102_v2 }
 0x492   : > { %6383 = vmatpush3.msra.mxu1 %v3102_v2  ;;  %v3980_v2 = vld [vmem:[#allocation17 + $0x50] sm:$0xff] }
 0x493   : > { %6384 = vmatprep.subr.mxu1 %v3101_v4 }
 0x494   : > { %6385 = vmatpush3.msra.mxu1 %v3101_v4  ;;  %v3979_v4 = vld [vmem:[#allocation17 + $0x48] sm:$0xff] }
 0x495   : > { %6386 = vmatprep.subr.mxu1 %v3100_v8 }
 0x496   : > { %6387 = vmatpush3.msra.mxu1 %v3100_v8  ;;  %v3978_v8 = vld [vmem:[#allocation17 + $0x40] sm:$0xff] }
 0x497   : > { %6402 = vmatprep.subr.mxu1 %v3010_v10 }
 0x54f   : > { %v6368_v13 = vpop.f32.mrf.mxu1 }
 0x550   : > { %v2990_v15 = vadd.f32 %v6368_v13, %v5734_v12 }
 0x551   : > { %v2984_v16 = vpop.f32.mrf.mxu1 }
 0x552   : > { %v2994_v19 = vadd.f32 %v2990_v15, %v2006_v14  ;;  %v2985_v21 = vadd.f32 %v5734_v12, %v2984_v16 }
 0x554   : > { %v7738_v22 = vmul.f32 %v2994_v19, %v7667_v20  ;;  %v2993_v24 = vadd.f32 %v2985_v21, %v2001_v18 }
 0x556   : > { %2998 = vst.msk [vmem:[#allocation2 + $0x10] sm:$0xff] %vm848_vm2, %v7738_v22  ;;  %v7743_v26 = vmul.f32 %v2993_v24, %v7665_v17 }
 0x558   : > { %2997 = vst.msk [vmem:[#allocation2 + $0x8] sm:$0xff] %vm848_vm2, %v7743_v26 }
 0x55d   : > { %v3336_v44 = vld [vmem:[#allocation2 + $0x10] sm:$0xff] }
 0x55e   : > { %v3508_v54 = vld [vmem:[#allocation2 + $0x11] sm:$0xff] }
 0x55f   : > { %v3011_v5 = vld [vmem:[#allocation2 + $0x7] sm:$0xff]  ;;  %v3012_v27 = vld [vmem:[#allocation2 + $0xf] sm:$0xff] }
 0x560   : > { %6377 = vmatprep.mubr.msk.f32.mxu0 %vm848_vm2, %v3011_v5  ;;  %6388 = vmatprep.mubr.msk.f32.mxu1 %vm848_vm2, %v3011_v5  ;;  %v2999_v29 = vld [vmem:[#allocation2 + $0x6] sm:$0xff]  ;;  %v3000_v34 = vld [vmem:[#allocation2 + $0xe] sm:$0xff] }
 0x561   : > { %6378 = vmatmul.mubr.msk.f32.vlgmr.msra.gmra.mxu0 %vm848_vm2, %v3012_v27  ;;  %6389 = vmatmul.mubr.msk.f32.vlgmr.msra.gmra.mxu1 %vm848_vm2, %v3012_v27  ;;  %v3335_v35 = vld [vmem:[#allocation2 + $0x8] sm:$0xff]  ;;  %v3680_v62 = vld [vmem:[#allocation2 + $0x12] sm:$0xff] }
 0x562   : > { %6392 = vmatpush3.msra.mxu0 %v3005_v9  ;;  %6403 = vmatpush3.msra.mxu1 %v3010_v10  ;;  %v3507_v45 = vld [vmem:[#allocation2 + $0x9] sm:$0xff] }
 0x563   : > { %6393 = vmatprep.subr.mxu0 %v3004_v6  ;;  %6399 = vmatprep.mubr.msk.f32.mxu0 %vm848_vm2, %v2999_v29  ;;  %v3679_v55 = vld [vmem:[#allocation2 + $0xa] sm:$0xff] }
 0x564   : > { %6404 = vmatprep.subr.mxu1 %v3009_v28  ;;  %6410 = vmatprep.mubr.msk.f32.mxu1 %vm848_vm2, %v2999_v29 }
 0x565   : > { %6394 = vmatpush3.msra.mxu0 %v3004_v6  ;;  %6405 = vmatpush3.msra.mxu1 %v3009_v28 }
 0x566   : > { %6395 = vmatprep.subr.mxu0 %v3003_v23  ;;  %6406 = vmatprep.subr.mxu1 %v3008_v25 }
 0x567   : > { %6396 = vmatpush3.msra.mxu0 %v3003_v23  ;;  %6407 = vmatpush3.msra.mxu1 %v3008_v25 }
 0x568   : > { %6397 = vmatprep.subr.mxu0 %v3002_v30  ;;  %6408 = vmatprep.subr.mxu1 %v3007_v31 }
 0x569   : > { %6398 = vmatpush3.msra.mxu0 %v3002_v30  ;;  %6409 = vmatpush3.msra.mxu1 %v3007_v31 }
 0x56a   : > { %6400 = vmatmul.mubr.msk.f32.vlgmr.msra.gmra.mxu0 %vm848_vm2, %v3000_v34  ;;  %6411 = vmatmul.mubr.msk.f32.vlgmr.msra.gmra.mxu1 %vm848_vm2, %v3000_v34 }
 0x56b   : > { %6413 = vmatprep.subr.mxu0 %v3341_v32  ;;  %6424 = vmatprep.subr.mxu1 %v3427_v33 }
 0x56c   : > { %6414 = vmatpush3.msra.mxu0 %v3341_v32  ;;  %6421 = vmatprep.mubr.msk.f32.mxu0 %vm848_vm2, %v3335_v35 }
 0x56d   : > { %6425 = vmatpush3.msra.mxu1 %v3427_v33  ;;  %6432 = vmatprep.mubr.msk.f32.mxu1 %vm848_vm2, %v3335_v35 }
 0x56e   : > { %6415 = vmatprep.subr.mxu0 %v3340_v36  ;;  %6426 = vmatprep.subr.mxu1 %v3426_v37 }
 0x56f   : > { %6416 = vmatpush3.msra.mxu0 %v3340_v36  ;;  %6427 = vmatpush3.msra.mxu1 %v3426_v37  ;;  %v5758_v36 = vld [vmem:[#allocation12 + $0x2] ss:$0 sm:$0xff] }
 0x570   : > { %6417 = vmatprep.subr.mxu0 %v3339_v38  ;;  %6428 = vmatprep.subr.mxu1 %v3425_v39 }
 0x571   : > { %6418 = vmatpush3.msra.mxu0 %v3339_v38  ;;  %6429 = vmatpush3.msra.mxu1 %v3425_v39 }
 0x572   : > { %6419 = vmatprep.subr.mxu0 %v3338_v40  ;;  %6430 = vmatprep.subr.mxu1 %v3424_v41 }
 0x573   : > { %6420 = vmatpush3.msra.mxu0 %v3338_v40  ;;  %6431 = vmatpush3.msra.mxu1 %v3424_v41 }
 0x574   : > { %6422 = vmatmul.mubr.msk.f32.vlgmr.msra.gmra.mxu0 %vm848_vm2, %v3336_v44  ;;  %6433 = vmatmul.mubr.msk.f32.vlgmr.msra.gmra.mxu1 %vm848_vm2, %v3336_v44 }
 0x575   : > { %6435 = vmatprep.subr.mxu0 %v3513_v42  ;;  %6446 = vmatprep.subr.mxu1 %v3599_v43 }
 0x576   : > { %6436 = vmatpush3.msra.mxu0 %v3513_v42  ;;  %6443 = vmatprep.mubr.msk.f32.mxu0 %vm848_vm2, %v3507_v45 }
 0x577   : > { %6447 = vmatpush3.msra.mxu1 %v3599_v43  ;;  %6454 = vmatprep.mubr.msk.f32.mxu1 %vm848_vm2, %v3507_v45 }
 0x578   : > { %6437 = vmatprep.subr.mxu0 %v3512_v46  ;;  %6448 = vmatprep.subr.mxu1 %v3598_v47 }
 0x579   : > { %6438 = vmatpush3.msra.mxu0 %v3512_v46  ;;  %6449 = vmatpush3.msra.mxu1 %v3598_v47 }
 0x57a   : > { %6439 = vmatprep.subr.mxu0 %v3511_v48  ;;  %6450 = vmatprep.subr.mxu1 %v3597_v49 }
 0x57b   : > { %6440 = vmatpush3.msra.mxu0 %v3511_v48  ;;  %6451 = vmatpush3.msra.mxu1 %v3597_v49 }
 0x57c   : > { %6441 = vmatprep.subr.mxu0 %v3510_v50  ;;  %6452 = vmatprep.subr.mxu1 %v3596_v51 }
 0x57d   : > { %6442 = vmatpush3.msra.mxu0 %v3510_v50  ;;  %6453 = vmatpush3.msra.mxu1 %v3596_v51  ;;  %v5757_v51 = vld [vmem:[#allocation9 + $0x2] ss:$0 sm:$0xff] }
 0x57e   : > { %6444 = vmatmul.mubr.msk.f32.vlgmr.msra.gmra.mxu0 %vm848_vm2, %v3508_v54  ;;  %6455 = vmatmul.mubr.msk.f32.vlgmr.msra.gmra.mxu1 %vm848_vm2, %v3508_v54 }
 0x57f   : > { %6457 = vmatprep.subr.mxu0 %v3685_v52  ;;  %6468 = vmatprep.subr.mxu1 %v3771_v53 }
 0x580   : > { %6458 = vmatpush3.msra.mxu0 %v3685_v52  ;;  %6465 = vmatprep.mubr.msk.f32.mxu0 %vm848_vm2, %v3679_v55 }
 0x581   : > { %6469 = vmatpush3.msra.mxu1 %v3771_v53  ;;  %6476 = vmatprep.mubr.msk.f32.mxu1 %vm848_vm2, %v3679_v55 }
 0x582   : > { %6459 = vmatprep.subr.mxu0 %v3684_v56  ;;  %6470 = vmatprep.subr.mxu1 %v3770_v57 }
 0x583   : > { %6460 = vmatpush3.msra.mxu0 %v3684_v56  ;;  %6471 = vmatpush3.msra.mxu1 %v3770_v57 }
 0x584   : > { %6461 = vmatprep.subr.mxu0 %v3683_v58  ;;  %6472 = vmatprep.subr.mxu1 %v3769_v59 }
 0x585   : > { %6462 = vmatpush3.msra.mxu0 %v3683_v58  ;;  %6473 = vmatpush3.msra.mxu1 %v3769_v59 }
 0x586   : > { %6463 = vmatprep.subr.mxu0 %v3682_v60  ;;  %6474 = vmatprep.subr.mxu1 %v3768_v61 }
 0x587   : > { %6464 = vmatpush3.msra.mxu0 %v3682_v60  ;;  %6475 = vmatpush3.msra.mxu1 %v3768_v61 }
 0x588   : > { %6466 = vmatmul.mubr.msk.f32.vlgmr.msra.gmra.mxu0 %vm848_vm2, %v3680_v62  ;;  %6477 = vmatmul.mubr.msk.f32.vlgmr.msra.gmra.mxu1 %vm848_vm2, %v3680_v62 }
 0x589   : > { %6479 = vmatprep.subr.mxu0 %v3887_v63  ;;  %6490 = vmatprep.subr.mxu1 %v3981_v0 }
 0x58a   : > { %6480 = vmatpush3.msra.mxu0 %v3887_v63  ;;  %6491 = vmatpush3.msra.mxu1 %v3981_v0 }
 0x58b   : > { %6481 = vmatprep.subr.mxu0 %v3886_v1  ;;  %6492 = vmatprep.subr.mxu1 %v3980_v2 }
 0x58c   : > { %6482 = vmatpush3.msra.mxu0 %v3886_v1  ;;  %6493 = vmatpush3.msra.mxu1 %v3980_v2  ;;  %v4089_v1 = vld [vmem:[#allocation8 + $0x218] sm:$0xff] }
 0x58d   : > { %6483 = vmatprep.subr.mxu0 %v3885_v3  ;;  %6494 = vmatprep.subr.mxu1 %v3979_v4  ;;  %v4175_v2 = vld [vmem:[#allocation11 + $0x218] sm:$0xff] }
 0x58e   : > { %6484 = vmatpush3.msra.mxu0 %v3885_v3  ;;  %6495 = vmatpush3.msra.mxu1 %v3979_v4  ;;  %v4088_v3 = vld [vmem:[#allocation8 + $0x210] sm:$0xff] }
 0x58f   : > { %6485 = vmatprep.subr.mxu0 %v3884_v7  ;;  %6496 = vmatprep.subr.mxu1 %v3978_v8  ;;  %v4174_v4 = vld [vmem:[#allocation11 + $0x210] sm:$0xff] }
 0x590   : > { %6486 = vmatpush3.msra.mxu0 %v3884_v7  ;;  %6497 = vmatpush3.msra.mxu1 %v3978_v8  ;;  %v4087_v7 = vld [vmem:[#allocation8 + $0x208] sm:$0xff] }
 0x591   : > { %6501 = vmatprep.subr.mxu0 %v4089_v1  ;;  %6512 = vmatprep.subr.mxu1 %v4175_v2  ;;  %v4173_v8 = vld [vmem:[#allocation11 + $0x208] sm:$0xff] }
 0x621   : > { %v6379_v9 = vpop.f32.mrf.mxu0  ;;  %v6390_v10 = vpop.f32.mrf.mxu1 }
 0x623   : > { %v3090_v11 = vpop.f32.mrf.mxu0  ;;  %v3170_v12 = vpop.f32.mrf.mxu1 }
 0x62a   : > { %v6401_v13 = vpop.f32.mrf.mxu0  ;;  %v6412_v14 = vpop.f32.mrf.mxu1 }
 0x62b   : > { %v3332_v6 = vadd.f32 %v6412_v14, %v6390_v10  ;;  %v3257_v33 = vadd.f32 %v6401_v13, %v6379_v9  ;;  %v4086_v9 = vld [vmem:[#allocation8 + $0x200] sm:$0xff]  ;;  %v5759_v13 = vld [vmem:[#allocation15 + $0x2] ss:$0 sm:$0xff] }
 0x62c   : > { %v3251_v15 = vpop.f32.mrf.mxu0  ;;  %v3326_v16 = vpop.f32.mrf.mxu1  ;;  %v4172_v10 = vld [vmem:[#allocation11 + $0x200] sm:$0xff] }
 0x62d   : > { %v3327_v28 = vadd.f32 %v3326_v16, %v3170_v12  ;;  %v3252_v30 = vadd.f32 %v3251_v15, %v3090_v11  ;;  %v4077_v11 = vld [vmem:[#allocation8 + $0x1f8] sm:$0xff] }
 0x62e   : > { %v4082_v12 = vld [vmem:[#allocation11 + $0x1f8] sm:$0xff] }
 0x634   : > { %v6423_v18 = vpop.f32.mrf.mxu0  ;;  %v6434_v19 = vpop.f32.mrf.mxu1 }
 0x635   : > { %v3506_v29 = vadd.f32 %v6434_v19, %v3332_v6  ;;  %v3504_v40 = vadd.f32 %v6423_v18, %v3257_v33 }
 0x636   : > { %v3414_v21 = vpop.f32.mrf.mxu0  ;;  %v3494_v24 = vpop.f32.mrf.mxu1 }
 0x637   : > { %v3505_v31 = vadd.f32 %v3494_v24, %v3327_v28  ;;  %v3503_v37 = vadd.f32 %v3414_v21, %v3252_v30  ;;  %v4076_v28 = vld [vmem:[#allocation8 + $0x1f0] sm:$0xff]  ;;  %v4079_v30 = vld [vmem:[#allocation11 + $0x1e0] sm:$0xff] }
 0x63e   : > { %v6445_v5 = vpop.f32.mrf.mxu0  ;;  %v6456_v27 = vpop.f32.mrf.mxu1 }
 0x63f   : > { %v3678_v32 = vadd.f32 %v6456_v27, %v3506_v29  ;;  %v3676_v46 = vadd.f32 %v6445_v5, %v3504_v40  ;;  %v4075_v29 = vld [vmem:[#allocation8 + $0x1e8] sm:$0xff] }
 0x640   : > { %v3586_v23 = vpop.f32.mrf.mxu0  ;;  %v3666_v25 = vpop.f32.mrf.mxu1  ;;  %v4496_v40 = vld [vmem:[#allocation11 + $0x220] sm:$0xff] }
 0x641   : > { %v3677_v38 = vadd.f32 %v3666_v25, %v3505_v31  ;;  %v3675_v43 = vadd.f32 %v3586_v23, %v3503_v37  ;;  %v4080_v23 = vld [vmem:[#allocation11 + $0x1e8] sm:$0xff]  ;;  %v4074_v25 = vld [vmem:[#allocation8 + $0x1e0] sm:$0xff]  ;;  %v4413_v31 = vld [vmem:[#allocation8 + $0x238] sm:$0xff] }
 0x642   : > { %v4411_v37 = vld [vmem:[#allocation8 + $0x228] sm:$0xff] }
 0x648   : > { %v6467_v34 = vpop.f32.mrf.mxu0  ;;  %v6478_v35 = vpop.f32.mrf.mxu1 }
 0x649   : > { %v3850_v39 = vadd.f32 %v6478_v35, %v3678_v32  ;;  %v3848_v50 = vadd.f32 %v6467_v34, %v3676_v46  ;;  %v4499_v32 = vld [vmem:[#allocation11 + $0x238] sm:$0xff]  ;;  %v4412_v35 = vld [vmem:[#allocation8 + $0x230] sm:$0xff] }
 0x64a   : > { %v3758_v41 = vpop.f32.mrf.mxu0  ;;  %v3838_v42 = vpop.f32.mrf.mxu1  ;;  %v4670_v46 = vld [vmem:[#allocation11 + $0x250] sm:$0xff] }
 0x64b   : > { %v3870_v44 = vadd.f32 %v5758_v36, %v3850_v39  ;;  %v3849_v45 = vadd.f32 %v3838_v42, %v3677_v38  ;;  %v3847_v48 = vadd.f32 %v3758_v41, %v3675_v43  ;;  %v3860_v54 = vadd.f32 %v5757_v51, %v3848_v50  ;;  %v4497_v38 = vld [vmem:[#allocation11 + $0x228] sm:$0xff]  ;;  %v4410_v39 = vld [vmem:[#allocation8 + $0x220] sm:$0xff]  ;;  %v4585_v41 = vld [vmem:[#allocation8 + $0x258] sm:$0xff] }
 0x64c   : > { %v4671_v42 = vld [vmem:[#allocation11 + $0x258] sm:$0xff]  ;;  %v4668_v50 = vld [vmem:[#allocation11 + $0x240] sm:$0xff] }
 0x64d   : > { %v3874_v47 = vmul.f32 0.5, %v3870_v44  ;;  %v3869_v49 = vadd.f32 %v5758_v36, %v3849_v45  ;;  %v3859_v53 = vadd.f32 %v5757_v51, %v3847_v48  ;;  %v4498_v36 = vld [vmem:[#allocation11 + $0x230] sm:$0xff]  ;;  %v4669_v48 = vld [vmem:[#allocation11 + $0x248] sm:$0xff] }
 0x64e   : > { %v4584_v45 = vld [vmem:[#allocation8 + $0x250] sm:$0xff]  ;;  %v4757_v51 = vld [vmem:[#allocation8 + $0x278] sm:$0xff] }
 0x64f   : > { %6861 = vtanh.f32 %v3874_v47  ;;  %v3873_v52 = vmul.f32 0.5, %v3869_v49  ;;  %v4583_v47 = vld [vmem:[#allocation8 + $0x248] sm:$0xff]  ;;  %v4582_v49 = vld [vmem:[#allocation8 + $0x240] sm:$0xff] }
 0x651   : > { %6863 = vtanh.f32 %v3873_v52  ;;  %v4843_v52 = vld [vmem:[#allocation11 + $0x278] sm:$0xff] }
 0x652   : > { %6865 = vtanh.f32 %v3859_v53 }
 0x653   : > { %6867 = vtanh.f32 %v3860_v54 }
 0x65c   : > { %v6862_v55 = vpop.eup %6861 }
 0x65d   : > { %v3878_v56 = vadd.f32 1.0, %v6862_v55  ;;  %v4756_v55 = vld [vmem:[#allocation8 + $0x270] sm:$0xff] }
 0x65e   : > { %v6864_v57 = vpop.eup %6863 }
 0x65f   : > { %v3877_v58 = vadd.f32 1.0, %v6864_v57  ;;  %v3880_v59 = vmul.f32 0.5, %v3878_v56  ;;  %v6866_v61 = vpop.eup %6865  ;;  %v4842_v56 = vld [vmem:[#allocation11 + $0x270] sm:$0xff]  ;;  %v4755_v57 = vld [vmem:[#allocation8 + $0x268] sm:$0xff] }
 0x660   : > { %v6868_v62 = vpop.eup %6867 }
 0x661   : > { %v3879_v60 = vmul.f32 0.5, %v3877_v58  ;;  %v3882_v0 = vmul.f32 %v6868_v62, %v3880_v59  ;;  %v4841_v58 = vld [vmem:[#allocation11 + $0x268] sm:$0xff]  ;;  %v4754_v59 = vld [vmem:[#allocation8 + $0x260] sm:$0xff] }
 0x662   : > { %v4959_v62 = vld [vmem:[#allocation14 + $0x78] sm:$0xff] }
 0x663   : > { %v3881_v63 = vmul.f32 %v6866_v61, %v3879_v60  ;;  %v4840_v60 = vld [vmem:[#allocation11 + $0x260] sm:$0xff] }
 0x665   : > { %6487 = vmatprep.mubr.msk.f32.mxu0 %vm848_vm2, %v3881_v63  ;;  %6498 = vmatprep.mubr.msk.f32.mxu1 %vm848_vm2, %v3881_v63  ;;  %v4958_v63 = vld [vmem:[#allocation14 + $0x70] sm:$0xff] }
 0x666   : > { %6488 = vmatmul.mubr.msk.f32.vlgmr.msra.gmra.mxu0 %vm848_vm2, %v3882_v0  ;;  %6499 = vmatmul.mubr.msk.f32.vlgmr.msra.gmra.mxu1 %vm848_vm2, %v3882_v0  ;;  %v4957_v0 = vld [vmem:[#allocation14 + $0x68] sm:$0xff] }
 0x667   : > { %6502 = vmatpush3.msra.mxu0 %v4089_v1  ;;  %6513 = vmatpush3.msra.mxu1 %v4175_v2  ;;  %v4956_v1 = vld [vmem:[#allocation14 + $0x60] sm:$0xff] }
 0x668   : > { %6503 = vmatprep.subr.mxu0 %v4088_v3  ;;  %6514 = vmatprep.subr.mxu1 %v4174_v4 }
 0x669   : > { %6504 = vmatpush3.msra.mxu0 %v4088_v3  ;;  %6515 = vmatpush3.msra.mxu1 %v4174_v4 }
 0x66a   : > { %6505 = vmatprep.subr.mxu0 %v4087_v7  ;;  %6516 = vmatprep.subr.mxu1 %v4173_v8 }
 0x66b   : > { %6506 = vmatpush3.msra.mxu0 %v4087_v7  ;;  %6517 = vmatpush3.msra.mxu1 %v4173_v8 }
 0x66c   : > { %6507 = vmatprep.subr.mxu0 %v4086_v9  ;;  %6518 = vmatprep.subr.mxu1 %v4172_v10 }
 0x66d   : > { %6508 = vmatpush3.msra.mxu0 %v4086_v9  ;;  %6519 = vmatpush3.msra.mxu1 %v4172_v10 }
 0x66e   : > { %6523 = vmatprep.subr.mxu0 %v4077_v11  ;;  %6534 = vmatprep.subr.mxu1 %v4082_v12 }
 0x726   : > { %v6489_v14 = vpop.f32.mrf.mxu0  ;;  %v7797_v2 = vpop.f32.mrf.mxu1 }
 0x727   : > { %v3974_v15 = vadd.f32 %v6489_v14, %v5759_v13 }
 0x728   : > { %v3968_v16 = vpop.f32.mrf.mxu0  ;;  %v7799_v3 = vpop.f32.mrf.mxu1 }
 0x729   : > { %v4066_v18 = vadd.f32 %v3974_v15, %v7738_v22  ;;  %v3969_v19 = vadd.f32 %v5759_v13, %v3968_v16  ;;  %v4081_v22 = vld [vmem:[#allocation11 + $0x1f0] sm:$0xff] }
 0x72b   : > { %v4068_v21 = vmul.f32 %v4066_v18, %v7667_v20  ;;  %v4065_v24 = vadd.f32 %v3969_v19, %v7743_v26 }
 0x72d   : > { %4070 = vst.msk [vmem:[#allocation2 + $0x10] sm:$0xff] %vm848_vm2, %v4068_v21  ;;  %v4067_v5 = vmul.f32 %v4065_v24, %v7665_v17 }
 0x72f   : > { %4069 = vst.msk [vmem:[#allocation2 + $0x8] sm:$0xff] %vm848_vm2, %v4067_v5 }
 0x734   : > { %v4408_v43 = vld [vmem:[#allocation2 + $0x10] sm:$0xff] }
 0x735   : > { %v4580_v53 = vld [vmem:[#allocation2 + $0x11] sm:$0xff] }
 0x736   : > { %v4083_v27 = vld [vmem:[#allocation2 + $0x7] sm:$0xff]  ;;  %v4084_v6 = vld [vmem:[#allocation2 + $0xf] sm:$0xff] }
 0x737   : > { %6509 = vmatprep.mubr.msk.f32.mxu0 %vm848_vm2, %v4083_v27  ;;  %6520 = vmatprep.mubr.msk.f32.mxu1 %vm848_vm2, %v4083_v27  ;;  %v4071_v26 = vld [vmem:[#allocation2 + $0x6] sm:$0xff]  ;;  %v4072_v33 = vld [vmem:[#allocation2 + $0xe] sm:$0xff] }
 0x738   : > { %6510 = vmatmul.mubr.msk.f32.vlgmr.msra.gmra.mxu0 %vm848_vm2, %v4084_v6  ;;  %6521 = vmatmul.mubr.msk.f32.vlgmr.msra.gmra.mxu1 %vm848_vm2, %v4084_v6  ;;  %v4407_v34 = vld [vmem:[#allocation2 + $0x8] sm:$0xff]  ;;  %v4752_v61 = vld [vmem:[#allocation2 + $0x12] sm:$0xff] }
 0x739   : > { %6524 = vmatpush3.msra.mxu0 %v4077_v11  ;;  %6535 = vmatpush3.msra.mxu1 %v4082_v12  ;;  %v4579_v44 = vld [vmem:[#allocation2 + $0x9] sm:$0xff] }
 0x73a   : > { %6525 = vmatprep.subr.mxu0 %v4076_v28  ;;  %6531 = vmatprep.mubr.msk.f32.mxu0 %vm848_vm2, %v4071_v26  ;;  %v4751_v54 = vld [vmem:[#allocation2 + $0xa] sm:$0xff] }
 0x73b   : > { %6536 = vmatprep.subr.mxu1 %v4081_v22  ;;  %6542 = vmatprep.mubr.msk.f32.mxu1 %vm848_vm2, %v4071_v26 }
 0x73c   : > { %6526 = vmatpush3.msra.mxu0 %v4076_v28  ;;  %6537 = vmatpush3.msra.mxu1 %v4081_v22 }
 0x73d   : > { %6527 = vmatprep.subr.mxu0 %v4075_v29  ;;  %6538 = vmatprep.subr.mxu1 %v4080_v23 }
 0x73e   : > { %6528 = vmatpush3.msra.mxu0 %v4075_v29  ;;  %6539 = vmatpush3.msra.mxu1 %v4080_v23 }
 0x73f   : > { %6529 = vmatprep.subr.mxu0 %v4074_v25  ;;  %6540 = vmatprep.subr.mxu1 %v4079_v30 }
 0x740   : > { %6530 = vmatpush3.msra.mxu0 %v4074_v25  ;;  %6541 = vmatpush3.msra.mxu1 %v4079_v30 }
 0x741   : > { %6532 = vmatmul.mubr.msk.f32.vlgmr.msra.gmra.mxu0 %vm848_vm2, %v4072_v33  ;;  %6543 = vmatmul.mubr.msk.f32.vlgmr.msra.gmra.mxu1 %vm848_vm2, %v4072_v33 }
 0x742   : > { %6545 = vmatprep.subr.mxu0 %v4413_v31  ;;  %6556 = vmatprep.subr.mxu1 %v4499_v32 }
 0x743   : > { %6546 = vmatpush3.msra.mxu0 %v4413_v31  ;;  %6553 = vmatprep.mubr.msk.f32.mxu0 %vm848_vm2, %v4407_v34  ;;  %v5786_v31 = vld [vmem:[#allocation12 + $0x3] ss:$0 sm:$0xff] }
 0x744   : > { %6557 = vmatpush3.msra.mxu1 %v4499_v32  ;;  %6564 = vmatprep.mubr.msk.f32.mxu1 %vm848_vm2, %v4407_v34 }
 0x745   : > { %6547 = vmatprep.subr.mxu0 %v4412_v35  ;;  %6558 = vmatprep.subr.mxu1 %v4498_v36 }
 0x746   : > { %6548 = vmatpush3.msra.mxu0 %v4412_v35  ;;  %6559 = vmatpush3.msra.mxu1 %v4498_v36 }
 0x747   : > { %6549 = vmatprep.subr.mxu0 %v4411_v37  ;;  %6560 = vmatprep.subr.mxu1 %v4497_v38 }
 0x748   : > { %6550 = vmatpush3.msra.mxu0 %v4411_v37  ;;  %6561 = vmatpush3.msra.mxu1 %v4497_v38 }
 0x749   : > { %6551 = vmatprep.subr.mxu0 %v4410_v39  ;;  %6562 = vmatprep.subr.mxu1 %v4496_v40 }
 0x74a   : > { %6552 = vmatpush3.msra.mxu0 %v4410_v39  ;;  %6563 = vmatpush3.msra.mxu1 %v4496_v40 }
 0x74b   : > { %6554 = vmatmul.mubr.msk.f32.vlgmr.msra.gmra.mxu0 %vm848_vm2, %v4408_v43  ;;  %6565 = vmatmul.mubr.msk.f32.vlgmr.msra.gmra.mxu1 %vm848_vm2, %v4408_v43 }
 0x74c   : > { %6567 = vmatprep.subr.mxu0 %v4585_v41  ;;  %6578 = vmatprep.subr.mxu1 %v4671_v42 }
 0x74d   : > { %6568 = vmatpush3.msra.mxu0 %v4585_v41  ;;  %6575 = vmatprep.mubr.msk.f32.mxu0 %vm848_vm2, %v4579_v44 }
 0x74e   : > { %6579 = vmatpush3.msra.mxu1 %v4671_v42  ;;  %6586 = vmatprep.mubr.msk.f32.mxu1 %vm848_vm2, %v4579_v44 }
 0x74f   : > { %6569 = vmatprep.subr.mxu0 %v4584_v45  ;;  %6580 = vmatprep.subr.mxu1 %v4670_v46 }
 0x750   : > { %6570 = vmatpush3.msra.mxu0 %v4584_v45  ;;  %6581 = vmatpush3.msra.mxu1 %v4670_v46  ;;  %v5785_v46 = vld [vmem:[#allocation9 + $0x3] ss:$0 sm:$0xff] }
 0x751   : > { %6571 = vmatprep.subr.mxu0 %v4583_v47  ;;  %6582 = vmatprep.subr.mxu1 %v4669_v48 }
 0x752   : > { %6572 = vmatpush3.msra.mxu0 %v4583_v47  ;;  %6583 = vmatpush3.msra.mxu1 %v4669_v48 }
 0x753   : > { %6573 = vmatprep.subr.mxu0 %v4582_v49  ;;  %6584 = vmatprep.subr.mxu1 %v4668_v50 }
 0x754   : > { %6574 = vmatpush3.msra.mxu0 %v4582_v49  ;;  %6585 = vmatpush3.msra.mxu1 %v4668_v50 }
 0x755   : > { %6576 = vmatmul.mubr.msk.f32.vlgmr.msra.gmra.mxu0 %vm848_vm2, %v4580_v53  ;;  %6587 = vmatmul.mubr.msk.f32.vlgmr.msra.gmra.mxu1 %vm848_vm2, %v4580_v53 }
 0x756   : > { %6589 = vmatprep.subr.mxu0 %v4757_v51  ;;  %6600 = vmatprep.subr.mxu1 %v4843_v52 }
 0x757   : > { %6590 = vmatpush3.msra.mxu0 %v4757_v51  ;;  %6597 = vmatprep.mubr.msk.f32.mxu0 %vm848_vm2, %v4751_v54 }
 0x758   : > { %6601 = vmatpush3.msra.mxu1 %v4843_v52  ;;  %6608 = vmatprep.mubr.msk.f32.mxu1 %vm848_vm2, %v4751_v54 }
 0x759   : > { %6591 = vmatprep.subr.mxu0 %v4756_v55  ;;  %6602 = vmatprep.subr.mxu1 %v4842_v56 }
 0x75a   : > { %6592 = vmatpush3.msra.mxu0 %v4756_v55  ;;  %6603 = vmatpush3.msra.mxu1 %v4842_v56 }
 0x75b   : > { %6593 = vmatprep.subr.mxu0 %v4755_v57  ;;  %6604 = vmatprep.subr.mxu1 %v4841_v58 }
 0x75c   : > { %6594 = vmatpush3.msra.mxu0 %v4755_v57  ;;  %6605 = vmatpush3.msra.mxu1 %v4841_v58 }
 0x75d   : > { %6595 = vmatprep.subr.mxu0 %v4754_v59  ;;  %6606 = vmatprep.subr.mxu1 %v4840_v60 }
 0x75e   : > { %6596 = vmatpush3.msra.mxu0 %v4754_v59  ;;  %6607 = vmatpush3.msra.mxu1 %v4840_v60  ;;  %v5056_v60 = vld [vmem:[%s7920_s12 + $0x18] sm:$0xff] }
 0x75f   : > { %6598 = vmatmul.mubr.msk.f32.vlgmr.msra.gmra.mxu0 %vm848_vm2, %v4752_v61  ;;  %6609 = vmatmul.mubr.msk.f32.vlgmr.msra.gmra.mxu1 %vm848_vm2, %v4752_v61  ;;  %v5055_v61 = vld [vmem:[%s7920_s12 + $0x10] sm:$0xff] }
 0x760   : > { %6611 = vmatprep.subr.mxu0 %v4959_v62  ;;  %6622 = vmatprep.subr.mxu1 %v5056_v60 }
 0x761   : > { %6612 = vmatpush3.msra.mxu0 %v4959_v62  ;;  %6623 = vmatpush3.msra.mxu1 %v5056_v60  ;;  %v5054_v62 = vld [vmem:[%s7920_s12 + $0x8] sm:$0xff] }
 0x762   : > { %6613 = vmatprep.subr.mxu0 %v4958_v63  ;;  %6624 = vmatprep.subr.mxu1 %v5055_v61 }
 0x763   : > { %6614 = vmatpush3.msra.mxu0 %v4958_v63  ;;  %6625 = vmatpush3.msra.mxu1 %v5055_v61  ;;  %v5053_v63 = vld [vmem:[%s7920_s12] sm:$0xff] }
 0x764   : > { %6615 = vmatprep.subr.mxu0 %v4957_v0  ;;  %6626 = vmatprep.subr.mxu1 %v5054_v62 }
 0x765   : > { %6616 = vmatpush3.msra.mxu0 %v4957_v0  ;;  %6627 = vmatpush3.msra.mxu1 %v5054_v62  ;;  %v5787_v0 = vld [vmem:[#allocation15 + $0x3] ss:$0 sm:$0xff] }
 0x766   : > { %6617 = vmatprep.subr.mxu0 %v4956_v1  ;;  %6628 = vmatprep.subr.mxu1 %v5053_v63 }
 0x767   : > { %6618 = vmatpush3.msra.mxu0 %v4956_v1  ;;  %6629 = vmatpush3.msra.mxu1 %v5053_v63  ;;  %v5762_v1 = vld [vmem:[#allocation18 + $0x2] ss:$0 sm:$0xff] }
 0x7f8   : > { %v6511_v4 = vpop.f32.mrf.mxu0  ;;  %v6522_v7 = vpop.f32.mrf.mxu1 }
 0x7fa   : > { %v4162_v8 = vpop.f32.mrf.mxu0  ;;  %v4242_v9 = vpop.f32.mrf.mxu1 }
 0x801   : > { %v6533_v10 = vpop.f32.mrf.mxu0  ;;  %v6544_v11 = vpop.f32.mrf.mxu1 }
 0x802   : > { %v4404_v24 = vadd.f32 %v6544_v11, %v6522_v7  ;;  %v4329_v23 = vadd.f32 %v6533_v10, %v6511_v4  ;;  %v4057_v10 = vadd.f32 %v5762_v1, %v7799_v3  ;;  %v5148_v3 = vld [vmem:[%s7922_s14 + $0x8] sm:$0xff] }
 0x803   : > { %v4323_v12 = vpop.f32.mrf.mxu0  ;;  %v4398_v13 = vpop.f32.mrf.mxu1 }
 0x804   : > { %v4399_v5 = vadd.f32 %v4398_v13, %v4242_v9  ;;  %v4324_v22 = vadd.f32 %v4323_v12, %v4162_v8  ;;  %v4062_v8 = vadd.f32 %v7797_v2, %v5762_v1  ;;  %v5149_v2 = vld [vmem:[%s7922_s14 + $0x10] sm:$0xff] }
 0x80b   : > { %v6555_v14 = vpop.f32.mrf.mxu0  ;;  %v6566_v15 = vpop.f32.mrf.mxu1 }
 0x80c   : > { %v4578_v27 = vadd.f32 %v6566_v15, %v4404_v24  ;;  %v4576_v35 = vadd.f32 %v6555_v14, %v4329_v23  ;;  %v5241_v23 = vld [vmem:[%s7924_s16] sm:$0xff] }
 0x80d   : > { %v4486_v16 = vpop.f32.mrf.mxu0  ;;  %v4566_v18 = vpop.f32.mrf.mxu1 }
 0x80e   : > { %v4577_v26 = vadd.f32 %v4566_v18, %v4399_v5  ;;  %v4575_v32 = vadd.f32 %v4486_v16, %v4324_v22  ;;  %v5150_v16 = vld [vmem:[%s7922_s14 + $0x18] sm:$0xff]  ;;  %v5147_v18 = vld [vmem:[%s7922_s14] sm:$0xff] }
 0x80f   : > { %6633 = vmatprep.subr.mxu0 %v5150_v16  ;;  %v5244_v22 = vld [vmem:[%s7924_s16 + $0x18] sm:$0xff] }
 0x810   : > { %6644 = vmatprep.subr.mxu1 %v5244_v22 }
 0x815   : > { %v6577_v19 = vpop.f32.mrf.mxu0  ;;  %v6588_v21 = vpop.f32.mrf.mxu1 }
 0x816   : > { %v4750_v29 = vadd.f32 %v6588_v21, %v4578_v27  ;;  %v4748_v41 = vadd.f32 %v6577_v19, %v4576_v35  ;;  %v5790_v19 = vld [vmem:[#allocation20] ss:$0 sm:$0xff] }
 0x817   : > { %v4658_v6 = vpop.f32.mrf.mxu0  ;;  %v4738_v28 = vpop.f32.mrf.mxu1 }
 0x818   : > { %v4749_v33 = vadd.f32 %v4738_v28, %v4577_v26  ;;  %v4747_v38 = vadd.f32 %v4658_v6, %v4575_v32  ;;  %v5243_v26 = vld [vmem:[%s7924_s16 + $0x10] sm:$0xff] }
 0x81f   : > { %v6599_v25 = vpop.f32.mrf.mxu0  ;;  %v6610_v30 = vpop.f32.mrf.mxu1 }
 0x820   : > { %v4922_v34 = vadd.f32 %v6610_v30, %v4750_v29  ;;  %v4920_v45 = vadd.f32 %v6599_v25, %v4748_v41  ;;  %v5242_v29 = vld [vmem:[%s7924_s16 + $0x8] sm:$0xff]  ;;  %v5793_v25 = vld [vmem:[#allocation21] ss:$0 sm:$0xff] }
 0x821   : > { %v4830_v36 = vpop.f32.mrf.mxu0  ;;  %v4910_v37 = vpop.f32.mrf.mxu1 }
 0x822   : > { %v4942_v39 = vadd.f32 %v5786_v31, %v4922_v34  ;;  %v4921_v40 = vadd.f32 %v4910_v37, %v4749_v33  ;;  %v4919_v43 = vadd.f32 %v4830_v36, %v4747_v38  ;;  %v4932_v49 = vadd.f32 %v5785_v46, %v4920_v45  ;;  %v5338_v36 = vld [vmem:[#allocation23 + $0x18] sm:$0xff]  ;;  %v5337_v37 = vld [vmem:[#allocation23 + $0x10] sm:$0xff]  ;;  %v5336_v38 = vld [vmem:[#allocation23 + $0x8] sm:$0xff] }
 0x824   : > { %v4946_v42 = vmul.f32 0.5, %v4942_v39  ;;  %v4941_v44 = vadd.f32 %v5786_v31, %v4921_v40  ;;  %v4931_v48 = vadd.f32 %v5785_v46, %v4919_v43  ;;  %v5335_v39 = vld [vmem:[#allocation23] sm:$0xff] }
 0x825   : > { %v5796_v40 = vld [vmem:[%s7925_s17] ss:$0 sm:$0xff] }
 0x826   : > { %6869 = vtanh.f32 %v4946_v42  ;;  %v4945_v47 = vmul.f32 0.5, %v4941_v44 }
 0x828   : > { %6871 = vtanh.f32 %v4945_v47  ;;  %v5799_v47 = vld [vmem:[%s7927_s19] ss:$0 sm:$0xff] }
 0x829   : > { %6873 = vtanh.f32 %v4931_v48 }
 0x82a   : > { %6875 = vtanh.f32 %v4932_v49 }
 0x833   : > { %v6870_v50 = vpop.eup %6869 }
 0x834   : > { %v4950_v51 = vadd.f32 1.0, %v6870_v50 }
 0x835   : > { %v6872_v52 = vpop.eup %6871 }
 0x836   : > { %v4949_v53 = vadd.f32 1.0, %v6872_v52  ;;  %v4952_v54 = vmul.f32 0.5, %v4950_v51  ;;  %v6874_v56 = vpop.eup %6873 }
 0x837   : > { %v6876_v57 = vpop.eup %6875 }
 0x838   : > { %v4951_v55 = vmul.f32 0.5, %v4949_v53  ;;  %v4954_v59 = vmul.f32 %v6876_v57, %v4952_v54 }
 0x83a   : > { %v4953_v58 = vmul.f32 %v6874_v56, %v4951_v55 }
 0x83c   : > { %6619 = vmatprep.mubr.msk.f32.mxu0 %vm848_vm2, %v4953_v58 }
 0x83d   : > { %6620 = vmatmul.mubr.msk.f32.vlgmr.msra.gmra.mxu0 %vm848_vm2, %v4954_v59 }
 0x83e   : > { %6634 = vmatpush3.msra.mxu0 %v5150_v16 }
 0x83f   : > { %6635 = vmatprep.subr.mxu0 %v5149_v2 }
 0x840   : > { %6636 = vmatpush3.msra.mxu0 %v5149_v2 }
 0x841   : > { %6637 = vmatprep.subr.mxu0 %v5148_v3 }
 0x842   : > { %6638 = vmatpush3.msra.mxu0 %v5148_v3 }
 0x843   : > { %6639 = vmatprep.subr.mxu0 %v5147_v18 }
 0x844   : > { %6640 = vmatpush3.msra.mxu0 %v5147_v18 }
 0x845   : > { %6655 = vmatprep.subr.mxu0 %v5338_v36 }
 0x8fd   : > { %v6621_v4 = vpop.f32.mrf.mxu0 }
 0x8fe   : > { %v5046_v7 = vadd.f32 %v6621_v4, %v5787_v0 }
 0x8ff   : > { %v5040_v9 = vpop.f32.mrf.mxu0 }
 0x900   : > { %v5041_v11 = vadd.f32 %v5787_v0, %v5040_v9  ;;  %v5050_v12 = vadd.f32 %v5046_v7, %v4062_v8 }
 0x902   : > { %v5049_v13 = vadd.f32 %v5041_v11, %v4057_v10  ;;  %v5052_v15 = vmul.f32 %v5050_v12, %v7667_v20 }
 0x904   : > { %v5051_v14 = vmul.f32 %v5049_v13, %v7665_v17 }
 0x906   : > { %6630 = vmatprep.mubr.msk.f32.mxu1 %vm848_vm2, %v5051_v14 }
 0x907   : > { %6631 = vmatmul.mubr.msk.f32.vlgmr.msra.gmra.mxu1 %vm848_vm2, %v5052_v15 }
 0x908   : > { %6645 = vmatpush3.msra.mxu1 %v5244_v22 }
 0x909   : > { %6646 = vmatprep.subr.mxu1 %v5243_v26 }
 0x90a   : > { %6647 = vmatpush3.msra.mxu1 %v5243_v26 }
 0x90b   : > { %6648 = vmatprep.subr.mxu1 %v5242_v29 }
 0x90c   : > { %6649 = vmatpush3.msra.mxu1 %v5242_v29 }
 0x90d   : > { %6650 = vmatprep.subr.mxu1 %v5241_v23 }
 0x90e   : > { %6651 = vmatpush3.msra.mxu1 %v5241_v23 }
 0x9c7   : > { %v6632_v21 = vpop.f32.mrf.mxu1 }
 0x9c8   : > { %v5142_v24 = vadd.f32 %v6632_v21, %v5790_v19 }
 0x9c9   : > { %v5136_v5 = vpop.f32.mrf.mxu1 }
 0x9ca   : > { %v5137_v27 = vadd.f32 %v5790_v19, %v5136_v5  ;;  %v5146_v28 = vmax.f32 %v5142_v24, 0.0 }
 0x9cc   : > { %v5145_v6 = vmax.f32 %v5137_v27, 0.0 }
 0x9ce   : > { %6641 = vmatprep.mubr.msk.f32.mxu0 %vm848_vm2, %v5145_v6 }
 0x9cf   : > { %6642 = vmatmul.mubr.msk.f32.vlgmr.msra.gmra.mxu0 %vm848_vm2, %v5146_v28 }
 0x9d0   : > { %6656 = vmatpush3.msra.mxu0 %v5338_v36 }
 0x9d1   : > { %6657 = vmatprep.subr.mxu0 %v5337_v37 }
 0x9d2   : > { %6658 = vmatpush3.msra.mxu0 %v5337_v37 }
 0x9d3   : > { %6659 = vmatprep.subr.mxu0 %v5336_v38 }
 0x9d4   : > { %6660 = vmatpush3.msra.mxu0 %v5336_v38 }
 0x9d5   : > { %6661 = vmatprep.subr.mxu0 %v5335_v39 }
 0x9d6   : > { %6662 = vmatpush3.msra.mxu0 %v5335_v39 }
 0xa8f   : > { %v6643_v30 = vpop.f32.mrf.mxu0 }
 0xa90   : > { %v5236_v31 = vadd.f32 %v6643_v30, %v5793_v25 }
 0xa91   : > { %v5230_v32 = vpop.f32.mrf.mxu0 }
 0xa92   : > { %v5231_v33 = vadd.f32 %v5793_v25, %v5230_v32  ;;  %v5240_v35 = vmax.f32 %v5236_v31, 0.0 }
 0xa94   : > { %v5239_v34 = vmax.f32 %v5231_v33, 0.0 }
 0xa96   : > { %6652 = vmatprep.mubr.msk.f32.mxu1 %vm848_vm2, %v5239_v34 }
 0xa97   : > { %6653 = vmatmul.mubr.msk.f32.vlgmr.msra.gmra.mxu1 %vm848_vm2, %v5240_v35 }
 0xb57   : > { %v6654_v41 = vpop.f32.mrf.mxu1 }
 0xb58   : > { %v5330_v42 = vadd.f32 %v6654_v41, %v5796_v40 }
 0xb59   : > { %v5324_v43 = vpop.f32.mrf.mxu1 }
 0xb5a   : > { %v5325_v44 = vadd.f32 %v5796_v40, %v5324_v43  ;;  %v5334_v46 = vmax.f32 %v5330_v42, 0.0 }
 0xb5c   : > { %v5333_v45 = vmax.f32 %v5325_v44, 0.0 }
 0xb5e   : > { %6663 = vmatprep.mubr.msk.f32.mxu0 %vm848_vm2, %v5333_v45 }
 0xb5f   : > { %6664 = vmatmul.mubr.msk.f32.vlgmr.msra.gmra.mxu0 %vm848_vm2, %v5334_v46 }
 0xc1f   : > { %v6665_v48 = vpop.f32.mrf.mxu0 }
 0xc20   : > { %v5424_v49 = vadd.f32 %v6665_v48, %v5799_v47 }
 0xc21   : > { %v5418_v50 = vpop.f32.mrf.mxu0 }
 0xc22   : > { %v5428_v51 = vmul.f32 %v5424_v49, %v7667_v20  ;;  %v5419_v52 = vadd.f32 %v5799_v47, %v5418_v50 }
 0xc24   : > { %5430 = vst [vmem:[%s820_s5 + $0x8] sm:$0xff] %v5428_v51  ;;  %v5427_v53 = vmul.f32 %v5419_v52, %v7665_v17 }
 0xc26   : > { %5429 = vst [vmem:[%s820_s5] sm:$0xff] %v5427_v53 }
 0xc27   : > { %7228 = shalt.err (!%p7225_p3)
}
 0xc28   : > { %s7229_s25 = scalar_lea.hbm %s7866_s0, 256  ;;  %s7233_s3 = scalar_lea.hbm %s7979_s20, 512 }
 0xc29   : > { %p7230_p2 = scmp.ne.s32.totalorder %s7866_s0, %s7229_s25  ;;  %p7234_p6 = scmp.lt.s32.totalorder %s7866_s0, %s7979_s20 }
 0xc2a   : > { %p7235_p5 = scmp.lt.s32.totalorder %s7233_s3, %s7229_s25 }
 0xc2b   : > { %p7231_p4 = pnand %p7230_p2, %p7980_p7 }
 0xc2c   : > { %p7236_p13 = por %p7235_p5, %p7234_p6 }
 0xc2d   : > { %p7232_p9 = pneg %p7231_p4 }
 0xc2f   : > { %p7237_p10 = pnand %p7236_p13, %p7232_p9 }
 0xc31   : > { %7240 = shalt.err (!%p7237_p10)
}
 0xc32   : > { %s7325_s24 = smov 128   ;;  %s7326_s2 = smov 8  }
 0xc33   : > { %6718 = dma.vmem_to_hbm [thread:$0]  (%p7980_p7), %s7860_s1, 256, %s7866_s0, %s7868_s29, %s7325_s24, %s7325_s24, %s7326_s2  }
 0xc34 PF: > { %s7981_s28 = sld [smem:[#allocation35_spill]] }
 0xc35   : > { %s7982_s23 = sld [smem:[#allocation33_spill]] }
 0xc36   : > { %s7983_s26 = sld [smem:[#allocation38_spill]] }
 0xc3a   : > { %p6790_p8 = scmp.ge.s32.totalorder %s7981_s28, 2 }
 0xc3b   : > { %s5460_s21 = sand.u32 1, %s7982_s23  }
 0xc3c   : > { %p7984_p11 = scmp.ne.s32.totalorder %s7983_s26, 0  ;;  %s5461_s25 = scalar_lea.sflag [#allocation5], %s5460_s21 }
 0xc3e   : > { %p6761_p12 = pnand %p6790_p8, %p7984_p11 }
 0xc40   : > { %p6762_p0 = pneg %p6761_p12 }
 0xc42   : > { %7286 = dma.done.wait (%p6762_p0), %s5461_s25, 256  }
 0xc43   : > { %7288 = vsyncadd (%p6762_p0), %s5461_s25, 4294967040  ;;  %s7985_s24 = sld [smem:[#allocation36_spill]]  ;;  %s7988_s1 = smov %s7295_s22 }
 0xc44   : > { %s7986_s5 = sld [smem:[#allocation34_spill]] }
 0xc45   : > { %s7987_s23 = sld [smem:[#allocation37_spill]] }
 0xc49   : > { %p37_p1 = scmp.ge.s32.totalorder %s7985_s24, 4  }
 0xc4a   : > { %s7989_s22 = smov %s7986_s5 }
 0xc4b   :  { %39 = sbr.rel (!%p37_p1) target bundleno = 18 (0x12), region = 243 }
 0xc50   :  { %5466 = vsyncpa [#allocation4], 1 }
 0xc51   :  { %5468 = vsyncpa [#allocation4 + $0x1], 1 }
 0xc52   :  { %5469 = vsyncpa [#allocation7], 1 }
 0xc53   :  { %5470 = vsyncpa [#allocation10], 1 }
 0xc54   :  { %5471 = vsyncpa [#allocation13], 1 }
 0xc55   :  { %5472 = vsyncpa [#allocation16], 1 }
 0xc56   :  { %5473 = vsyncpa [#allocation19], 1 }
 0xc57   :  { %5474 = vsyncpa [#allocation22], 1 }
 0xc58   :  { %5475 = vsyncpa [#allocation5], 1 }
 0xc59   :  { %5477 = vsyncpa [#allocation5 + $0x1], 1 }

</bundles_post_ra>
